<compile_context>
chip_gen: v7x
topology: tpu7x:2x2x1
jax: 0.10.0
libtpu: 0.0.40
codegen_flags: <defaults>
</compile_context>

<pallas_src>
import functools

import jax
import jax.numpy as jnp
from jax.experimental import pallas as pl
from jax.experimental.pallas import tpu as pltpu

EPS = 1e-5          # BatchNorm2d default eps
NEG_SLOPE = 0.2     # LeakyReLU slope


def _round_up(a, b):
    return ((a + b - 1) // b) * b


# --------------------------------------------------------------------------
# Kernel: per-channel sum / sum-of-squares over a (N, C) slab (tiled reduction)
# --------------------------------------------------------------------------
def _colstats_kernel(x_ref, sum_ref, ssq_ref, *, n_rows, tile_rows):
    i = pl.program_id(0)

    @pl.when(i == 0)
    def _init():
        sum_ref[...] = jnp.zeros_like(sum_ref)
        ssq_ref[...] = jnp.zeros_like(ssq_ref)

    x = x_ref[...]
    if n_rows % tile_rows != 0:          # mask the partial last tile
        r = jax.lax.broadcasted_iota(jnp.int32, x.shape, 0) + i * tile_rows
        x = jnp.where(r < n_rows, x, 0.0)
    sum_ref[...] += jnp.sum(x, axis=0, keepdims=True)
    ssq_ref[...] += jnp.sum(x * x, axis=0, keepdims=True)


# --------------------------------------------------------------------------
# Kernel: conv1 (BN_fixed folded into weights) + per-channel stats of conv1 out
# --------------------------------------------------------------------------
def _make_conv1_kernel(K, tile_h, Wout, Cin, Cout, Hout):
    mask_rows = (Hout % tile_h) != 0

    def kernel(*refs):
        if K > 1:
            xa_ref, xb_ref, w1_ref, h1_ref, sum_ref, ssq_ref = refs
        else:
            xa_ref, w1_ref, h1_ref, sum_ref, ssq_ref = refs
            xb_ref = None
        b = pl.program_id(0)
        hb = pl.program_id(1)

        @pl.when((b == 0) & (hb == 0))
        def _init():
            sum_ref[...] = jnp.zeros_like(sum_ref)
            ssq_ref[...] = jnp.zeros_like(ssq_ref)

        a = xa_ref[...]                                    # (tile_h, Wpad, Cin)
        if K > 1:
            win = jnp.concatenate([a, xb_ref[...]], axis=0)  # (tile_h+K-1, Wpad, Cin)
        else:
            win = a
        w1 = w1_ref[...]                                   # (K, K, Cin, Cout)

        acc = jnp.zeros((tile_h * Wout, Cout), jnp.float32)
        for ki in range(K):                                # K*K shifted MXU matmuls
            for kj in range(K):
                sl = win[ki:ki + tile_h, kj:kj + Wout, :]  # (tile_h, Wout, Cin)
                acc = acc + jnp.dot(sl.reshape(tile_h * Wout, Cin), w1[ki, kj],
                                    preferred_element_type=jnp.float32)

        stat = acc
        if mask_rows:                                      # ignore rows past Hout
            r = jax.lax.broadcasted_iota(jnp.int32, (tile_h * Wout, 1), 0) // Wout
            stat = jnp.where((r + hb * tile_h) < Hout, acc, 0.0)
        sum_ref[...] += jnp.sum(stat, axis=0, keepdims=True)
        ssq_ref[...] += jnp.sum(stat * stat, axis=0, keepdims=True)

        h1_ref[...] = acc.reshape(tile_h, Wout, Cout)

    return kernel


# --------------------------------------------------------------------------
# Kernel: stats of conv2 output (recomputes BN1 + LeakyReLU + 1x1 conv per tile)
# --------------------------------------------------------------------------
def _make_stats2_kernel(tile_h, Wout, Cout, Hout):
    mask_rows = (Hout % tile_h) != 0

    def kernel(h1_ref, s1_ref, t1_ref, w2_ref, sum_ref, ssq_ref):
        b = pl.program_id(0)
        hb = pl.program_id(1)

        @pl.when((b == 0) & (hb == 0))
        def _init():
            sum_ref[...] = jnp.zeros_like(sum_ref)
            ssq_ref[...] = jnp.zeros_like(ssq_ref)

        h = h1_ref[...].reshape(tile_h * Wout, Cout)
        act = h * s1_ref[...] + t1_ref[...]
        act = jnp.where(act > 0, act, NEG_SLOPE * act)
        h2 = jnp.dot(act, w2_ref[...], preferred_element_type=jnp.float32)
        if mask_rows:
            r = jax.lax.broadcasted_iota(jnp.int32, (tile_h * Wout, 1), 0) // Wout
            h2 = jnp.where((r + hb * tile_h) < Hout, h2, 0.0)
        sum_ref[...] += jnp.sum(h2, axis=0, keepdims=True)
        ssq_ref[...] += jnp.sum(h2 * h2, axis=0, keepdims=True)

    return kernel


# --------------------------------------------------------------------------
# Kernel: BN1 + LReLU + 1x1 conv + BN2 + LReLU + fused 2x nearest upsample
# Output array is viewed as (B, Hout, 2, Wout, 2*Cout), a pure reshape-view of
# the NHWC upsampled tensor (B, 2*Hout, 2*Wout, Cout).
# --------------------------------------------------------------------------
def _make_final_kernel(tile_h, Wout, Cout):
    def kernel(h1_ref, s1_ref, t1_ref, w2_ref, s2_ref, t2_ref, y_ref):
        h = h1_ref[...].reshape(tile_h * Wout, Cout)
        act = h * s1_ref[...] + t1_ref[...]
        act = jnp.where(act > 0, act, NEG_SLOPE * act)
        h2 = jnp.dot(act, w2_ref[...], preferred_element_type=jnp.float32)
        y = h2 * s2_ref[...] + t2_ref[...]
        y = jnp.where(y > 0, y, NEG_SLOPE * y)
        t = y.reshape(tile_h, Wout, Cout)
        u = jnp.concatenate([t, t], axis=-1)               # nearest 2x along W
        y_ref[...] = jnp.broadcast_to(u[:, None, :, :],    # nearest 2x along H
                                      (tile_h, 2, Wout, 2 * Cout))

    return kernel


# --------------------------------------------------------------------------
# Wrapper
# --------------------------------------------------------------------------
def upsample_module_forward(x_nchw, params, *, kernel_size=3, pad_size=1,
                            rows_per_step=2048):
    B, Cin, H, W = x_nchw.shape
    K = kernel_size
    Cout = params["conv1_w"].shape[0]

    x_nhwc = jnp.transpose(x_nchw, (0, 2, 3, 1)).astype(jnp.float32)
    n_in = B * H * W
    x2d = x_nhwc.reshape(n_in, Cin)

    # ---- per-channel stats of x (tiny tiled reduction kernel) ----------------
    tile_n = n_in if n_in <= 2048 else 2048
    xsum, xssq = pl.pallas_call(
        functools.partial(_colstats_kernel, n_rows=n_in, tile_rows=tile_n),
        grid=(pl.cdiv(n_in, tile_n),),
        in_specs=[pl.BlockSpec((tile_n, Cin), lambda i: (i, 0))],
        out_specs=[pl.BlockSpec((1, Cin), lambda i: (0, 0)),
                   pl.BlockSpec((1, Cin), lambda i: (0, 0))],
        out_shape=[jax.ShapeDtypeStruct((1, Cin), jnp.float32),
                   jax.ShapeDtypeStruct((1, Cin), jnp.float32)],
        compiler_params=pltpu.CompilerParams(dimension_semantics=("arbitrary",)),
    )(x2d)
    mu_x = xsum / n_in
    var_x = xssq / n_in - mu_x * mu_x                      # biased (PyTorch fwd)

    # Fold BatchNorm2d(input_depth) into conv1: per-input-channel scale only.
    # The BN shift, conv1 bias and conv2 bias are per-channel constants that are
    # exactly cancelled by the following training-mode BN mean subtraction.
    s_in = params["bn_fixed_gamma"].reshape(1, Cin) * jax.lax.rsqrt(var_x + EPS)
    w1f = jnp.transpose(params["conv1_w"], (2, 3, 1, 0)) * s_in.reshape(1, 1, Cin, 1)
    w2 = params["conv2_w"][:, :, 0, 0].T                   # (Cout_in, Cout_out)
    gamma = params["bn_gamma"].reshape(1, Cout)
    beta = params["bn_beta"].reshape(1, Cout)

    # ---- reflection pad (pure XLA data movement) -----------------------------
    x_pad = jnp.pad(x_nhwc, ((0, 0), (pad_size, pad_size),
                             (pad_size, pad_size), (0, 0)), mode="reflect")
    Hpad, Wpad = H + 2 * pad_size, W + 2 * pad_size
    Hout, Wout = Hpad - K + 1, Wpad - K + 1

    # ---- row tiling over output rows (v7x-safe default working set) ---------
    step = (K - 1) if K > 1 else 1
    tgt_h = max(1, rows_per_step // max(1, Wout))
    tile_h = max(step, min(_round_up(Hout, step), _round_up(tgt_h, step)))
    n_h = pl.cdiv(Hout, tile_h)

    # Extend padded H with zeros so every (halo) block is fully in-bounds.
    hpad_ext = max(Hpad, n_h * tile_h + (K - 1 if K > 1 else 0))
    if hpad_ext > Hpad:
        x_pad = jnp.pad(x_pad, ((0, 0), (0, hpad_ext - Hpad), (0, 0), (0, 0)))

    # ---- conv1 (+ stats of its output) ---------------------------------------
    conv1_kernel = _make_conv1_kernel(K, tile_h, Wout, Cin, Cout, Hout)
    in_specs = [pl.BlockSpec((None, tile_h, Wpad, Cin), lambda b, h: (b, h, 0, 0))]
    inputs = [x_pad]
    if K > 1:
        hstep = tile_h // (K - 1)   # halo block index step (tile_h % (K-1) == 0)
        in_specs.append(pl.BlockSpec((None, K - 1, Wpad, Cin),
                                     lambda b, h: (b, (h + 1) * hstep, 0, 0)))
        inputs.append(x_pad)
    in_specs.append(pl.BlockSpec((K, K, Cin, Cout), lambda b, h: (0, 0, 0, 0)))
    inputs.append(w1f)

    flops_c1 = 2 * B * Hout * Wout * K * K * Cin * Cout
    bytes_c1 = 4 * (B * hpad_ext * Wpad * Cin + B * Hout * Wout * Cout
                    + K * K * Cin * Cout + 2 * Cout)
    h1, sum1, ssq1 = pl.pallas_call(
        conv1_kernel,
        grid=(B, n_h),
        in_specs=in_specs,
        out_specs=[pl.BlockSpec((None, tile_h, Wout, Cout), lambda b, h: (b, h, 0, 0)),
                   pl.BlockSpec((1, Cout), lambda b, h: (0, 0)),
                   pl.BlockSpec((1, Cout), lambda b, h: (0, 0))],
        out_shape=[jax.ShapeDtypeStruct((B, Hout, Wout, Cout), jnp.float32),
                   jax.ShapeDtypeStruct((1, Cout), jnp.float32),
                   jax.ShapeDtypeStruct((1, Cout), jnp.float32)],
        compiler_params=pltpu.CompilerParams(
            dimension_semantics=("arbitrary", "arbitrary")),
        cost_estimate=pl.CostEstimate(flops=flops_c1, transcendentals=0,
                                      bytes_accessed=bytes_c1),
    )(*inputs)

    n1 = B * Hout * Wout
    mu1 = sum1 / n1
    var1 = ssq1 / n1 - mu1 * mu1
    scale1 = gamma * jax.lax.rsqrt(var1 + EPS)
    shift1 = beta - mu1 * scale1

    # ---- stats of conv2 output ------------------------------------------------
    sum2, ssq2 = pl.pallas_call(
        _make_stats2_kernel(tile_h, Wout, Cout, Hout),
        grid=(B, n_h),
        in_specs=[pl.BlockSpec((None, tile_h, Wout, Cout), lambda b, h: (b, h, 0, 0)),
                  pl.BlockSpec((1, Cout), lambda b, h: (0, 0)),
                  pl.BlockSpec((1, Cout), lambda b, h: (0, 0)),
                  pl.BlockSpec((Cout, Cout), lambda b, h: (0, 0))],
        out_specs=[pl.BlockSpec((1, Cout), lambda b, h: (0, 0)),
                   pl.BlockSpec((1, Cout), lambda b, h: (0, 0))],
        out_shape=[jax.ShapeDtypeStruct((1, Cout), jnp.float32),
                   jax.ShapeDtypeStruct((1, Cout), jnp.float32)],
        compiler_params=pltpu.CompilerParams(
            dimension_semantics=("arbitrary", "arbitrary")),
    )(h1, scale1, shift1, w2)

    mu2 = sum2 / n1
    var2 = ssq2 / n1 - mu2 * mu2
    scale2 = gamma * jax.lax.rsqrt(var2 + EPS)
    shift2 = beta - mu2 * scale2

    # ---- final: BN1+LReLU+conv2+BN2+LReLU + fused 2x nearest upsample ---------
    flops_c3 = 2 * B * Hout * Wout * Cout * Cout + 8 * B * Hout * Wout * Cout
    bytes_c3 = 4 * (B * Hout * Wout * Cout * 5 + Cout * Cout + 4 * Cout)
    y5 = pl.pallas_call(
        _make_final_kernel(tile_h, Wout, Cout),
        grid=(B, n_h),
        in_specs=[pl.BlockSpec((None, tile_h, Wout, Cout), lambda b, h: (b, h, 0, 0)),
                  pl.BlockSpec((1, Cout), lambda b, h: (0, 0)),
                  pl.BlockSpec((1, Cout), lambda b, h: (0, 0)),
                  pl.BlockSpec((Cout, Cout), lambda b, h: (0, 0)),
                  pl.BlockSpec((1, Cout), lambda b, h: (0, 0)),
                  pl.BlockSpec((1, Cout), lambda b, h: (0, 0))],
        out_specs=pl.BlockSpec((None, tile_h, 2, Wout, 2 * Cout),
                               lambda b, h: (b, h, 0, 0, 0)),
        out_shape=jax.ShapeDtypeStruct((B, Hout, 2, Wout, 2 * Cout), jnp.float32),
        compiler_params=pltpu.CompilerParams(
            dimension_semantics=("parallel", "parallel")),
        cost_estimate=pl.CostEstimate(flops=flops_c3, transcendentals=0,
                                      bytes_accessed=bytes_c3),
    )(h1, scale1, shift1, w2, scale2, shift2)

    y_up = y5.reshape(B, 2 * Hout, 2 * Wout, Cout)          # free view
    return jnp.transpose(y_up, (0, 3, 1, 2))                # back to NCHW


# --------------------------------------------------------------------------
# Parameters and pure-JAX reference (mirrors the PyTorch module exactly)
# --------------------------------------------------------------------------
def init_params(key, input_depth, num_filters, kernel_size):
    ks = jax.random.split(key, 4)
    return {
        "conv1_w": 0.1 * jax.random.normal(
            ks[0], (num_filters, input_depth, kernel_size, kernel_size), jnp.float32),
        "conv1_b": 0.1 * jax.random.normal(ks[1], (num_filters,), jnp.float32),
        "conv2_w": 0.1 * jax.random.normal(
            ks[2], (num_filters, num_filters, 1, 1), jnp.float32),
        "conv2_b": 0.1 * jax.random.normal(ks[3], (num_filters,), jnp.float32),
        "bn_fixed_gamma": jnp.ones((input_depth,), jnp.float32),
        "bn_fixed_beta": jnp.zeros((input_depth,), jnp.float32),
        "bn_gamma": jnp.ones((num_filters,), jnp.float32),
        "bn_beta": jnp.zeros((num_filters,), jnp.float32),
    }


def _reference_forward(x, params, kernel_size, pad_size):
    def bn(t, gamma, beta):
        m = jnp.mean(t, axis=(0, 2, 3), keepdims=True)
        v = jnp.var(t, axis=(0, 2, 3), keepdims=True)
        return ((t - m) * jax.lax.rsqrt(v + EPS) * gamma.reshape(1, -1, 1, 1)
                + beta.reshape(1, -1, 1, 1))

    def lrelu(t):
        return jnp.where(t > 0, t, NEG_SLOPE * t)

    t = bn(x, params["bn_fixed_gamma"], params["bn_fixed_beta"])
    t = jnp.pad(t, ((0, 0), (0, 0), (pad_size, pad_size), (pad_size, pad_size)),
                mode="reflect")
    t = jax.lax.conv_general_dilated(t, params["conv1_w"], (1, 1), "VALID",
                                     dimension_numbers=("NCHW", "OIHW", "NCHW"))
    t = t + params["conv1_b"].reshape(1, -1, 1, 1)
    t = lrelu(bn(t, params["bn_gamma"], params["bn_beta"]))
    t = jax.lax.conv_general_dilated(t, params["conv2_w"], (1, 1), "VALID",
                                     dimension_numbers=("NCHW", "OIHW", "NCHW"))
    t = t + params["conv2_b"].reshape(1, -1, 1, 1)
    t = lrelu(bn(t, params["bn_gamma"], params["bn_beta"]))
    return jnp.repeat(jnp.repeat(t, 2, axis=2), 2, axis=3)


if __name__ == "__main__":
    B, Cin, H, W = 2, 4, 16, 16
    num_filters, kernel_size, pad_size = 8, 3, 1   # upsample_mode = 'nearest'

    key = jax.random.PRNGKey(0)
    kx, kp = jax.random.split(key)
    x = jax.random.normal(kx, (B, Cin, H, W), jnp.float32)
    params = init_params(kp, Cin, num_filters, kernel_size)

    # Small rows_per_step so the toy run exercises multi-tile rows + the halo path.
    fwd = jax.jit(functools.partial(upsample_module_forward,
                                    kernel_size=kernel_size, pad_size=pad_size,
                                    rows_per_step=128))
    out = jax.block_until_ready(fwd(x, params))
    assert out.shape == (B, num_filters, 2 * H, 2 * W), out.shape

    ref = jax.block_until_ready(_reference_forward(x, params, kernel_size, pad_size))
    err = float(jnp.max(jnp.abs(out - ref)))
    assert err < 2e-3, f"max abs error vs reference: {err}"
    print("KERNEL_OK")
</pallas_src>

<mosaic_0001>
module attributes {stable_mosaic.version = 11 : i64} {
  func.func @_colstats_kernel(%arg0: i32, %arg1: memref<512x4xf32, #tpu.memory_space<vmem>>, %arg2: memref<1x4xf32, #tpu.memory_space<vmem>>, %arg3: memref<1x4xf32, #tpu.memory_space<vmem>>) attributes {dimension_semantics = [#tpu.dimension_semantics<arbitrary>], iteration_bounds = array<i64: 1>, scalar_prefetch = 0 : i64, scratch_operands = 0 : i64, tpu.core_type = #tpu.core_type<tc>, window_params = [{transform_indices = @transform_0, window_bounds = array<i64: 512, 4>}, {pipeline_mode = #tpu.pipeline_mode<synchronous>, transform_indices = @transform_1, window_bounds = array<i64: 1, 4>}, {pipeline_mode = #tpu.pipeline_mode<synchronous>, transform_indices = @transform_2, window_bounds = array<i64: 1, 4>}]} {
    %c0_i32 = arith.constant 0 : i32
    %0 = arith.cmpi eq, %arg0, %c0_i32 : i32
    %1 = arith.extui %0 : i1 to i32
    %c0_i32_0 = arith.constant 0 : i32
    %2 = arith.cmpi ne, %1, %c0_i32_0 : i32
    scf.if %2 {
      %cst_11 = arith.constant 0.000000e+00 : f32
      %15 = vector.broadcast %cst_11 : f32 to vector<1x4xf32>
      %c0_12 = arith.constant 0 : index
      %c0_13 = arith.constant 0 : index
      %16 = vector.load %arg2[%c0_12, %c0_13] : memref<1x4xf32, #tpu.memory_space<vmem>>, vector<1x4xf32>
      tpu.vector_store %arg2[%c0_12, %c0_13], %15 {strides = array<i32>} : memref<1x4xf32, #tpu.memory_space<vmem>>, vector<1x4xf32>,
      %cst_14 = arith.constant 0.000000e+00 : f32
      %17 = vector.broadcast %cst_14 : f32 to vector<1x4xf32>
      %c0_15 = arith.constant 0 : index
      %c0_16 = arith.constant 0 : index
      %18 = vector.load %arg3[%c0_15, %c0_16] : memref<1x4xf32, #tpu.memory_space<vmem>>, vector<1x4xf32>
      tpu.vector_store %arg3[%c0_15, %c0_16], %17 {strides = array<i32>} : memref<1x4xf32, #tpu.memory_space<vmem>>, vector<1x4xf32>,
    } else {
    }
    %c0 = arith.constant 0 : index
    %c0_1 = arith.constant 0 : index
    %3 = vector.load %arg1[%c0, %c0_1] : memref<512x4xf32, #tpu.memory_space<vmem>>, vector<512x4xf32>
    %c0_2 = arith.constant 0 : index
    %c0_3 = arith.constant 0 : index
    %4 = vector.load %arg2[%c0_2, %c0_3] : memref<1x4xf32, #tpu.memory_space<vmem>>, vector<1x4xf32>
    %cst = arith.constant dense<0.000000e+00> : vector<4xf32>
    %5 = vector.multi_reduction <add>, %3, %cst [0] : vector<512x4xf32> to vector<4xf32>
    %6 = vector.shape_cast %5 : vector<4xf32> to vector<1x4xf32>
    %7 = arith.addf %4, %6 : vector<1x4xf32>
    %c0_4 = arith.constant 0 : index
    %c0_5 = arith.constant 0 : index
    %8 = vector.load %arg2[%c0_4, %c0_5] : memref<1x4xf32, #tpu.memory_space<vmem>>, vector<1x4xf32>
    tpu.vector_store %arg2[%c0_4, %c0_5], %7 {strides = array<i32>} : memref<1x4xf32, #tpu.memory_space<vmem>>, vector<1x4xf32>,
    %c0_6 = arith.constant 0 : index
    %c0_7 = arith.constant 0 : index
    %9 = vector.load %arg3[%c0_6, %c0_7] : memref<1x4xf32, #tpu.memory_space<vmem>>, vector<1x4xf32>
    %10 = arith.mulf %3, %3 : vector<512x4xf32>
    %cst_8 = arith.constant dense<0.000000e+00> : vector<4xf32>
    %11 = vector.multi_reduction <add>, %10, %cst_8 [0] : vector<512x4xf32> to vector<4xf32>
    %12 = vector.shape_cast %11 : vector<4xf32> to vector<1x4xf32>
    %13 = arith.addf %9, %12 : vector<1x4xf32>
    %c0_9 = arith.constant 0 : index
    %c0_10 = arith.constant 0 : index
    %14 = vector.load %arg3[%c0_9, %c0_10] : memref<1x4xf32, #tpu.memory_space<vmem>>, vector<1x4xf32>
    tpu.vector_store %arg3[%c0_9, %c0_10], %13 {strides = array<i32>} : memref<1x4xf32, #tpu.memory_space<vmem>>, vector<1x4xf32>,
    return
  }
  func.func @transform_0(%arg0: i32) -> (i32, i32) {
    %c0_i32 = arith.constant 0 : i32
    %c0_i32_0 = arith.constant 0 : i32
    return %arg0, %c0_i32 : i32, i32
  }
  func.func @transform_1(%arg0: i32) -> (i32, i32) {
    %c0_i32 = arith.constant 0 : i32
    %c0_i32_0 = arith.constant 0 : i32
    %c0_i32_1 = arith.constant 0 : i32
    return %c0_i32, %c0_i32_0 : i32, i32
  }
  func.func @transform_2(%arg0: i32) -> (i32, i32) {
    %c0_i32 = arith.constant 0 : i32
    %c0_i32_0 = arith.constant 0 : i32
    %c0_i32_1 = arith.constant 0 : i32
    return %c0_i32, %c0_i32_0 : i32, i32
  }
}

module attributes {stable_mosaic.version = 11 : i64} {
  func.func @kernel(%arg0: i32, %arg1: i32, %arg2: memref<1x8x18x4xf32, #tpu.memory_space<vmem>>, %arg3: memref<1x2x18x4xf32, #tpu.memory_space<vmem>>, %arg4: memref<3x3x4x8xf32, #tpu.memory_space<vmem>>, %arg5: memref<1x8x16x8xf32, #tpu.memory_space<vmem>>, %arg6: memref<1x8xf32, #tpu.memory_space<vmem>>, %arg7: memref<1x8xf32, #tpu.memory_space<vmem>>) attributes {dimension_semantics = [#tpu.dimension_semantics<arbitrary>, #tpu.dimension_semantics<arbitrary>], iteration_bounds = array<i64: 2, 2>, scalar_prefetch = 0 : i64, scratch_operands = 0 : i64, tpu.core_type = #tpu.core_type<tc>, window_params = [{transform_indices = @transform_0, window_bounds = array<i64: 1, 8, 18, 4>}, {transform_indices = @transform_1, window_bounds = array<i64: 1, 2, 18, 4>}, {pipeline_mode = #tpu.pipeline_mode<synchronous>, transform_indices = @transform_2, window_bounds = array<i64: 3, 3, 4, 8>}, {transform_indices = @transform_3, window_bounds = array<i64: 1, 8, 16, 8>}, {pipeline_mode = #tpu.pipeline_mode<synchronous>, transform_indices = @transform_4, window_bounds = array<i64: 1, 8>}, {pipeline_mode = #tpu.pipeline_mode<synchronous>, transform_indices = @transform_5, window_bounds = array<i64: 1, 8>}]} {
    %c0_i32 = arith.constant 0 : i32
    %0 = arith.cmpi eq, %arg0, %c0_i32 : i32
    %c0_i32_0 = arith.constant 0 : i32
    %1 = arith.cmpi eq, %arg1, %c0_i32_0 : i32
    %2 = arith.andi %0, %1 : i1
    %3 = arith.extui %2 : i1 to i32
    %c0_i32_1 = arith.constant 0 : i32
    %4 = arith.cmpi ne, %3, %c0_i32_1 : i32
    scf.if %4 {
      %cst_36 = arith.constant 0.000000e+00 : f32
      %81 = vector.broadcast %cst_36 : f32 to vector<1x8xf32>
      %c0_37 = arith.constant 0 : index
      %c0_38 = arith.constant 0 : index
      %82 = vector.load %arg6[%c0_37, %c0_38] : memref<1x8xf32, #tpu.memory_space<vmem>>, vector<1x8xf32>
      tpu.vector_store %arg6[%c0_37, %c0_38], %81 {strides = array<i32>} : memref<1x8xf32, #tpu.memory_space<vmem>>, vector<1x8xf32>,
      %cst_39 = arith.constant 0.000000e+00 : f32
      %83 = vector.broadcast %cst_39 : f32 to vector<1x8xf32>
      %c0_40 = arith.constant 0 : index
      %c0_41 = arith.constant 0 : index
      %84 = vector.load %arg7[%c0_40, %c0_41] : memref<1x8xf32, #tpu.memory_space<vmem>>, vector<1x8xf32>
      tpu.vector_store %arg7[%c0_40, %c0_41], %83 {strides = array<i32>} : memref<1x8xf32, #tpu.memory_space<vmem>>, vector<1x8xf32>,
    } else {
    }
    %c0 = arith.constant 0 : index
    %c0_2 = arith.constant 0 : index
    %c0_3 = arith.constant 0 : index
    %c0_4 = arith.constant 0 : index
    %5 = vector.load %arg2[%c0, %c0_2, %c0_3, %c0_4] : memref<1x8x18x4xf32, #tpu.memory_space<vmem>>, vector<1x8x18x4xf32>
    %6 = vector.shape_cast %5 : vector<1x8x18x4xf32> to vector<8x18x4xf32>
    %c0_5 = arith.constant 0 : index
    %c0_6 = arith.constant 0 : index
    %c0_7 = arith.constant 0 : index
    %c0_8 = arith.constant 0 : index
    %7 = vector.load %arg3[%c0_5, %c0_6, %c0_7, %c0_8] : memref<1x2x18x4xf32, #tpu.memory_space<vmem>>, vector<1x2x18x4xf32>
    %8 = vector.shape_cast %7 : vector<1x2x18x4xf32> to vector<2x18x4xf32>
    %9 = tpu.concatenate %6, %8 in 0 : vector<8x18x4xf32>, vector<2x18x4xf32> -> vector<10x18x4xf32>
    %c0_9 = arith.constant 0 : index
    %c0_10 = arith.constant 0 : index
    %c0_11 = arith.constant 0 : index
    %c0_12 = arith.constant 0 : index
    %10 = vector.load %arg4[%c0_9, %c0_10, %c0_11, %c0_12] : memref<3x3x4x8xf32, #tpu.memory_space<vmem>>, vector<3x3x4x8xf32>
    %cst = arith.constant 0.000000e+00 : f32
    %11 = vector.broadcast %cst : f32 to vector<128x8xf32>
    %12 = vector.extract_strided_slice %9 {offsets = [0, 0, 0], sizes = [8, 16, 4], strides = [1, 1, 1]} : vector<10x18x4xf32> to vector<8x16x4xf32>
    %13 = vector.shape_cast %12 : vector<8x16x4xf32> to vector<128x4xf32>
    %14 = vector.extract_strided_slice %10 {offsets = [0, 0, 0, 0], sizes = [1, 1, 4, 8], strides = [1, 1, 1, 1]} : vector<3x3x4x8xf32> to vector<1x1x4x8xf32>
    %15 = vector.shape_cast %14 : vector<1x1x4x8xf32> to vector<4x8xf32>
    %cst_13 = arith.constant dense<0.000000e+00> : vector<128x8xf32>
    %16 = tpu.matmul %13, %15, %cst_13 {dimension_numbers = #tpu.dot_dimension_numbers<[1], [0], [0], [1], [0, 0, 1, 1], [], []>} : vector<128x4xf32>, vector<4x8xf32>, vector<128x8xf32> -> vector<128x8xf32>
    %17 = arith.addf %11, %16 : vector<128x8xf32>
    %18 = vector.extract_strided_slice %9 {offsets = [0, 1, 0], sizes = [8, 16, 4], strides = [1, 1, 1]} : vector<10x18x4xf32> to vector<8x16x4xf32>
    %19 = vector.shape_cast %18 : vector<8x16x4xf32> to vector<128x4xf32>
    %20 = vector.extract_strided_slice %10 {offsets = [0, 1, 0, 0], sizes = [1, 1, 4, 8], strides = [1, 1, 1, 1]} : vector<3x3x4x8xf32> to vector<1x1x4x8xf32>
    %21 = vector.shape_cast %20 : vector<1x1x4x8xf32> to vector<4x8xf32>
    %cst_14 = arith.constant dense<0.000000e+00> : vector<128x8xf32>
    %22 = tpu.matmul %19, %21, %cst_14 {dimension_numbers = #tpu.dot_dimension_numbers<[1], [0], [0], [1], [0, 0, 1, 1], [], []>} : vector<128x4xf32>, vector<4x8xf32>, vector<128x8xf32> -> vector<128x8xf32>
    %23 = arith.addf %17, %22 : vector<128x8xf32>
    %24 = vector.extract_strided_slice %9 {offsets = [0, 2, 0], sizes = [8, 16, 4], strides = [1, 1, 1]} : vector<10x18x4xf32> to vector<8x16x4xf32>
    %25 = vector.shape_cast %24 : vector<8x16x4xf32> to vector<128x4xf32>
    %26 = vector.extract_strided_slice %10 {offsets = [0, 2, 0, 0], sizes = [1, 1, 4, 8], strides = [1, 1, 1, 1]} : vector<3x3x4x8xf32> to vector<1x1x4x8xf32>
    %27 = vector.shape_cast %26 : vector<1x1x4x8xf32> to vector<4x8xf32>
    %cst_15 = arith.constant dense<0.000000e+00> : vector<128x8xf32>
    %28 = tpu.matmul %25, %27, %cst_15 {dimension_numbers = #tpu.dot_dimension_numbers<[1], [0], [0], [1], [0, 0, 1, 1], [], []>} : vector<128x4xf32>, vector<4x8xf32>, vector<128x8xf32> -> vector<128x8xf32>
    %29 = arith.addf %23, %28 : vector<128x8xf32>
    %30 = vector.extract_strided_slice %9 {offsets = [1, 0, 0], sizes = [8, 16, 4], strides = [1, 1, 1]} : vector<10x18x4xf32> to vector<8x16x4xf32>
    %31 = vector.shape_cast %30 : vector<8x16x4xf32> to vector<128x4xf32>
    %32 = vector.extract_strided_slice %10 {offsets = [1, 0, 0, 0], sizes = [1, 1, 4, 8], strides = [1, 1, 1, 1]} : vector<3x3x4x8xf32> to vector<1x1x4x8xf32>
    %33 = vector.shape_cast %32 : vector<1x1x4x8xf32> to vector<4x8xf32>
    %cst_16 = arith.constant dense<0.000000e+00> : vector<128x8xf32>
    %34 = tpu.matmul %31, %33, %cst_16 {dimension_numbers = #tpu.dot_dimension_numbers<[1], [0], [0], [1], [0, 0, 1, 1], [], []>} : vector<128x4xf32>, vector<4x8xf32>, vector<128x8xf32> -> vector<128x8xf32>
    %35 = arith.addf %29, %34 : vector<128x8xf32>
    %36 = vector.extract_strided_slice %9 {offsets = [1, 1, 0], sizes = [8, 16, 4], strides = [1, 1, 1]} : vector<10x18x4xf32> to vector<8x16x4xf32>
    %37 = vector.shape_cast %36 : vector<8x16x4xf32> to vector<128x4xf32>
    %38 = vector.extract_strided_slice %10 {offsets = [1, 1, 0, 0], sizes = [1, 1, 4, 8], strides = [1, 1, 1, 1]} : vector<3x3x4x8xf32> to vector<1x1x4x8xf32>
    %39 = vector.shape_cast %38 : vector<1x1x4x8xf32> to vector<4x8xf32>
    %cst_17 = arith.constant dense<0.000000e+00> : vector<128x8xf32>
    %40 = tpu.matmul %37, %39, %cst_17 {dimension_numbers = #tpu.dot_dimension_numbers<[1], [0], [0], [1], [0, 0, 1, 1], [], []>} : vector<128x4xf32>, vector<4x8xf32>, vector<128x8xf32> -> vector<128x8xf32>
    %41 = arith.addf %35, %40 : vector<128x8xf32>
    %42 = vector.extract_strided_slice %9 {offsets = [1, 2, 0], sizes = [8, 16, 4], strides = [1, 1, 1]} : vector<10x18x4xf32> to vector<8x16x4xf32>
    %43 = vector.shape_cast %42 : vector<8x16x4xf32> to vector<128x4xf32>
    %44 = vector.extract_strided_slice %10 {offsets = [1, 2, 0, 0], sizes = [1, 1, 4, 8], strides = [1, 1, 1, 1]} : vector<3x3x4x8xf32> to vector<1x1x4x8xf32>
    %45 = vector.shape_cast %44 : vector<1x1x4x8xf32> to vector<4x8xf32>
    %cst_18 = arith.constant dense<0.000000e+00> : vector<128x8xf32>
    %46 = tpu.matmul %43, %45, %cst_18 {dimension_numbers = #tpu.dot_dimension_numbers<[1], [0], [0], [1], [0, 0, 1, 1], [], []>} : vector<128x4xf32>, vector<4x8xf32>, vector<128x8xf32> -> vector<128x8xf32>
    %47 = arith.addf %41, %46 : vector<128x8xf32>
    %48 = vector.extract_strided_slice %9 {offsets = [2, 0, 0], sizes = [8, 16, 4], strides = [1, 1, 1]} : vector<10x18x4xf32> to vector<8x16x4xf32>
    %49 = vector.shape_cast %48 : vector<8x16x4xf32> to vector<128x4xf32>
    %50 = vector.extract_strided_slice %10 {offsets = [2, 0, 0, 0], sizes = [1, 1, 4, 8], strides = [1, 1, 1, 1]} : vector<3x3x4x8xf32> to vector<1x1x4x8xf32>
    %51 = vector.shape_cast %50 : vector<1x1x4x8xf32> to vector<4x8xf32>
    %cst_19 = arith.constant dense<0.000000e+00> : vector<128x8xf32>
    %52 = tpu.matmul %49, %51, %cst_19 {dimension_numbers = #tpu.dot_dimension_numbers<[1], [0], [0], [1], [0, 0, 1, 1], [], []>} : vector<128x4xf32>, vector<4x8xf32>, vector<128x8xf32> -> vector<128x8xf32>
    %53 = arith.addf %47, %52 : vector<128x8xf32>
    %54 = vector.extract_strided_slice %9 {offsets = [2, 1, 0], sizes = [8, 16, 4], strides = [1, 1, 1]} : vector<10x18x4xf32> to vector<8x16x4xf32>
    %55 = vector.shape_cast %54 : vector<8x16x4xf32> to vector<128x4xf32>
    %56 = vector.extract_strided_slice %10 {offsets = [2, 1, 0, 0], sizes = [1, 1, 4, 8], strides = [1, 1, 1, 1]} : vector<3x3x4x8xf32> to vector<1x1x4x8xf32>
    %57 = vector.shape_cast %56 : vector<1x1x4x8xf32> to vector<4x8xf32>
    %cst_20 = arith.constant dense<0.000000e+00> : vector<128x8xf32>
    %58 = tpu.matmul %55, %57, %cst_20 {dimension_numbers = #tpu.dot_dimension_numbers<[1], [0], [0], [1], [0, 0, 1, 1], [], []>} : vector<128x4xf32>, vector<4x8xf32>, vector<128x8xf32> -> vector<128x8xf32>
    %59 = arith.addf %53, %58 : vector<128x8xf32>
    %60 = vector.extract_strided_slice %9 {offsets = [2, 2, 0], sizes = [8, 16, 4], strides = [1, 1, 1]} : vector<10x18x4xf32> to vector<8x16x4xf32>
    %61 = vector.shape_cast %60 : vector<8x16x4xf32> to vector<128x4xf32>
    %62 = vector.extract_strided_slice %10 {offsets = [2, 2, 0, 0], sizes = [1, 1, 4, 8], strides = [1, 1, 1, 1]} : vector<3x3x4x8xf32> to vector<1x1x4x8xf32>
    %63 = vector.shape_cast %62 : vector<1x1x4x8xf32> to vector<4x8xf32>
    %cst_21 = arith.constant dense<0.000000e+00> : vector<128x8xf32>
    %64 = tpu.matmul %61, %63, %cst_21 {dimension_numbers = #tpu.dot_dimension_numbers<[1], [0], [0], [1], [0, 0, 1, 1], [], []>} : vector<128x4xf32>, vector<4x8xf32>, vector<128x8xf32> -> vector<128x8xf32>
    %65 = arith.addf %59, %64 : vector<128x8xf32>
    %c0_22 = arith.constant 0 : index
    %c0_23 = arith.constant 0 : index
    %66 = vector.load %arg6[%c0_22, %c0_23] : memref<1x8xf32, #tpu.memory_space<vmem>>, vector<1x8xf32>
    %cst_24 = arith.constant dense<0.000000e+00> : vector<8xf32>
    %67 = vector.multi_reduction <add>, %65, %cst_24 [0] : vector<128x8xf32> to vector<8xf32>
    %68 = vector.shape_cast %67 : vector<8xf32> to vector<1x8xf32>
    %69 = arith.addf %66, %68 : vector<1x8xf32>
    %c0_25 = arith.constant 0 : index
    %c0_26 = arith.constant 0 : index
    %70 = vector.load %arg6[%c0_25, %c0_26] : memref<1x8xf32, #tpu.memory_space<vmem>>, vector<1x8xf32>
    tpu.vector_store %arg6[%c0_25, %c0_26], %69 {strides = array<i32>} : memref<1x8xf32, #tpu.memory_space<vmem>>, vector<1x8xf32>,
    %c0_27 = arith.constant 0 : index
    %c0_28 = arith.constant 0 : index
    %71 = vector.load %arg7[%c0_27, %c0_28] : memref<1x8xf32, #tpu.memory_space<vmem>>, vector<1x8xf32>
    %72 = arith.mulf %65, %65 : vector<128x8xf32>
    %cst_29 = arith.constant dense<0.000000e+00> : vector<8xf32>
    %73 = vector.multi_reduction <add>, %72, %cst_29 [0] : vector<128x8xf32> to vector<8xf32>
    %74 = vector.shape_cast %73 : vector<8xf32> to vector<1x8xf32>
    %75 = arith.addf %71, %74 : vector<1x8xf32>
    %c0_30 = arith.constant 0 : index
    %c0_31 = arith.constant 0 : index
    %76 = vector.load %arg7[%c0_30, %c0_31] : memref<1x8xf32, #tpu.memory_space<vmem>>, vector<1x8xf32>
    tpu.vector_store %arg7[%c0_30, %c0_31], %75 {strides = array<i32>} : memref<1x8xf32, #tpu.memory_space<vmem>>, vector<1x8xf32>,
    %77 = vector.shape_cast %65 : vector<128x8xf32> to vector<8x16x8xf32>
    %c0_32 = arith.constant 0 : index
    %c0_33 = arith.constant 0 : index
    %c0_34 = arith.constant 0 : index
    %c0_35 = arith.constant 0 : index
    %78 = vector.load %arg5[%c0_32, %c0_33, %c0_34, %c0_35] : memref<1x8x16x8xf32, #tpu.memory_space<vmem>>, vector<1x8x16x8xf32>
    %79 = vector.shape_cast %78 : vector<1x8x16x8xf32> to vector<8x16x8xf32>
    %80 = vector.shape_cast %77 : vector<8x16x8xf32> to vector<1x8x16x8xf32>
    tpu.vector_store %arg5[%c0_32, %c0_33, %c0_34, %c0_35], %80 {strides = array<i32>} : memref<1x8x16x8xf32, #tpu.memory_space<vmem>>, vector<1x8x16x8xf32>,
    return
  }
  func.func @transform_0(%arg0: i32, %arg1: i32) -> (i32, i32, i32, i32) {
    %c0_i32 = arith.constant 0 : i32
    %c0_i32_0 = arith.constant 0 : i32
    %c0_i32_1 = arith.constant 0 : i32
    return %arg0, %arg1, %c0_i32, %c0_i32_0 : i32, i32, i32, i32
  }
  func.func @transform_1(%arg0: i32, %arg1: i32) -> (i32, i32, i32, i32) {
    %c1_i32 = arith.constant 1 : i32
    %0 = arith.addi %arg1, %c1_i32 : i32
    %c4_i32 = arith.constant 4 : i32
    %1 = arith.muli %0, %c4_i32 : i32
    %c0_i32 = arith.constant 0 : i32
    %c0_i32_0 = arith.constant 0 : i32
    %c0_i32_1 = arith.constant 0 : i32
    return %arg0, %1, %c0_i32, %c0_i32_0 : i32, i32, i32, i32
  }
  func.func @transform_2(%arg0: i32, %arg1: i32) -> (i32, i32, i32, i32) {
    %c0_i32 = arith.constant 0 : i32
    %c0_i32_0 = arith.constant 0 : i32
    %c0_i32_1 = arith.constant 0 : i32
    %c0_i32_2 = arith.constant 0 : i32
    %c0_i32_3 = arith.constant 0 : i32
    return %c0_i32, %c0_i32_0, %c0_i32_1, %c0_i32_2 : i32, i32, i32, i32
  }
  func.func @transform_3(%arg0: i32, %arg1: i32) -> (i32, i32, i32, i32) {
    %c0_i32 = arith.constant 0 : i32
    %c0_i32_0 = arith.constant 0 : i32
    %c0_i32_1 = arith.constant 0 : i32
    return %arg0, %arg1, %c0_i32, %c0_i32_0 : i32, i32, i32, i32
  }
  func.func @transform_4(%arg0: i32, %arg1: i32) -> (i32, i32) {
    %c0_i32 = arith.constant 0 : i32
    %c0_i32_0 = arith.constant 0 : i32
    %c0_i32_1 = arith.constant 0 : i32
    return %c0_i32, %c0_i32_0 : i32, i32
  }
  func.func @transform_5(%arg0: i32, %arg1: i32) -> (i32, i32) {
    %c0_i32 = arith.constant 0 : i32
    %c0_i32_0 = arith.constant 0 : i32
    %c0_i32_1 = arith.constant 0 : i32
    return %c0_i32, %c0_i32_0 : i32, i32
  }
}

module attributes {stable_mosaic.version = 11 : i64} {
  func.func @kernel(%arg0: i32, %arg1: i32, %arg2: memref<1x8x16x8xf32, #tpu.memory_space<vmem>>, %arg3: memref<1x8xf32, #tpu.memory_space<vmem>>, %arg4: memref<1x8xf32, #tpu.memory_space<vmem>>, %arg5: memref<8x8xf32, #tpu.memory_space<vmem>>, %arg6: memref<1x8xf32, #tpu.memory_space<vmem>>, %arg7: memref<1x8xf32, #tpu.memory_space<vmem>>) attributes {dimension_semantics = [#tpu.dimension_semantics<arbitrary>, #tpu.dimension_semantics<arbitrary>], iteration_bounds = array<i64: 2, 2>, scalar_prefetch = 0 : i64, scratch_operands = 0 : i64, tpu.core_type = #tpu.core_type<tc>, window_params = [{transform_indices = @transform_0, window_bounds = array<i64: 1, 8, 16, 8>}, {pipeline_mode = #tpu.pipeline_mode<synchronous>, transform_indices = @transform_1, window_bounds = array<i64: 1, 8>}, {pipeline_mode = #tpu.pipeline_mode<synchronous>, transform_indices = @transform_2, window_bounds = array<i64: 1, 8>}, {pipeline_mode = #tpu.pipeline_mode<synchronous>, transform_indices = @transform_3, window_bounds = array<i64: 8, 8>}, {pipeline_mode = #tpu.pipeline_mode<synchronous>, transform_indices = @transform_4, window_bounds = array<i64: 1, 8>}, {pipeline_mode = #tpu.pipeline_mode<synchronous>, transform_indices = @transform_5, window_bounds = array<i64: 1, 8>}]} {
    %c0_i32 = arith.constant 0 : i32
    %0 = arith.cmpi eq, %arg0, %c0_i32 : i32
    %c0_i32_0 = arith.constant 0 : i32
    %1 = arith.cmpi eq, %arg1, %c0_i32_0 : i32
    %2 = arith.andi %0, %1 : i1
    %3 = arith.extui %2 : i1 to i32
    %c0_i32_1 = arith.constant 0 : i32
    %4 = arith.cmpi ne, %3, %c0_i32_1 : i32
    scf.if %4 {
      %cst_23 = arith.constant 0.000000e+00 : f32
      %32 = vector.broadcast %cst_23 : f32 to vector<1x8xf32>
      %c0_24 = arith.constant 0 : index
      %c0_25 = arith.constant 0 : index
      %33 = vector.load %arg6[%c0_24, %c0_25] : memref<1x8xf32, #tpu.memory_space<vmem>>, vector<1x8xf32>
      tpu.vector_store %arg6[%c0_24, %c0_25], %32 {strides = array<i32>} : memref<1x8xf32, #tpu.memory_space<vmem>>, vector<1x8xf32>,
      %cst_26 = arith.constant 0.000000e+00 : f32
      %34 = vector.broadcast %cst_26 : f32 to vector<1x8xf32>
      %c0_27 = arith.constant 0 : index
      %c0_28 = arith.constant 0 : index
      %35 = vector.load %arg7[%c0_27, %c0_28] : memref<1x8xf32, #tpu.memory_space<vmem>>, vector<1x8xf32>
      tpu.vector_store %arg7[%c0_27, %c0_28], %34 {strides = array<i32>} : memref<1x8xf32, #tpu.memory_space<vmem>>, vector<1x8xf32>,
    } else {
    }
    %c0 = arith.constant 0 : index
    %c0_2 = arith.constant 0 : index
    %c0_3 = arith.constant 0 : index
    %c0_4 = arith.constant 0 : index
    %5 = vector.load %arg2[%c0, %c0_2, %c0_3, %c0_4] : memref<1x8x16x8xf32, #tpu.memory_space<vmem>>, vector<1x8x16x8xf32>
    %6 = vector.shape_cast %5 : vector<1x8x16x8xf32> to vector<8x16x8xf32>
    %7 = vector.shape_cast %6 : vector<8x16x8xf32> to vector<128x8xf32>
    %c0_5 = arith.constant 0 : index
    %c0_6 = arith.constant 0 : index
    %8 = vector.load %arg3[%c0_5, %c0_6] : memref<1x8xf32, #tpu.memory_space<vmem>>, vector<1x8xf32>
    %9 = vector.broadcast %8 : vector<1x8xf32> to vector<128x8xf32>
    %10 = arith.mulf %7, %9 : vector<128x8xf32>
    %c0_7 = arith.constant 0 : index
    %c0_8 = arith.constant 0 : index
    %11 = vector.load %arg4[%c0_7, %c0_8] : memref<1x8xf32, #tpu.memory_space<vmem>>, vector<1x8xf32>
    %12 = vector.broadcast %11 : vector<1x8xf32> to vector<128x8xf32>
    %13 = arith.addf %10, %12 : vector<128x8xf32>
    %cst = arith.constant 0.000000e+00 : f32
    %14 = vector.broadcast %cst : f32 to vector<128x8xf32>
    %15 = arith.cmpf ogt, %13, %14 : vector<128x8xf32>
    %cst_9 = arith.constant 2.000000e-01 : f32
    %16 = vector.broadcast %cst_9 : f32 to vector<128x8xf32>
    %17 = arith.mulf %16, %13 : vector<128x8xf32>
    %18 = arith.select %15, %13, %17 : vector<128x8xi1>, vector<128x8xf32>
    %c0_10 = arith.constant 0 : index
    %c0_11 = arith.constant 0 : index
    %19 = vector.load %arg5[%c0_10, %c0_11] : memref<8x8xf32, #tpu.memory_space<vmem>>, vector<8x8xf32>
    %cst_12 = arith.constant dense<0.000000e+00> : vector<128x8xf32>
    %20 = tpu.matmul %18, %19, %cst_12 {dimension_numbers = #tpu.dot_dimension_numbers<[1], [0], [0], [1], [0, 0, 1, 1], [], []>} : vector<128x8xf32>, vector<8x8xf32>, vector<128x8xf32> -> vector<128x8xf32>
    %c0_13 = arith.constant 0 : index
    %c0_14 = arith.constant 0 : index
    %21 = vector.load %arg6[%c0_13, %c0_14] : memref<1x8xf32, #tpu.memory_space<vmem>>, vector<1x8xf32>
    %cst_15 = arith.constant dense<0.000000e+00> : vector<8xf32>
    %22 = vector.multi_reduction <add>, %20, %cst_15 [0] : vector<128x8xf32> to vector<8xf32>
    %23 = vector.shape_cast %22 : vector<8xf32> to vector<1x8xf32>
    %24 = arith.addf %21, %23 : vector<1x8xf32>
    %c0_16 = arith.constant 0 : index
    %c0_17 = arith.constant 0 : index
    %25 = vector.load %arg6[%c0_16, %c0_17] : memref<1x8xf32, #tpu.memory_space<vmem>>, vector<1x8xf32>
    tpu.vector_store %arg6[%c0_16, %c0_17], %24 {strides = array<i32>} : memref<1x8xf32, #tpu.memory_space<vmem>>, vector<1x8xf32>,
    %c0_18 = arith.constant 0 : index
    %c0_19 = arith.constant 0 : index
    %26 = vector.load %arg7[%c0_18, %c0_19] : memref<1x8xf32, #tpu.memory_space<vmem>>, vector<1x8xf32>
    %27 = arith.mulf %20, %20 : vector<128x8xf32>
    %cst_20 = arith.constant dense<0.000000e+00> : vector<8xf32>
    %28 = vector.multi_reduction <add>, %27, %cst_20 [0] : vector<128x8xf32> to vector<8xf32>
    %29 = vector.shape_cast %28 : vector<8xf32> to vector<1x8xf32>
    %30 = arith.addf %26, %29 : vector<1x8xf32>
    %c0_21 = arith.constant 0 : index
    %c0_22 = arith.constant 0 : index
    %31 = vector.load %arg7[%c0_21, %c0_22] : memref<1x8xf32, #tpu.memory_space<vmem>>, vector<1x8xf32>
    tpu.vector_store %arg7[%c0_21, %c0_22], %30 {strides = array<i32>} : memref<1x8xf32, #tpu.memory_space<vmem>>, vector<1x8xf32>,
    return
  }
  func.func @transform_0(%arg0: i32, %arg1: i32) -> (i32, i32, i32, i32) {
    %c0_i32 = arith.constant 0 : i32
    %c0_i32_0 = arith.constant 0 : i32
    %c0_i32_1 = arith.constant 0 : i32
    return %arg0, %arg1, %c0_i32, %c0_i32_0 : i32, i32, i32, i32
  }
  func.func @transform_1(%arg0: i32, %arg1: i32) -> (i32, i32) {
    %c0_i32 = arith.constant 0 : i32
    %c0_i32_0 = arith.constant 0 : i32
    %c0_i32_1 = arith.constant 0 : i32
    return %c0_i32, %c0_i32_0 : i32, i32
  }
  func.func @transform_2(%arg0: i32, %arg1: i32) -> (i32, i32) {
    %c0_i32 = arith.constant 0 : i32
    %c0_i32_0 = arith.constant 0 : i32
    %c0_i32_1 = arith.constant 0 : i32
    return %c0_i32, %c0_i32_0 : i32, i32
  }
  func.func @transform_3(%arg0: i32, %arg1: i32) -> (i32, i32) {
    %c0_i32 = arith.constant 0 : i32
    %c0_i32_0 = arith.constant 0 : i32
    %c0_i32_1 = arith.constant 0 : i32
    return %c0_i32, %c0_i32_0 : i32, i32
  }
  func.func @transform_4(%arg0: i32, %arg1: i32) -> (i32, i32) {
    %c0_i32 = arith.constant 0 : i32
    %c0_i32_0 = arith.constant 0 : i32
    %c0_i32_1 = arith.constant 0 : i32
    return %c0_i32, %c0_i32_0 : i32, i32
  }
  func.func @transform_5(%arg0: i32, %arg1: i32) -> (i32, i32) {
    %c0_i32 = arith.constant 0 : i32
    %c0_i32_0 = arith.constant 0 : i32
    %c0_i32_1 = arith.constant 0 : i32
    return %c0_i32, %c0_i32_0 : i32, i32
  }
}

module attributes {stable_mosaic.version = 11 : i64} {
  func.func @kernel(%arg0: i32, %arg1: i32, %arg2: memref<1x8x16x8xf32, #tpu.memory_space<vmem>>, %arg3: memref<1x8xf32, #tpu.memory_space<vmem>>, %arg4: memref<1x8xf32, #tpu.memory_space<vmem>>, %arg5: memref<8x8xf32, #tpu.memory_space<vmem>>, %arg6: memref<1x8xf32, #tpu.memory_space<vmem>>, %arg7: memref<1x8xf32, #tpu.memory_space<vmem>>, %arg8: memref<1x8x2x16x16xf32, #tpu.memory_space<vmem>>) attributes {dimension_semantics = [#tpu.dimension_semantics<parallel>, #tpu.dimension_semantics<parallel>], iteration_bounds = array<i64: 2, 2>, scalar_prefetch = 0 : i64, scratch_operands = 0 : i64, tpu.core_type = #tpu.core_type<tc>, window_params = [{transform_indices = @transform_0, window_bounds = array<i64: 1, 8, 16, 8>}, {pipeline_mode = #tpu.pipeline_mode<synchronous>, transform_indices = @transform_1, window_bounds = array<i64: 1, 8>}, {pipeline_mode = #tpu.pipeline_mode<synchronous>, transform_indices = @transform_2, window_bounds = array<i64: 1, 8>}, {pipeline_mode = #tpu.pipeline_mode<synchronous>, transform_indices = @transform_3, window_bounds = array<i64: 8, 8>}, {pipeline_mode = #tpu.pipeline_mode<synchronous>, transform_indices = @transform_4, window_bounds = array<i64: 1, 8>}, {pipeline_mode = #tpu.pipeline_mode<synchronous>, transform_indices = @transform_5, window_bounds = array<i64: 1, 8>}, {transform_indices = @transform_6, window_bounds = array<i64: 1, 8, 2, 16, 16>}]} {
    %c0 = arith.constant 0 : index
    %c0_0 = arith.constant 0 : index
    %c0_1 = arith.constant 0 : index
    %c0_2 = arith.constant 0 : index
    %0 = vector.load %arg2[%c0, %c0_0, %c0_1, %c0_2] : memref<1x8x16x8xf32, #tpu.memory_space<vmem>>, vector<1x8x16x8xf32>
    %1 = vector.shape_cast %0 : vector<1x8x16x8xf32> to vector<8x16x8xf32>
    %2 = vector.shape_cast %1 : vector<8x16x8xf32> to vector<128x8xf32>
    %c0_3 = arith.constant 0 : index
    %c0_4 = arith.constant 0 : index
    %3 = vector.load %arg3[%c0_3, %c0_4] : memref<1x8xf32, #tpu.memory_space<vmem>>, vector<1x8xf32>
    %4 = vector.broadcast %3 : vector<1x8xf32> to vector<128x8xf32>
    %5 = arith.mulf %2, %4 : vector<128x8xf32>
    %c0_5 = arith.constant 0 : index
    %c0_6 = arith.constant 0 : index
    %6 = vector.load %arg4[%c0_5, %c0_6] : memref<1x8xf32, #tpu.memory_space<vmem>>, vector<1x8xf32>
    %7 = vector.broadcast %6 : vector<1x8xf32> to vector<128x8xf32>
    %8 = arith.addf %5, %7 : vector<128x8xf32>
    %cst = arith.constant 0.000000e+00 : f32
    %9 = vector.broadcast %cst : f32 to vector<128x8xf32>
    %10 = arith.cmpf ogt, %8, %9 : vector<128x8xf32>
    %cst_7 = arith.constant 2.000000e-01 : f32
    %11 = vector.broadcast %cst_7 : f32 to vector<128x8xf32>
    %12 = arith.mulf %11, %8 : vector<128x8xf32>
    %13 = arith.select %10, %8, %12 : vector<128x8xi1>, vector<128x8xf32>
    %c0_8 = arith.constant 0 : index
    %c0_9 = arith.constant 0 : index
    %14 = vector.load %arg5[%c0_8, %c0_9] : memref<8x8xf32, #tpu.memory_space<vmem>>, vector<8x8xf32>
    %cst_10 = arith.constant dense<0.000000e+00> : vector<128x8xf32>
    %15 = tpu.matmul %13, %14, %cst_10 {dimension_numbers = #tpu.dot_dimension_numbers<[1], [0], [0], [1], [0, 0, 1, 1], [], []>} : vector<128x8xf32>, vector<8x8xf32>, vector<128x8xf32> -> vector<128x8xf32>
    %c0_11 = arith.constant 0 : index
    %c0_12 = arith.constant 0 : index
    %16 = vector.load %arg6[%c0_11, %c0_12] : memref<1x8xf32, #tpu.memory_space<vmem>>, vector<1x8xf32>
    %17 = vector.broadcast %16 : vector<1x8xf32> to vector<128x8xf32>
    %18 = arith.mulf %15, %17 : vector<128x8xf32>
    %c0_13 = arith.constant 0 : index
    %c0_14 = arith.constant 0 : index
    %19 = vector.load %arg7[%c0_13, %c0_14] : memref<1x8xf32, #tpu.memory_space<vmem>>, vector<1x8xf32>
    %20 = vector.broadcast %19 : vector<1x8xf32> to vector<128x8xf32>
    %21 = arith.addf %18, %20 : vector<128x8xf32>
    %cst_15 = arith.constant 0.000000e+00 : f32
    %22 = vector.broadcast %cst_15 : f32 to vector<128x8xf32>
    %23 = arith.cmpf ogt, %21, %22 : vector<128x8xf32>
    %cst_16 = arith.constant 2.000000e-01 : f32
    %24 = vector.broadcast %cst_16 : f32 to vector<128x8xf32>
    %25 = arith.mulf %24, %21 : vector<128x8xf32>
    %26 = arith.select %23, %21, %25 : vector<128x8xi1>, vector<128x8xf32>
    %27 = vector.shape_cast %26 : vector<128x8xf32> to vector<8x16x8xf32>
    %28 = tpu.concatenate %27, %27 in 2 : vector<8x16x8xf32>, vector<8x16x8xf32> -> vector<8x16x16xf32>
    %29 = vector.shape_cast %28 : vector<8x16x16xf32> to vector<8x1x16x16xf32>
    %30 = vector.shape_cast %29 : vector<8x1x16x16xf32> to vector<8x1x16x16xf32>
    %31 = vector.broadcast %30 : vector<8x1x16x16xf32> to vector<8x2x16x16xf32>
    %c0_17 = arith.constant 0 : index
    %c0_18 = arith.constant 0 : index
    %c0_19 = arith.constant 0 : index
    %c0_20 = arith.constant 0 : index
    %c0_21 = arith.constant 0 : index
    %32 = vector.load %arg8[%c0_17, %c0_18, %c0_19, %c0_20, %c0_21] : memref<1x8x2x16x16xf32, #tpu.memory_space<vmem>>, vector<1x8x2x16x16xf32>
    %33 = vector.shape_cast %32 : vector<1x8x2x16x16xf32> to vector<8x2x16x16xf32>
    %34 = vector.shape_cast %31 : vector<8x2x16x16xf32> to vector<1x8x2x16x16xf32>
    tpu.vector_store %arg8[%c0_17, %c0_18, %c0_19, %c0_20, %c0_21], %34 {strides = array<i32>} : memref<1x8x2x16x16xf32, #tpu.memory_space<vmem>>, vector<1x8x2x16x16xf32>,
    return
  }
  func.func @transform_0(%arg0: i32, %arg1: i32) -> (i32, i32, i32, i32) {
    %c0_i32 = arith.constant 0 : i32
    %c0_i32_0 = arith.constant 0 : i32
    %c0_i32_1 = arith.constant 0 : i32
    return %arg0, %arg1, %c0_i32, %c0_i32_0 : i32, i32, i32, i32
  }
  func.func @transform_1(%arg0: i32, %arg1: i32) -> (i32, i32) {
    %c0_i32 = arith.constant 0 : i32
    %c0_i32_0 = arith.constant 0 : i32
    %c0_i32_1 = arith.constant 0 : i32
    return %c0_i32, %c0_i32_0 : i32, i32
  }
  func.func @transform_2(%arg0: i32, %arg1: i32) -> (i32, i32) {
    %c0_i32 = arith.constant 0 : i32
    %c0_i32_0 = arith.constant 0 : i32
    %c0_i32_1 = arith.constant 0 : i32
    return %c0_i32, %c0_i32_0 : i32, i32
  }
  func.func @transform_3(%arg0: i32, %arg1: i32) -> (i32, i32) {
    %c0_i32 = arith.constant 0 : i32
    %c0_i32_0 = arith.constant 0 : i32
    %c0_i32_1 = arith.constant 0 : i32
    return %c0_i32, %c0_i32_0 : i32, i32
  }
  func.func @transform_4(%arg0: i32, %arg1: i32) -> (i32, i32) {
    %c0_i32 = arith.constant 0 : i32
    %c0_i32_0 = arith.constant 0 : i32
    %c0_i32_1 = arith.constant 0 : i32
    return %c0_i32, %c0_i32_0 : i32, i32
  }
  func.func @transform_5(%arg0: i32, %arg1: i32) -> (i32, i32) {
    %c0_i32 = arith.constant 0 : i32
    %c0_i32_0 = arith.constant 0 : i32
    %c0_i32_1 = arith.constant 0 : i32
    return %c0_i32, %c0_i32_0 : i32, i32
  }
  func.func @transform_6(%arg0: i32, %arg1: i32) -> (i32, i32, i32, i32, i32) {
    %c0_i32 = arith.constant 0 : i32
    %c0_i32_0 = arith.constant 0 : i32
    %c0_i32_1 = arith.constant 0 : i32
    %c0_i32_2 = arith.constant 0 : i32
    return %arg0, %arg1, %c0_i32, %c0_i32_0, %c0_i32_1 : i32, i32, i32, i32, i32
  }
}

</mosaic_0001>

<bundles_post_ra>
// kernel: upsample_module_forward.4
= control target key start
LH: loop header
LB: loop body
LE: loop exit
PB: predicated region body
PF: predicated region fallthrough
CT: control target
= control target key end

     0   :  { %vm14_vm0 = vcmask 24576   ;;  %vm82_vm1 = vcmask 31744   ;;  %v428_v0 = vmov 0.0   ;;  %s1318_s0 = inlined_call_operand.vmem [shape: f32[512,4], index: 0, kind: input, shape index: {}]   ;;  %s1319_s1 = inlined_call_operand.vmem [shape: f32[1,4], index: 1, kind: output, shape index: {0}]   ;;  %s1320_s2 = inlined_call_operand.vmem [shape: f32[1,4], index: 2, kind: output, shape index: {1}]  }
   0x1   :  { %15 = vst.msk [vmem:[%s1319_s1] sm:$0x1] %vm14_vm0, %v428_v0  ;;  %16 = vst.msk [vmem:[%s1320_s2] sm:$0x1] %vm14_vm0, %v428_v0  ;;  %v455_v1 = vld [vmem:[%s1318_s0] sm:$0xff]  ;;  %v460_v2 = vld [vmem:[%s1318_s0 + $0x8] sm:$0xff] }
   0x2   :  { %v465_v3 = vld [vmem:[%s1318_s0 + $0x10] sm:$0xff]  ;;  %v83_v4 = vsel %vm82_vm1, %v455_v1, 0.0  ;;  %v84_v5 = vsel %vm82_vm1, %v460_v2, 0.0  ;;  %v476_v7 = vld [vmem:[%s1318_s0 + $0x18] sm:$0xff]  ;;  %v483_v10 = vld [vmem:[%s1318_s0 + $0x20] sm:$0xff] }
   0x3   :  { %v86_v6 = vsel %vm82_vm1, %v465_v3, 0.0  ;;  %v85_v8 = vadd.f32 %v84_v5, %v83_v4  ;;  %v88_v9 = vsel %vm82_vm1, %v476_v7, 0.0  ;;  %v90_v12 = vsel %vm82_vm1, %v483_v10, 0.0  ;;  %v490_v13 = vld [vmem:[%s1318_s0 + $0x28] sm:$0xff]  ;;  %v497_v16 = vld [vmem:[%s1318_s0 + $0x30] sm:$0xff]  ;;  %v502_v18 = vld [vmem:[%s1318_s0 + $0x38] sm:$0xff] }
   0x4   :  { %v92_v15 = vsel %vm82_vm1, %v490_v13, 0.0  ;;  %v507_v19 = vld [vmem:[%s1318_s0 + $0x40] sm:$0xff]  ;;  %v94_v20 = vsel %vm82_vm1, %v497_v16, 0.0  ;;  %v514_v21 = vld [vmem:[%s1318_s0 + $0x48] sm:$0xff]  ;;  %v519_v22 = vld [vmem:[%s1318_s0 + $0x50] sm:$0xff]  ;;  %v96_v25 = vsel %vm82_vm1, %v502_v18, 0.0 }
   0x5   :  { %v87_v11 = vadd.f32 %v86_v6, %v85_v8  ;;  %v524_v23 = vld [vmem:[%s1318_s0 + $0x58] sm:$0xff]  ;;  %v98_v26 = vsel %vm82_vm1, %v507_v19, 0.0  ;;  %v533_v27 = vld [vmem:[%s1318_s0 + $0x108] sm:$0xff]  ;;  %v538_v28 = vld [vmem:[%s1318_s0 + $0x110] sm:$0xff]  ;;  %v100_v30 = vsel %vm82_vm1, %v514_v21, 0.0  ;;  %v102_v31 = vsel %vm82_vm1, %v519_v22, 0.0 }
   0x6   :  { %v543_v29 = vld [vmem:[%s1318_s0 + $0x118] sm:$0xff]  ;;  %v551_v32 = vsel %vm82_vm1, %v524_v23, 0.0  ;;  %v556_v33 = vld [vmem:[%s1318_s0 + $0x120] sm:$0xff]  ;;  %v561_v34 = vld [vmem:[%s1318_s0 + $0x128] sm:$0xff]  ;;  %v570_v37 = vsel %vm82_vm1, %v533_v27, 0.0  ;;  %v574_v38 = vsel %vm82_vm1, %v538_v28, 0.0 }
   0x7   :  { %v89_v14 = vadd.f32 %v88_v9, %v87_v11  ;;  %v566_v35 = vld [vmem:[%s1318_s0 + $0x130] sm:$0xff]  ;;  %1339 = vst [vmem:[#allocation2_spill] sm:$0xff] %v570_v37  ;;  %1340 = vst [vmem:[#allocation3_spill] sm:$0xff] %v574_v38  ;;  %v578_v39 = vsel %vm82_vm1, %v543_v29, 0.0  ;;  %v583_v40 = vld [vmem:[%s1318_s0 + $0x138] sm:$0xff]  ;;  %v597_v43 = vsel %vm82_vm1, %v556_v33, 0.0  ;;  %v222_v37 = vmul.f32 %v465_v3, %v465_v3 }
   0x8   :  { %1341 = vst [vmem:[#allocation4_spill] sm:$0xff] %v578_v39  ;;  %v588_v41 = vld [vmem:[%s1318_s0 + $0x140] sm:$0xff]  ;;  %v593_v42 = vld [vmem:[%s1318_s0 + $0x148] sm:$0xff]  ;;  %1342 = vst [vmem:[#allocation5_spill] sm:$0xff] %v597_v43  ;;  %v601_v44 = vsel %vm82_vm1, %v561_v34, 0.0  ;;  %v605_v45 = vsel %vm82_vm1, %v566_v35, 0.0 }
   0x9   :  { %v91_v17 = vadd.f32 %v90_v12, %v89_v14  ;;  %1343 = vst [vmem:[#allocation6_spill] sm:$0xff] %v601_v44  ;;  %1344 = vst [vmem:[#allocation7_spill] sm:$0xff] %v605_v45  ;;  %v610_v46 = vld [vmem:[%s1318_s0 + $0x150] sm:$0xff]  ;;  %v615_v47 = vld [vmem:[%s1318_s0 + $0x158] sm:$0xff]  ;;  %v624_v50 = vsel %vm82_vm1, %v583_v40, 0.0  ;;  %v628_v51 = vsel %vm82_vm1, %v588_v41, 0.0 }
   0xa   :  { %v620_v48 = vld [vmem:[%s1318_s0 + $0x160] sm:$0xff]  ;;  %1345 = vst [vmem:[#allocation8_spill] sm:$0xff] %v624_v50  ;;  %1346 = vst [vmem:[#allocation9_spill] sm:$0xff] %v628_v51  ;;  %v632_v52 = vsel %vm82_vm1, %v593_v42, 0.0  ;;  %v637_v53 = vld [vmem:[%s1318_s0 + $0x168] sm:$0xff]  ;;  %v651_v56 = vsel %vm82_vm1, %v610_v46, 0.0 }
   0xb   :  { %v93_v24 = vadd.f32 %v92_v15, %v91_v17  ;;  %1347 = vst [vmem:[#allocation10_spill] sm:$0xff] %v632_v52  ;;  %v642_v54 = vld [vmem:[%s1318_s0 + $0x170] sm:$0xff]  ;;  %v647_v55 = vld [vmem:[%s1318_s0 + $0x178] sm:$0xff]  ;;  %1348 = vst [vmem:[#allocation11_spill] sm:$0xff] %v651_v56  ;;  %v655_v57 = vsel %vm82_vm1, %v615_v47, 0.0  ;;  %v659_v58 = vsel %vm82_vm1, %v620_v48, 0.0 }
   0xc   :  { %1349 = vst [vmem:[#allocation12_spill] sm:$0xff] %v655_v57  ;;  %1350 = vst [vmem:[#allocation13_spill] sm:$0xff] %v659_v58  ;;  %v664_v59 = vld [vmem:[%s1318_s0 + $0x180] sm:$0xff]  ;;  %v669_v60 = vld [vmem:[%s1318_s0 + $0x188] sm:$0xff]  ;;  %v678_v63 = vsel %vm82_vm1, %v637_v53, 0.0  ;;  %v682_v0 = vsel %vm82_vm1, %v642_v54, 0.0 }
   0xd   :  { %v95_v36 = vadd.f32 %v94_v20, %v93_v24  ;;  %v674_v61 = vld [vmem:[%s1318_s0 + $0x190] sm:$0xff]  ;;  %1351 = vst [vmem:[#allocation14_spill] sm:$0xff] %v678_v63  ;;  %1352 = vst [vmem:[#allocation15_spill] sm:$0xff] %v682_v0  ;;  %v686_v4 = vsel %vm82_vm1, %v647_v55, 0.0  ;;  %v691_v5 = vld [vmem:[%s1318_s0 + $0x198] sm:$0xff]  ;;  %v705_v9 = vsel %vm82_vm1, %v664_v59, 0.0 }
   0xe   :  { %1353 = vst [vmem:[#allocation16_spill] sm:$0xff] %v686_v4  ;;  %v696_v6 = vld [vmem:[%s1318_s0 + $0x1a0] sm:$0xff]  ;;  %v701_v8 = vld [vmem:[%s1318_s0 + $0x1a8] sm:$0xff]  ;;  %1354 = vst [vmem:[#allocation17_spill] sm:$0xff] %v705_v9  ;;  %v709_v11 = vsel %vm82_vm1, %v669_v60, 0.0  ;;  %v713_v12 = vsel %vm82_vm1, %v674_v61, 0.0 }
   0xf   :  { %v97_v49 = vadd.f32 %v96_v25, %v95_v36  ;;  %1355 = vst [vmem:[#allocation18_spill] sm:$0xff] %v709_v11  ;;  %1356 = vst [vmem:[#allocation19_spill] sm:$0xff] %v713_v12  ;;  %v718_v14 = vld [vmem:[%s1318_s0 + $0x60] sm:$0xff]  ;;  %v723_v15 = vld [vmem:[%s1318_s0 + $0x1b0] sm:$0xff]  ;;  %v737_v25 = vsel %vm82_vm1, %v691_v5, 0.0  ;;  %v745_v36 = vsel %vm82_vm1, %v701_v8, 0.0 }
  0x10   :  { %v728_v17 = vld [vmem:[%s1318_s0 + $0x1b8] sm:$0xff]  ;;  %v733_v20 = vld [vmem:[%s1318_s0 + $0x1c0] sm:$0xff]  ;;  %1357 = vst [vmem:[#allocation20_spill] sm:$0xff] %v737_v25  ;;  %1359 = vst [vmem:[#allocation22_spill] sm:$0xff] %v745_v36 }
  0x11   :  { %v99_v62 = vadd.f32 %v98_v26, %v97_v49  ;;  %v741_v26 = vsel %vm82_vm1, %v696_v6, 0.0  ;;  %v750_v49 = vld [vmem:[%s1318_s0 + $0x1c8] sm:$0xff]  ;;  %v768_v36 = vsel %vm82_vm1, %v728_v17, 0.0  ;;  %v772_v25 = vsel %vm82_vm1, %v733_v20, 0.0  ;;  %v777_v12 = vld [vmem:[%s1318_s0 + $0x1e0] sm:$0xff]  ;;  %v804_v0 = vld [vmem:[%s1318_s0 + $0x1f8] sm:$0xff] }
  0x12   :  { %1358 = vst [vmem:[#allocation21_spill] sm:$0xff] %v741_v26  ;;  %v764_v26 = vsel %vm82_vm1, %v723_v15, 0.0  ;;  %1361 = vst [vmem:[#allocation24_spill] sm:$0xff] %v768_v36  ;;  %v782_v11 = vld [vmem:[%s1318_s0 + $0x1e8] sm:$0xff]  ;;  %v791_v9 = vsel %vm82_vm1, %v750_v49, 0.0  ;;  %v826_v58 = vsel %vm82_vm1, %v804_v0, 0.0 }
  0x13   :  { %v101_v24 = vadd.f32 %v100_v30, %v99_v62  ;;  %v755_v30 = vld [vmem:[%s1318_s0 + $0x1d0] sm:$0xff]  ;;  %v760_v62 = vld [vmem:[%s1318_s0 + $0x1d8] sm:$0xff]  ;;  %1360 = vst [vmem:[#allocation23_spill] sm:$0xff] %v764_v26  ;;  %1362 = vst [vmem:[#allocation25_spill] sm:$0xff] %v772_v25 }
  0x14   :  { %v787_v26 = vld [vmem:[%s1318_s0 + $0x1f0] sm:$0xff]  ;;  %1364 = vst [vmem:[#allocation27_spill] sm:$0xff] %v791_v9  ;;  %v795_v25 = vsel %vm82_vm1, %v755_v30, 0.0  ;;  %v799_v4 = vsel %vm82_vm1, %v760_v62, 0.0  ;;  %1367 = vst [vmem:[#allocation30_spill] sm:$0xff] %v804_v0  ;;  %v814_v9 = vsel %vm82_vm1, %v782_v11, 0.0 }
  0x15   :  { %1363 = vst [vmem:[#allocation26_spill] sm:$0xff] %v787_v26  ;;  %v103_v36 = vadd.f32 %v102_v31, %v101_v24  ;;  %1365 = vst [vmem:[#allocation28_spill] sm:$0xff] %v795_v25  ;;  %v106_v31 = vsel %vm82_vm1, %v718_v14, 0.0  ;;  %v810_v24 = vsel %vm82_vm1, %v777_v12, 0.0  ;;  %v818_v25 = vsel %vm82_vm1, %v787_v26, 0.0  ;;  %v855_v56 = vld [vmem:[%s1318_s0 + $0x90] sm:$0xff] }
  0x16   :  { %1366 = vst [vmem:[#allocation29_spill] sm:$0xff] %v799_v4  ;;  %1368 = vst [vmem:[#allocation31_spill] sm:$0xff] %v810_v24  ;;  %v30_v4 = vld [vmem:[%s1318_s0 + $0x68] sm:$0xff]  ;;  %v860_v52 = vld [vmem:[%s1318_s0 + $0x98] sm:$0xff] }
  0x17   :  { %1369 = vst [vmem:[#allocation32_spill] sm:$0xff] %v814_v9  ;;  %1370 = vst [vmem:[#allocation33_spill] sm:$0xff] %v818_v25  ;;  %v105_v63 = vadd.f32 %v551_v32, %v103_v36  ;;  %v108_v24 = vsel %vm82_vm1, %v30_v4, 0.0  ;;  %v31_v9 = vld [vmem:[%s1318_s0 + $0x70] sm:$0xff]  ;;  %v835_v25 = vld [vmem:[%s1318_s0 + $0x78] sm:$0xff]  ;;  %v120_v39 = vsel %vm82_vm1, %v860_v52, 0.0 }
  0x18   :  { %1371 = vst [vmem:[#allocation34_spill] sm:$0xff] %v826_v58  ;;  %1372 = vst [vmem:[#allocation35_spill] sm:$0xff] %v835_v25  ;;  %v840_v32 = vld [vmem:[%s1318_s0 + $0x80] sm:$0xff]  ;;  %v845_v36 = vld [vmem:[%s1318_s0 + $0x88] sm:$0xff]  ;;  %v110_v58 = vsel %vm82_vm1, %v31_v9, 0.0 }
  0x19   :  { %v107_v57 = vadd.f32 %v106_v31, %v105_v63  ;;  %1373 = vst [vmem:[#allocation36_spill] sm:$0xff] %v840_v32  ;;  %1374 = vst [vmem:[#allocation37_spill] sm:$0xff] %v845_v36  ;;  %v220_v63 = vmul.f32 %v455_v1, %v455_v1  ;;  %v221_v31 = vmul.f32 %v460_v2, %v460_v2  ;;  %v865_v51 = vld [vmem:[%s1318_s0 + $0xa0] sm:$0xff]  ;;  %v112_v1 = vsel %vm82_vm1, %v835_v25, 0.0  ;;  %v876_v44 = vld [vmem:[%s1318_s0 + $0xa8] sm:$0xff] }
  0x1a   :  { %1375 = vst [vmem:[#allocation38_spill] sm:$0xff] %v855_v56  ;;  %1376 = vst [vmem:[#allocation39_spill] sm:$0xff] %v860_v52  ;;  %v114_v2 = vsel %vm82_vm1, %v840_v32, 0.0  ;;  %v116_v45 = vsel %vm82_vm1, %v845_v36, 0.0  ;;  %v881_v43 = vld [vmem:[%s1318_s0 + $0xb0] sm:$0xff]  ;;  %v122_v38 = vsel %vm82_vm1, %v865_v51, 0.0  ;;  %v223_v25 = vmul.f32 %v476_v7, %v476_v7 }
  0x1b   :  { %1377 = vst [vmem:[#allocation40_spill] sm:$0xff] %v865_v51  ;;  %v109_v50 = vadd.f32 %v108_v24, %v107_v57  ;;  %1378 = vst [vmem:[#allocation41_spill] sm:$0xff] %v876_v44  ;;  %v886_v57 = vld [vmem:[%s1318_s0 + $0xb8] sm:$0xff]  ;;  %v118_v24 = vsel %vm82_vm1, %v855_v56, 0.0  ;;  %v899_v36 = vld [vmem:[%s1318_s0 + $0xc0] sm:$0xff]  ;;  %v124_v51 = vsel %vm82_vm1, %v876_v44, 0.0 }
  0x1c   :  { %1379 = vst [vmem:[#allocation42_spill] sm:$0xff] %v881_v43  ;;  %1380 = vst [vmem:[#allocation43_spill] sm:$0xff] %v886_v57  ;;  %v904_v32 = vld [vmem:[%s1318_s0 + $0xc8] sm:$0xff]  ;;  %v909_v52 = vld [vmem:[%s1318_s0 + $0xd0] sm:$0xff]  ;;  %v915_v3 = vsel %vm82_vm1, %v881_v43, 0.0 }
  0x1d   :  { %1381 = vst [vmem:[#allocation44_spill] sm:$0xff] %v899_v36  ;;  %1382 = vst [vmem:[#allocation45_spill] sm:$0xff] %v904_v32  ;;  %v111_v56 = vadd.f32 %v110_v58, %v109_v50  ;;  %v922_v0 = vld [vmem:[%s1318_s0 + $0xd8] sm:$0xff]  ;;  %v927_v26 = vld [vmem:[%s1318_s0 + $0xe0] sm:$0xff]  ;;  %v931_v50 = vsel %vm82_vm1, %v886_v57, 0.0  ;;  %v935_v58 = vsel %vm82_vm1, %v899_v36, 0.0 }
  0x1e   :  { %1383 = vst [vmem:[#allocation46_spill] sm:$0xff] %v909_v52  ;;  %1384 = vst [vmem:[#allocation47_spill] sm:$0xff] %v922_v0  ;;  %v939_v7 = vsel %vm82_vm1, %v904_v32, 0.0  ;;  %v943_v43 = vsel %vm82_vm1, %v909_v52, 0.0  ;;  %v948_v44 = vld [vmem:[%s1318_s0 + $0xe8] sm:$0xff]  ;;  %v953_v57 = vld [vmem:[%s1318_s0 + $0xf0] sm:$0xff]  ;;  %v224_v52 = vmul.f32 %v483_v10, %v483_v10  ;;  %v228_v10 = vmul.f32 %v507_v19, %v507_v19 }
  0x1f   :  { %1385 = vst [vmem:[#allocation48_spill] sm:$0xff] %v927_v26  ;;  %1386 = vst [vmem:[#allocation49_spill] sm:$0xff] %v935_v58  ;;  %v113_v36 = vadd.f32 %v112_v1, %v111_v56  ;;  %v957_v58 = vsel %vm82_vm1, %v922_v0, 0.0  ;;  %v961_v32 = vsel %vm82_vm1, %v927_v26, 0.0  ;;  %v225_v56 = vmul.f32 %v490_v13, %v490_v13 }
  0x20   :  { %1387 = vst [vmem:[#allocation50_spill] sm:$0xff] %v939_v7  ;;  %1388 = vst [vmem:[#allocation51_spill] sm:$0xff] %v943_v43  ;;  %v967_v43 = vsel %vm82_vm1, %v948_v44, 0.0  ;;  %v971_v7 = vsel %vm82_vm1, %v953_v57, 0.0  ;;  %v226_v1 = vmul.f32 %v497_v16, %v497_v16  ;;  %v227_v26 = vmul.f32 %v502_v18, %v502_v18 }
  0x21   :  { %1389 = vst [vmem:[#allocation52_spill] sm:$0xff] %v948_v44  ;;  %1390 = vst [vmem:[#allocation53_spill] sm:$0xff] %v953_v57  ;;  %v115_v0 = vadd.f32 %v114_v2, %v113_v36  ;;  %v229_v44 = vmul.f32 %v514_v21, %v514_v21  ;;  %v230_v57 = vmul.f32 %v519_v22, %v519_v22 }
  0x22   :  { %1391 = vst [vmem:[#allocation54_spill] sm:$0xff] %v971_v7  ;;  %v231_v7 = vmul.f32 %v524_v23, %v524_v23  ;;  %v232_v13 = vmul.f32 %v718_v14, %v718_v14  ;;  %v989_v16 = vmul.f32 %v30_v4, %v30_v4  ;;  %v991_v2 = vmul.f32 %v31_v9, %v31_v9 }
  0x23   :  { %v117_v36 = vadd.f32 %v116_v45, %v115_v0  ;;  %v253_v18 = vmul.f32 %v533_v27, %v533_v27  ;;  %v254_v19 = vmul.f32 %v538_v28, %v538_v28  ;;  %v255_v21 = vmul.f32 %v543_v29, %v543_v29 }
  0x24   :  { %v256_v22 = vmul.f32 %v556_v33, %v556_v33  ;;  %v257_v23 = vmul.f32 %v561_v34, %v561_v34  ;;  %v258_v45 = vmul.f32 %v566_v35, %v566_v35  ;;  %v259_v4 = vmul.f32 %v583_v40, %v583_v40 }
  0x25   :  { %v119_v0 = vadd.f32 %v118_v24, %v117_v36  ;;  %v260_v27 = vmul.f32 %v588_v41, %v588_v41  ;;  %v261_v28 = vmul.f32 %v593_v42, %v593_v42  ;;  %v262_v29 = vmul.f32 %v610_v46, %v610_v46 }
  0x26   :  { %v263_v33 = vmul.f32 %v615_v47, %v615_v47  ;;  %v284_v34 = vsel %vm82_vm1, %v220_v63, 0.0  ;;  %v285_v35 = vsel %vm82_vm1, %v221_v31, 0.0  ;;  %v264_v40 = vmul.f32 %v620_v48, %v620_v48 }
  0x27   :  { %v121_v9 = vadd.f32 %v120_v39, %v119_v0  ;;  %v286_v14 = vadd.f32 %v285_v35, %v284_v34  ;;  %v287_v41 = vsel %vm82_vm1, %v222_v37, 0.0  ;;  %v265_v42 = vmul.f32 %v637_v53, %v637_v53  ;;  %v1392_v0 = vld [vmem:[#allocation26_spill] sm:$0xff] }
  0x28   :  { %v266_v46 = vmul.f32 %v642_v54, %v642_v54  ;;  %v267_v47 = vmul.f32 %v647_v55, %v647_v55  ;;  %v289_v63 = vsel %vm82_vm1, %v223_v25, 0.0  ;;  %v268_v39 = vmul.f32 %v664_v59, %v664_v59  ;;  %v1393_v34 = vld [vmem:[#allocation30_spill] sm:$0xff] }
  0x29   :  { %v123_v24 = vadd.f32 %v122_v38, %v121_v9  ;;  %v269_v48 = vmul.f32 %v669_v60, %v669_v60  ;;  %v288_v31 = vadd.f32 %v287_v41, %v286_v14  ;;  %v270_v37 = vmul.f32 %v674_v61, %v674_v61  ;;  %v1394_v41 = vld [vmem:[#allocation49_spill] sm:$0xff] }
  0x2a   :  { %v271_v53 = vmul.f32 %v691_v5, %v691_v5  ;;  %v272_v54 = vmul.f32 %v696_v6, %v696_v6  ;;  %v291_v55 = vsel %vm82_vm1, %v224_v52, 0.0  ;;  %v273_v38 = vmul.f32 %v701_v8, %v701_v8 }
  0x2b   :  { %v125_v25 = vadd.f32 %v124_v51, %v123_v24  ;;  %v274_v59 = vmul.f32 %v723_v15, %v723_v15  ;;  %v290_v60 = vadd.f32 %v289_v63, %v288_v31  ;;  %v275_v36 = vmul.f32 %v728_v17, %v728_v17 }
  0x2c   :  { %v276_v61 = vmul.f32 %v733_v20, %v733_v20  ;;  %v277_v5 = vmul.f32 %v750_v49, %v750_v49  ;;  %v293_v6 = vsel %vm82_vm1, %v225_v56, 0.0  ;;  %v278_v52 = vmul.f32 %v755_v30, %v755_v30 }
  0x2d   :  { %v127_v51 = vadd.f32 %v915_v3, %v125_v25  ;;  %v279_v8 = vmul.f32 %v760_v62, %v760_v62  ;;  %v292_v15 = vadd.f32 %v291_v55, %v290_v60  ;;  %v280_v17 = vmul.f32 %v777_v12, %v777_v12  ;;  %v1396_v25 = vld [vmem:[#allocation51_spill] sm:$0xff] }
  0x2e   :  { %v281_v20 = vmul.f32 %v782_v11, %v782_v11  ;;  %v282_v49 = vmul.f32 %v1392_v0, %v1392_v0  ;;  %v295_v56 = vsel %vm82_vm1, %v226_v1, 0.0  ;;  %v283_v30 = vmul.f32 %v1393_v34, %v1393_v34  ;;  %v1398_v34 = vld [vmem:[#allocation54_spill] sm:$0xff] }
  0x2f   :  { %v129_v3 = vadd.f32 %v931_v50, %v127_v51  ;;  %v294_v35 = vadd.f32 %v293_v6, %v292_v15  ;;  %v297_v62 = vsel %vm82_vm1, %v227_v26, 0.0  ;;  %v299_v9 = vsel %vm82_vm1, %v228_v10, 0.0 }
  0x30   :  { %v301_v12 = vsel %vm82_vm1, %v229_v44, 0.0  ;;  %v303_v14 = vsel %vm82_vm1, %v230_v57, 0.0  ;;  %v305_v11 = vsel %vm82_vm1, %v231_v7, 0.0  ;;  %v307_v1 = vsel %vm82_vm1, %v232_v13, 0.0  ;;  %v1395_v7 = vld [vmem:[#allocation50_spill] sm:$0xff] }
  0x31   :  { %v131_v63 = vadd.f32 %v1394_v41, %v129_v3  ;;  %v296_v24 = vadd.f32 %v295_v56, %v294_v35  ;;  %v1072_v50 = vsel %vm82_vm1, %v253_v18, 0.0  ;;  %v1075_v31 = vsel %vm82_vm1, %v254_v19, 0.0  ;;  %v1397_v56 = vld [vmem:[#allocation35_spill] sm:$0xff] }
  0x32   :  { %v1078_v26 = vsel %vm82_vm1, %v255_v21, 0.0  ;;  %v1081_v44 = vsel %vm82_vm1, %v256_v22, 0.0  ;;  %v1084_v57 = vsel %vm82_vm1, %v257_v23, 0.0  ;;  %v1088_v13 = vsel %vm82_vm1, %v258_v45, 0.0 }
  0x33   :  { %v133_v10 = vadd.f32 %v1395_v7, %v131_v63  ;;  %v298_v55 = vadd.f32 %v297_v62, %v296_v24  ;;  %v1091_v18 = vsel %vm82_vm1, %v259_v4, 0.0  ;;  %v1094_v19 = vsel %vm82_vm1, %v260_v27, 0.0  ;;  %v1399_v62 = vld [vmem:[#allocation36_spill] sm:$0xff] }
  0x34   :  { %v1097_v21 = vsel %vm82_vm1, %v261_v28, 0.0  ;;  %v1100_v22 = vsel %vm82_vm1, %v262_v29, 0.0  ;;  %v1103_v23 = vsel %vm82_vm1, %v263_v33, 0.0  ;;  %v1107_v45 = vsel %vm82_vm1, %v264_v40, 0.0 }
  0x35   :  { %v135_v60 = vadd.f32 %v1396_v25, %v133_v10  ;;  %v300_v6 = vadd.f32 %v299_v9, %v298_v55  ;;  %v1110_v4 = vsel %vm82_vm1, %v265_v42, 0.0  ;;  %v1113_v27 = vsel %vm82_vm1, %v266_v46, 0.0  ;;  %v1401_v10 = vld [vmem:[#allocation38_spill] sm:$0xff] }
  0x36   :  { %v1116_v28 = vsel %vm82_vm1, %v267_v47, 0.0  ;;  %v1119_v29 = vsel %vm82_vm1, %v268_v39, 0.0  ;;  %v1122_v33 = vsel %vm82_vm1, %v269_v48, 0.0  ;;  %v1126_v40 = vsel %vm82_vm1, %v270_v37, 0.0  ;;  %v1402_v25 = vld [vmem:[#allocation2_spill] sm:$0xff] }
  0x37   :  { %v137_v51 = vadd.f32 %v957_v58, %v135_v60  ;;  %v302_v15 = vadd.f32 %v301_v12, %v300_v6  ;;  %v1129_v42 = vsel %vm82_vm1, %v271_v53, 0.0  ;;  %v1132_v46 = vsel %vm82_vm1, %v272_v54, 0.0 }
  0x38   :  { %v1135_v47 = vsel %vm82_vm1, %v273_v38, 0.0  ;;  %v1138_v39 = vsel %vm82_vm1, %v274_v59, 0.0  ;;  %v1141_v48 = vsel %vm82_vm1, %v275_v36, 0.0  ;;  %v1145_v37 = vsel %vm82_vm1, %v276_v61, 0.0 }
  0x39   :  { %v139_v58 = vadd.f32 %v961_v32, %v137_v51  ;;  %v304_v0 = vadd.f32 %v303_v14, %v302_v15  ;;  %v1148_v53 = vsel %vm82_vm1, %v277_v5, 0.0  ;;  %v1151_v54 = vsel %vm82_vm1, %v278_v52, 0.0  ;;  %v1165_v32 = vld [vmem:[%s1318_s0 + $0xf8] sm:$0xff]  ;;  %v1403_v51 = vld [vmem:[#allocation39_spill] sm:$0xff] }
  0x3a   :  { %v1154_v38 = vsel %vm82_vm1, %v279_v8, 0.0  ;;  %v1157_v59 = vsel %vm82_vm1, %v280_v17, 0.0  ;;  %v1160_v36 = vsel %vm82_vm1, %v281_v20, 0.0  ;;  %v1169_v52 = vsel %vm82_vm1, %v282_v49, 0.0 }
  0x3b   :  { %v141_v61 = vadd.f32 %v967_v43, %v139_v58  ;;  %v306_v5 = vadd.f32 %v305_v11, %v304_v0  ;;  %v1172_v8 = vsel %vm82_vm1, %v283_v30, 0.0  ;;  %v144_v17 = vsel %vm82_vm1, %v1165_v32, 0.0  ;;  %v1183_v43 = vld [vmem:[%s1318_s0 + $0x100] sm:$0xff]  ;;  %v1404_v58 = vld [vmem:[#allocation3_spill] sm:$0xff] }
  0x3c   :  { %v235_v20 = vmul.f32 %v1397_v56, %v1397_v56  ;;  %v309_v3 = vsel %vm82_vm1, %v989_v16, 0.0  ;;  %v146_v30 = vsel %vm82_vm1, %v1183_v43, 0.0  ;;  %v236_v9 = vmul.f32 %v1399_v62, %v1399_v62  ;;  %v1400_v16 = vld [vmem:[#allocation37_spill] sm:$0xff] }
  0x3d   :  { %v143_v49 = vadd.f32 %v1398_v34, %v141_v61  ;;  %v308_v35 = vadd.f32 %v307_v1, %v306_v5  ;;  %v311_v12 = vsel %vm82_vm1, %v991_v2, 0.0  ;;  %v237_v41 = vmul.f32 %v1400_v16, %v1400_v16  ;;  %v1405_v5 = vld [vmem:[#allocation40_spill] sm:$0xff]  ;;  %v1408_v62 = vld [vmem:[#allocation5_spill] sm:$0xff] }
  0x3e   :  { %v313_v63 = vsel %vm82_vm1, %v235_v20, 0.0  ;;  %v238_v1 = vmul.f32 %v1401_v10, %v1401_v10  ;;  %v315_v55 = vsel %vm82_vm1, %v236_v9, 0.0  ;;  %v239_v2 = vmul.f32 %v1403_v51, %v1403_v51  ;;  %v1406_v20 = vld [vmem:[#allocation4_spill] sm:$0xff] }
  0x3f   :  { %v145_v14 = vadd.f32 %v144_v17, %v143_v49  ;;  %v310_v11 = vadd.f32 %v309_v3, %v308_v35  ;;  %v317_v15 = vsel %vm82_vm1, %v237_v41, 0.0  ;;  %v240_v17 = vmul.f32 %v1405_v5, %v1405_v5  ;;  %v1407_v49 = vld [vmem:[#allocation41_spill] sm:$0xff]  ;;  %v1410_v41 = vld [vmem:[#allocation6_spill] sm:$0xff] }
  0x40   :  { %v319_v56 = vsel %vm82_vm1, %v238_v1, 0.0  ;;  %v241_v35 = vmul.f32 %v1407_v49, %v1407_v49 }
  0x41   :  { %v147_v24 = vadd.f32 %v146_v30, %v145_v14  ;;  %v312_v7 = vadd.f32 %v311_v12, %v310_v11  ;;  %v321_v30 = vsel %vm82_vm1, %v239_v2, 0.0  ;;  %v1409_v14 = vld [vmem:[#allocation42_spill] sm:$0xff]  ;;  %v323_v16 = vsel %vm82_vm1, %v240_v17, 0.0 }
  0x42   :  { %v242_v11 = vmul.f32 %v1409_v14, %v1409_v14  ;;  %v325_v1 = vsel %vm82_vm1, %v241_v35, 0.0 }
  0x43   :  { %v149_v60 = vadd.f32 %v1402_v25, %v147_v24  ;;  %v314_v6 = vadd.f32 %v313_v63, %v312_v7  ;;  %v1411_v7 = vld [vmem:[#allocation43_spill] sm:$0xff] }
  0x44   :  { %v243_v10 = vmul.f32 %v1411_v7, %v1411_v7  ;;  %v327_v2 = vsel %vm82_vm1, %v242_v11, 0.0 }
  0x45   :  { %v151_v0 = vadd.f32 %v1404_v58, %v149_v60  ;;  %v316_v61 = vadd.f32 %v315_v55, %v314_v6  ;;  %v1412_v55 = vld [vmem:[#allocation7_spill] sm:$0xff]  ;;  %v1413_v6 = vld [vmem:[#allocation44_spill] sm:$0xff] }
  0x46   :  { %v244_v51 = vmul.f32 %v1413_v6, %v1413_v6  ;;  %v329_v17 = vsel %vm82_vm1, %v243_v10, 0.0 }
  0x47   :  { %v153_v3 = vadd.f32 %v1406_v20, %v151_v0  ;;  %v318_v34 = vadd.f32 %v317_v15, %v316_v61  ;;  %v1414_v15 = vld [vmem:[#allocation8_spill] sm:$0xff]  ;;  %v1415_v61 = vld [vmem:[#allocation45_spill] sm:$0xff] }
  0x48   :  { %v245_v5 = vmul.f32 %v1415_v61, %v1415_v61  ;;  %v331_v35 = vsel %vm82_vm1, %v244_v51, 0.0 }
  0x49   :  { %v155_v9 = vadd.f32 %v1408_v62, %v153_v3  ;;  %v320_v12 = vadd.f32 %v319_v56, %v318_v34  ;;  %v1416_v56 = vld [vmem:[#allocation9_spill] sm:$0xff]  ;;  %v1417_v34 = vld [vmem:[#allocation46_spill] sm:$0xff] }
  0x4a   :  { %v246_v49 = vmul.f32 %v1417_v34, %v1417_v34  ;;  %v333_v11 = vsel %vm82_vm1, %v245_v5, 0.0 }
  0x4b   :  { %v157_v63 = vadd.f32 %v1410_v41, %v155_v9  ;;  %v322_v24 = vadd.f32 %v321_v30, %v320_v12  ;;  %v1418_v30 = vld [vmem:[#allocation10_spill] sm:$0xff]  ;;  %v1419_v12 = vld [vmem:[#allocation47_spill] sm:$0xff] }
  0x4c   :  { %v247_v14 = vmul.f32 %v1419_v12, %v1419_v12  ;;  %v335_v10 = vsel %vm82_vm1, %v246_v49, 0.0  ;;  %v1427_v49 = vld [vmem:[#allocation15_spill] sm:$0xff]  ;;  %v1428_v12 = vld [vmem:[#allocation16_spill] sm:$0xff] }
  0x4d   :  { %v159_v25 = vadd.f32 %v1412_v55, %v157_v63  ;;  %v324_v60 = vadd.f32 %v323_v16, %v322_v24  ;;  %v1420_v16 = vld [vmem:[#allocation11_spill] sm:$0xff]  ;;  %v1421_v24 = vld [vmem:[#allocation48_spill] sm:$0xff] }
  0x4e   :  { %v248_v7 = vmul.f32 %v1421_v24, %v1421_v24  ;;  %v337_v51 = vsel %vm82_vm1, %v247_v14, 0.0 }
  0x4f   :  { %v161_v58 = vadd.f32 %v1414_v15, %v159_v25  ;;  %v326_v0 = vadd.f32 %v325_v1, %v324_v60  ;;  %v1422_v1 = vld [vmem:[#allocation12_spill] sm:$0xff] }
  0x50   :  { %v1423_v60 = vld [vmem:[#allocation52_spill] sm:$0xff]  ;;  %v339_v5 = vsel %vm82_vm1, %v248_v7, 0.0  ;;  %v1430_v7 = vld [vmem:[#allocation18_spill] sm:$0xff] }
  0x51   :  { %v163_v20 = vadd.f32 %v1416_v56, %v161_v58  ;;  %v328_v3 = vadd.f32 %v327_v2, %v326_v0  ;;  %v249_v6 = vmul.f32 %v1423_v60, %v1423_v60  ;;  %v1424_v2 = vld [vmem:[#allocation13_spill] sm:$0xff] }
  0x52   :  { %v1425_v0 = vld [vmem:[#allocation53_spill] sm:$0xff] }
  0x53   :  { %v165_v62 = vadd.f32 %v1418_v30, %v163_v20  ;;  %v330_v9 = vadd.f32 %v329_v17, %v328_v3  ;;  %v250_v61 = vmul.f32 %v1425_v0, %v1425_v0  ;;  %v1426_v17 = vld [vmem:[#allocation14_spill] sm:$0xff]  ;;  %v251_v3 = vmul.f32 %v1165_v32, %v1165_v32 }
  0x54   :  { %v341_v34 = vsel %vm82_vm1, %v249_v6, 0.0  ;;  %v1432_v6 = vld [vmem:[#allocation20_spill] sm:$0xff]  ;;  %v1434_v0 = vld [vmem:[#allocation22_spill] sm:$0xff] }
  0x55   :  { %v167_v41 = vadd.f32 %v1420_v16, %v165_v62  ;;  %v332_v63 = vadd.f32 %v331_v35, %v330_v9  ;;  %v252_v62 = vmul.f32 %v1183_v43, %v1183_v43  ;;  %v343_v9 = vsel %vm82_vm1, %v250_v61, 0.0 }
  0x56   :  { %v345_v16 = vsel %vm82_vm1, %v251_v3, 0.0  ;;  %v1436_v3 = vld [vmem:[#allocation24_spill] sm:$0xff] }
  0x57   :  { %v169_v55 = vadd.f32 %v1422_v1, %v167_v41  ;;  %v334_v25 = vadd.f32 %v333_v11, %v332_v63  ;;  %v1429_v41 = vld [vmem:[#allocation17_spill] sm:$0xff]  ;;  %v347_v32 = vsel %vm82_vm1, %v252_v62, 0.0  ;;  %v1438_v62 = vld [vmem:[#allocation27_spill] sm:$0xff] }
  0x59   :  { %v171_v15 = vadd.f32 %v1424_v2, %v169_v55  ;;  %v336_v58 = vadd.f32 %v335_v10, %v334_v25  ;;  %v1431_v55 = vld [vmem:[#allocation19_spill] sm:$0xff]  ;;  %v1433_v2 = vld [vmem:[#allocation21_spill] sm:$0xff] }
  0x5b   :  { %v173_v56 = vadd.f32 %v1426_v17, %v171_v15  ;;  %v338_v20 = vadd.f32 %v337_v51, %v336_v58  ;;  %v1435_v17 = vld [vmem:[#allocation23_spill] sm:$0xff] }
  0x5d   :  { %v175_v35 = vadd.f32 %v1427_v49, %v173_v56  ;;  %v340_v30 = vadd.f32 %v339_v5, %v338_v20 }
  0x5f   :  { %v177_v14 = vadd.f32 %v1428_v12, %v175_v35  ;;  %v342_v11 = vadd.f32 %v341_v34, %v340_v30  ;;  %v1437_v35 = vld [vmem:[#allocation25_spill] sm:$0xff]  ;;  %v1439_v12 = vld [vmem:[#allocation28_spill] sm:$0xff] }
  0x61   :  { %v179_v63 = vadd.f32 %v1429_v41, %v177_v14  ;;  %v344_v24 = vadd.f32 %v343_v9, %v342_v11  ;;  %v1440_v11 = vld [vmem:[#allocation29_spill] sm:$0xff]  ;;  %v1441_v41 = vld [vmem:[#allocation31_spill] sm:$0xff] }
  0x63   :  { %v181_v10 = vadd.f32 %v1430_v7, %v179_v63  ;;  %v346_v1 = vadd.f32 %v345_v16, %v344_v24  ;;  %v1442_v24 = vld [vmem:[#allocation32_spill] sm:$0xff]  ;;  %v1443_v7 = vld [vmem:[#allocation33_spill] sm:$0xff] }
  0x65   :  { %v183_v25 = vadd.f32 %v1431_v55, %v181_v10  ;;  %v348_v60 = vadd.f32 %v347_v32, %v346_v1  ;;  %v1444_v1 = vld [vmem:[#allocation34_spill] sm:$0xff] }
  0x67   :  { %v185_v43 = vadd.f32 %v1432_v6, %v183_v25  ;;  %v350_v51 = vadd.f32 %v1072_v50, %v348_v60 }
  0x69   :  { %v187_v15 = vadd.f32 %v1433_v2, %v185_v43  ;;  %v352_v58 = vadd.f32 %v1075_v31, %v350_v51 }
  0x6b   :  { %v189_v61 = vadd.f32 %v1434_v0, %v187_v15  ;;  %v354_v5 = vadd.f32 %v1078_v26, %v352_v58 }
  0x6d   :  { %v191_v56 = vadd.f32 %v1435_v17, %v189_v61  ;;  %v356_v20 = vadd.f32 %v1081_v44, %v354_v5 }
  0x6f   :  { %v193_v34 = vadd.f32 %v1436_v3, %v191_v56  ;;  %v358_v49 = vadd.f32 %v1084_v57, %v356_v20 }
  0x71   :  { %v195_v30 = vadd.f32 %v1437_v35, %v193_v34  ;;  %v360_v50 = vadd.f32 %v1088_v13, %v358_v49 }
  0x73   :  { %v197_v9 = vadd.f32 %v1438_v62, %v195_v30  ;;  %v362_v31 = vadd.f32 %v1091_v18, %v360_v50 }
  0x75   :  { %v199_v14 = vadd.f32 %v1439_v12, %v197_v9  ;;  %v364_v26 = vadd.f32 %v1094_v19, %v362_v31 }
  0x77   :  { %v201_v16 = vadd.f32 %v1440_v11, %v199_v14  ;;  %v366_v44 = vadd.f32 %v1097_v21, %v364_v26 }
  0x79   :  { %v203_v63 = vadd.f32 %v1441_v41, %v201_v16  ;;  %v368_v57 = vadd.f32 %v1100_v22, %v366_v44 }
  0x7b   :  { %v205_v32 = vadd.f32 %v1442_v24, %v203_v63  ;;  %v370_v13 = vadd.f32 %v1103_v23, %v368_v57 }
  0x7d   :  { %v207_v10 = vadd.f32 %v1443_v7, %v205_v32  ;;  %v372_v18 = vadd.f32 %v1107_v45, %v370_v13  ;;  %v81_v45 = vld [vmem:[%s1319_s1] sm:$0x1] }
  0x7f   :  { %v209_v55 = vadd.f32 %v1444_v1, %v207_v10  ;;  %v374_v19 = vadd.f32 %v1110_v4, %v372_v18 }
  0x81   :  { %v210_v25 = vrot.slane %v209_v55, 4  ;;  %v376_v60 = vadd.f32 %v1113_v27, %v374_v19 }
  0x83   :  { %v211_v21 = vadd.f32 %v210_v25, %v209_v55  ;;  %v378_v6 = vadd.f32 %v1116_v28, %v376_v60 }
  0x85   :  { %v212_v43 = vrot.slane %v211_v21, 2  ;;  %v380_v22 = vadd.f32 %v1119_v29, %v378_v6 }
  0x87   :  { %v213_v51 = vadd.f32 %v212_v43, %v211_v21  ;;  %v382_v23 = vadd.f32 %v1122_v33, %v380_v22 }
  0x89   :  { %v214_v2 = vrot.slane %v213_v51, 1  ;;  %v384_v15 = vadd.f32 %v1126_v40, %v382_v23 }
  0x8b   :  { %v215_v4 = vadd.f32 %v214_v2, %v213_v51  ;;  %v386_v58 = vadd.f32 %v1129_v42, %v384_v15 }
  0x8d   :  { %v216_v27 = vadd.f32 %v215_v4, %v81_v45  ;;  %v388_v0 = vadd.f32 %v1132_v46, %v386_v58 }
  0x8f   :  { %218 = vst.msk [vmem:[%s1319_s1] sm:$0x1] %vm14_vm0, %v216_v27  ;;  %v390_v28 = vadd.f32 %v1135_v47, %v388_v0 }
  0x91   :  { %v392_v29 = vadd.f32 %v1138_v39, %v390_v28 }
  0x93   :  { %v394_v33 = vadd.f32 %v1141_v48, %v392_v29 }
  0x95   :  { %v396_v40 = vadd.f32 %v1145_v37, %v394_v33  ;;  %v219_v37 = vld [vmem:[%s1320_s2] sm:$0x1] }
  0x97   :  { %v398_v61 = vadd.f32 %v1148_v53, %v396_v40 }
  0x99   :  { %v400_v42 = vadd.f32 %v1151_v54, %v398_v61 }
  0x9b   :  { %v402_v5 = vadd.f32 %v1154_v38, %v400_v42 }
  0x9d   :  { %v404_v46 = vadd.f32 %v1157_v59, %v402_v5 }
  0x9f   :  { %v406_v17 = vadd.f32 %v1160_v36, %v404_v46 }
  0xa1   :  { %v408_v56 = vadd.f32 %v1169_v52, %v406_v17 }
  0xa3   :  { %v410_v47 = vadd.f32 %v1172_v8, %v408_v56 }
  0xa5   :  { %v411_v20 = vrot.slane %v410_v47, 4 }
  0xa7   :  { %v412_v39 = vadd.f32 %v411_v20, %v410_v47 }
  0xa9   :  { %v413_v3 = vrot.slane %v412_v39, 2 }
  0xab   :  { %v414_v48 = vadd.f32 %v413_v3, %v412_v39 }
  0xad   :  { %v415_v34 = vrot.slane %v414_v48, 1 }
  0xaf   :  { %v416_v53 = vadd.f32 %v415_v34, %v414_v48 }
  0xb1   :  { %v417_v54 = vadd.f32 %v416_v53, %v219_v37 }
  0xb3   :  { %418 = vst.msk [vmem:[%s1320_s2] sm:$0x1] %vm14_vm0, %v417_v54 }

// kernel: upsample_module_forward.6
= control target key start
LH: loop header
LB: loop body
LE: loop exit
PB: predicated region body
PF: predicated region fallthrough
CT: control target
= control target key end

     0   :  { %s889_s18 = smov 0   ;;  %s891_s19 = smov 0   ;;  %s1066_s0 = inlined_call_operand.vmem [shape: f32[2,16,16,8], index: 0, kind: input, shape index: {}]   ;;  %s1067_s1 = inlined_call_operand.vmem [shape: f32[1,8], index: 1, kind: input, shape index: {}]   ;;  %s1068_s2 = inlined_call_operand.vmem [shape: f32[1,8], index: 2, kind: input, shape index: {}]   ;;  %s1069_s3 = inlined_call_operand.vmem [shape: f32[8,8], index: 3, kind: input, shape index: {}]   ;;  %s1070_s4 = inlined_call_operand.vmem [shape: f32[1,8], index: 4, kind: output, shape index: {0}]   ;;  %s1071_s5 = inlined_call_operand.vmem [shape: f32[1,8], index: 5, kind: output, shape index: {1}]  }
   0x1   :  { %s893_s20 = smov 0   ;;  %s895_s21 = smov 0  }
   0x2   :  { %s897_s22 = smov 0  }
   0x3 LB: > { %s25_s23 = sadd.s32 1, %s848_s20  ;;  %s28_s24 = sadd.s32 1, %s852_s21  ;;  %s856_s22 = sphi %s897_s22, %s16_s22   ;;  %s852_s21 = sphi %s895_s21, %s1075_s21   ;;  %s848_s20 = sphi %s893_s20, %s1074_s20   ;;  %s844_s19 = sphi %s891_s19, %s1073_s19   ;;  %s840_s18 = sphi %s889_s18, %s1072_s18  }
   0x4   : > { %p26_p0 = scmp.ge.s32.totalorder %s25_s23, 2  ;;  %p707_p1 = scmp.ge.s32.totalorder %s856_s22, 1 }
   0x5   : > { %p200_p2 = scmp.lt.s32.totalorder %s856_s22, 5 }
   0x6   : > { %s1077_s23 = smov (%p26_p0, %s25_s23), 0  ;;  %s1079_s24 = smov (!%p26_p0, %s28_s24), %s852_s21 }
   0x7   : > { %p201_p3 = pnand %p707_p1, %p200_p2  ;;  %p30_p4 = scmp.ge.s32.totalorder %s1079_s24, 2 }
   0x8   : > { %s708_s25 = sshll.u32 (!%p201_p3), %s840_s18, 3  ;;  %p229_p5 = scmp.lt.s32.totalorder (!%p201_p3), %s844_s19, 1 }
   0x9   : > { %s1081_s24 = smov (%p30_p4, %s1079_s24), 0  ;;  %204 = sbr.rel (%p201_p3) target bundleno = 299 (0x12b), region = 36 }
   0xa   : > { %p231_p6 = scmp.lt.s32.totalorder (!%p201_p3), %s708_s25, 15  ;;  %p239_p7 = scmp.eq.s32.totalorder (!%p201_p3), %s844_s19, 0 }
   0xb   : > { %p240_p8 = scmp.eq.s32.totalorder (!%p201_p3), %s840_s18, 0 }
   0xd   : > { %p241_p9 = pnand (!%p201_p3), %p240_p8, %p239_p7 }
  0x10   : > { %s1083_s19 = smov (!%p229_p5, %s844_s19), 1  ;;  %s1085_s25 = smov (!%p231_p6, %s708_s25), 15 }
  0x11   : > { %s710_s26 = sshll.u32 %s1083_s19, 5  ;;  %s709_s27 = sshll.u32 %s1085_s25, 1  ;;  %vm245_vm0 = vcmask (!%p241_p9), 57344   ;;  %v858_v0 = vmov (!%p241_p9), 0.0  }
  0x12   : > { %s235_s28 = sadd.s32 %s710_s26, %s709_s27  ;;  %244 = sbr.rel (%p241_p9) target bundleno = 25 (0x19), region = 40  ;;  %246 = vst.msk [vmem:[%s1070_s4] sm:$0x1] (!%p241_p9), %vm245_vm0, %v858_v0  ;;  %247 = vst.msk [vmem:[%s1071_s5] sm:$0x1] (!%p241_p9), %vm245_vm0, %v858_v0 }
  0x13   : > { %s711_s29 = sshll.u32 %s235_s28, 3 }
  0x14   : > { %s922_s7 = scalar_lea.vmem %s1066_s0, %s711_s29 }
  0x19 PF: > { %v358_v1 = vld [vmem:[%s1069_s3] sm:$0xff]  ;;  %v249_v6 = vld [vmem:[%s922_s7 + $0x8] sm:$0xff]  ;;  %v250_v7 = vld [vmem:[%s922_s7 + $0x10] sm:$0xff]  ;;  %vm359_vm1 = vcmask 64512  }
  0x1a   : > { %v248_v2 = vld [vmem:[%s922_s7] sm:$0xff]  ;;  %749 = vmatprep.subr.mxu0 %v358_v1  ;;  %775 = vmatprep.subr.mxu1 %v358_v1  ;;  %v251_v10 = vld [vmem:[%s922_s7 + $0x18] sm:$0xff]  ;;  %v253_v12 = vld [vmem:[%s922_s7 + $0x28] sm:$0xff] }
  0x1b   : > { %v937_v3 = vld [vmem:[%s1067_s1] ss:$0 sm:$0xff]  ;;  %750 = vmatpush3.msra.mxu0 %v358_v1  ;;  %776 = vmatpush3.msra.mxu1 %v358_v1  ;;  %v254_v17 = vld [vmem:[%s922_s7 + $0x30] sm:$0xff]  ;;  %v255_v18 = vld [vmem:[%s922_s7 + $0x38] sm:$0xff] }
  0x1c   : > { %v271_v4 = vmul.f32 %v937_v3, %v248_v2  ;;  %v943_v5 = vld [vmem:[%s1068_s2] ss:$0 sm:$0xff]  ;;  %v272_v8 = vmul.f32 %v937_v3, %v249_v6  ;;  %v273_v9 = vmul.f32 %v937_v3, %v250_v7  ;;  %v274_v14 = vmul.f32 %v937_v3, %v251_v10  ;;  %v257_v31 = vld [vmem:[%s922_s7 + $0x48] sm:$0xff]  ;;  %v258_v40 = vld [vmem:[%s922_s7 + $0x50] sm:$0xff] }
  0x1d   : > { %v252_v11 = vld [vmem:[%s922_s7 + $0x20] sm:$0xff]  ;;  %v276_v16 = vmul.f32 %v937_v3, %v253_v12  ;;  %v277_v21 = vmul.f32 %v937_v3, %v254_v17  ;;  %v278_v22 = vmul.f32 %v937_v3, %v255_v18  ;;  %v280_v43 = vmul.f32 %v937_v3, %v257_v31  ;;  %v259_v44 = vld [vmem:[%s922_s7 + $0x58] sm:$0xff]  ;;  %v261_v52 = vld [vmem:[%s922_s7 + $0x68] sm:$0xff] }
  0x1e   : > { %v294_v13 = vadd.f32 %v943_v5, %v271_v4  ;;  %v275_v15 = vmul.f32 %v937_v3, %v252_v11  ;;  %v295_v19 = vadd.f32 %v943_v5, %v272_v8  ;;  %v296_v20 = vadd.f32 %v943_v5, %v273_v9  ;;  %v256_v26 = vld [vmem:[%s922_s7 + $0x40] sm:$0xff]  ;;  %v262_v57 = vld [vmem:[%s922_s7 + $0x70] sm:$0xff]  ;;  %v263_v58 = vld [vmem:[%s922_s7 + $0x78] sm:$0xff] }
  0x1f   : > { %v297_v24 = vadd.f32 %v943_v5, %v274_v14  ;;  %v299_v35 = vadd.f32 %v943_v5, %v276_v16  ;;  %v300_v37 = vadd.f32 %v943_v5, %v277_v21  ;;  %v301_v38 = vadd.f32 %v943_v5, %v278_v22  ;;  %v260_v45 = vld [vmem:[%s922_s7 + $0x60] sm:$0xff] }
  0x20   : > { %vm310_vm2 = vcmp.gt.f32.partialorder %v294_v13, 0.0  ;;  %v326_v23 = vmul.f32 0.2, %v294_v13  ;;  %v298_v25 = vadd.f32 %v943_v5, %v275_v15  ;;  %vm311_vm3 = vcmp.gt.f32.partialorder %v295_v19, 0.0 }
  0x21   : > { %v327_v27 = vmul.f32 0.2, %v295_v19  ;;  %vm312_vm4 = vcmp.gt.f32.partialorder %v296_v20, 0.0  ;;  %v328_v28 = vmul.f32 0.2, %v296_v20  ;;  %vm313_vm5 = vcmp.gt.f32.partialorder %v297_v24, 0.0 }
  0x22   : > { %v342_v29 = vsel %vm310_vm2, %v294_v13, %v326_v23  ;;  %v329_v30 = vmul.f32 0.2, %v297_v24  ;;  %vm314_vm6 = vcmp.gt.f32.partialorder %v298_v25, 0.0  ;;  %v330_v34 = vmul.f32 0.2, %v298_v25 }
  0x23   : > { %751 = vmatprep.mubr.msk.f32.mxu0 %vm359_vm1, %v342_v29  ;;  %v343_v32 = vsel %vm311_vm3, %v295_v19, %v327_v27  ;;  %v344_v33 = vsel %vm312_vm4, %v296_v20, %v328_v28  ;;  %v279_v39 = vmul.f32 %v937_v3, %v256_v26  ;;  %vm315_vm7 = vcmp.gt.f32.partialorder %v299_v35, 0.0 }
  0x24   : > { %752 = vmatmul.mubr.msk.f32.vlgmr.msra.gmra.mrb[0].mxu0 %vm359_vm1, %v343_v32  ;;  %v345_v36 = vsel %vm313_vm5, %v297_v24, %v329_v30  ;;  %v346_v41 = vsel %vm314_vm6, %v298_v25, %v330_v34  ;;  %v331_v42 = vmul.f32 0.2, %v299_v35  ;;  %vm316_vm8 = vcmp.gt.f32.partialorder %v300_v37, 0.0 }
  0x25   : > { %754 = vmatprep.mubr.msk.f32.mxu0 %vm359_vm1, %v344_v33  ;;  %v332_v46 = vmul.f32 0.2, %v300_v37  ;;  %vm317_vm9 = vcmp.gt.f32.partialorder %v301_v38, 0.0  ;;  %v333_v47 = vmul.f32 0.2, %v301_v38  ;;  %v302_v49 = vadd.f32 %v943_v5, %v279_v39 }
  0x26   : > { %v347_v48 = vsel %vm315_vm7, %v299_v35, %v331_v42  ;;  %v303_v50 = vadd.f32 %v943_v5, %v280_v43  ;;  %v281_v51 = vmul.f32 %v937_v3, %v258_v40  ;;  %v282_v55 = vmul.f32 %v937_v3, %v259_v44 }
  0x27   : > { %v348_v53 = vsel %vm316_vm8, %v300_v37, %v332_v46  ;;  %v349_v54 = vsel %vm317_vm9, %v301_v38, %v333_v47  ;;  %v283_v56 = vmul.f32 %v937_v3, %v260_v45  ;;  %vm318_vm10 = vcmp.gt.f32.partialorder %v302_v49, 0.0 }
  0x28   : > { %755 = vmatmul.mubr.msk.f32.gmra.mrb[2].mxu0 %vm359_vm1, %v345_v36  ;;  %v334_v59 = vmul.f32 0.2, %v302_v49  ;;  %vm319_vm11 = vcmp.gt.f32.partialorder %v303_v50, 0.0  ;;  %v335_v60 = vmul.f32 0.2, %v303_v50  ;;  %v304_v61 = vadd.f32 %v943_v5, %v281_v51 }
  0x29   : > { %757 = vmatprep.mubr.msk.f32.mxu0 %vm359_vm1, %v346_v41  ;;  %v305_v62 = vadd.f32 %v943_v5, %v282_v55  ;;  %v306_v63 = vadd.f32 %v943_v5, %v283_v56  ;;  %v284_v0 = vmul.f32 %v937_v3, %v261_v52  ;;  %v285_v4 = vmul.f32 %v937_v3, %v262_v57 }
  0x2a   : > { %v350_v1 = vsel %vm318_vm10, %v302_v49, %v334_v59  ;;  %v351_v2 = vsel %vm319_vm11, %v303_v50, %v335_v60  ;;  %v286_v6 = vmul.f32 %v937_v3, %v263_v58  ;;  %vm320_vm12 = vcmp.gt.f32.partialorder %v304_v61, 0.0 }
  0x2b   : > { %763 = vmatprep.mubr.msk.f32.mxu1 %vm359_vm1, %v350_v1  ;;  %v336_v7 = vmul.f32 0.2, %v304_v61  ;;  %vm321_vm13 = vcmp.gt.f32.partialorder %v305_v62, 0.0  ;;  %v337_v8 = vmul.f32 0.2, %v305_v62  ;;  %vm322_vm14 = vcmp.gt.f32.partialorder %v306_v63, 0.0 }
  0x2c   : > { %758 = vmatmul.mubr.msk.f32.gmra.mrb[4].mxu0 %vm359_vm1, %v347_v48  ;;  %764 = vmatmul.mubr.msk.f32.vlgmr.msra.gmra.mrb[0].mxu1 %vm359_vm1, %v351_v2  ;;  %v338_v9 = vmul.f32 0.2, %v306_v63  ;;  %v307_v10 = vadd.f32 %v943_v5, %v284_v0  ;;  %v308_v11 = vadd.f32 %v943_v5, %v285_v4  ;;  %v309_v13 = vadd.f32 %v943_v5, %v286_v6 }
  0x2d   : > { %760 = vmatprep.mubr.msk.f32.mxu0 %vm359_vm1, %v348_v53  ;;  %v352_v12 = vsel %vm320_vm12, %v304_v61, %v336_v7  ;;  %v353_v3 = vsel %vm321_vm13, %v305_v62, %v337_v8  ;;  %vm592_vm3 = vcmask 57344  }
  0x2e   : > { %766 = vmatprep.mubr.msk.f32.mxu1 %vm359_vm1, %v352_v12  ;;  %v354_v14 = vsel %vm322_vm14, %v306_v63, %v338_v9  ;;  %vm323_vm15 = vcmp.gt.f32.partialorder %v307_v10, 0.0  ;;  %v339_v15 = vmul.f32 0.2, %v307_v10  ;;  %vm324_vm0 = vcmp.gt.f32.partialorder %v308_v11, 0.0 }
  0x2f   : > { %v340_v16 = vmul.f32 0.2, %v308_v11  ;;  %v341_v18 = vmul.f32 0.2, %v309_v13  ;;  %vm325_vm2 = vcmp.gt.f32.partialorder %v309_v13, 0.0 }
  0x30   : > { %761 = vmatmul.mubr.msk.f32.gmra.mrb[6].mxu0 %vm359_vm1, %v349_v54  ;;  %767 = vmatmul.mubr.msk.f32.gmra.mrb[2].mxu1 %vm359_vm1, %v353_v3  ;;  %v355_v17 = vsel %vm323_vm15, %v307_v10, %v339_v15 }
  0x31   : > { %769 = vmatprep.mubr.msk.f32.mxu1 %vm359_vm1, %v354_v14  ;;  %v356_v19 = vsel %vm324_vm0, %v308_v11, %v340_v16  ;;  %v357_v5 = vsel %vm325_vm2, %v309_v13, %v341_v18 }
  0x34   : > { %770 = vmatmul.mubr.msk.f32.gmra.mrb[4].mxu1 %vm359_vm1, %v355_v17 }
  0x35   : > { %772 = vmatprep.mubr.msk.f32.mxu1 %vm359_vm1, %v356_v19 }
  0x38   : > { %773 = vmatmul.mubr.msk.f32.gmra.mrb[6].mxu1 %vm359_vm1, %v357_v5 }
  0xf7   : > { %v753_v20 = vpop.f32.mrb[0].mxu0 }
  0xf8   : > { %v555_v21 = vsel %vm359_vm1, %v753_v20, 0.0  ;;  %v596_v22 = vmul.f32 %v753_v20, %v753_v20  ;;  %v474_v23 = vpop.f32.mrb[1].mxu0 }
  0xf9   : > { %v554_v24 = vsel %vm359_vm1, %v474_v23, 0.0  ;;  %v595_v25 = vmul.f32 %v474_v23, %v474_v23 }
  0xfa   : > { %v612_v26 = vsel %vm359_vm1, %v596_v22, 0.0  ;;  %v556_v27 = vadd.f32 %v555_v21, %v554_v24 }
  0xfb   : > { %v611_v28 = vsel %vm359_vm1, %v595_v25, 0.0  ;;  %v756_v29 = vpop.f32.mrb[2].mxu0 }
  0xfc   : > { %v613_v30 = vadd.f32 %v612_v26, %v611_v28  ;;  %v484_v31 = vpop.f32.mrb[3].mxu0  ;;  %v598_v32 = vmul.f32 %v756_v29, %v756_v29  ;;  %v559_v36 = vsel %vm359_vm1, %v756_v29, 0.0 }
  0xfd   : > { %v557_v33 = vsel %vm359_vm1, %v484_v31, 0.0  ;;  %v597_v34 = vmul.f32 %v484_v31, %v484_v31 }
  0xfe   : > { %v558_v35 = vadd.f32 %v557_v33, %v556_v27  ;;  %v616_v44 = vsel %vm359_vm1, %v598_v32, 0.0 }
  0xff   : > { %v614_v37 = vsel %vm359_vm1, %v597_v34, 0.0  ;;  %v759_v38 = vpop.f32.mrb[4].mxu0  ;;  %v765_v43 = vpop.f32.mrb[0].mxu1 }
 0x100   : > { %v615_v39 = vadd.f32 %v614_v37, %v613_v30  ;;  %v600_v40 = vmul.f32 %v759_v38, %v759_v38  ;;  %v494_v41 = vpop.f32.mrb[5].mxu0  ;;  %v560_v42 = vadd.f32 %v559_v36, %v558_v35  ;;  %v514_v47 = vpop.f32.mrb[1].mxu1  ;;  %v563_v50 = vsel %vm359_vm1, %v759_v38, 0.0 }
 0x101   : > { %v561_v45 = vsel %vm359_vm1, %v494_v41, 0.0  ;;  %v599_v46 = vmul.f32 %v494_v41, %v494_v41  ;;  %v603_v61 = vmul.f32 %v514_v47, %v514_v47  ;;  %v569_v4 = vsel %vm359_vm1, %v514_v47, 0.0 }
 0x102   : > { %v562_v48 = vadd.f32 %v561_v45, %v560_v42  ;;  %v617_v49 = vadd.f32 %v616_v44, %v615_v39  ;;  %v620_v53 = vsel %vm359_vm1, %v600_v40, 0.0  ;;  %v604_v10 = vmul.f32 %v765_v43, %v765_v43 }
 0x103   : > { %v618_v51 = vsel %vm359_vm1, %v599_v46, 0.0  ;;  %v762_v52 = vpop.f32.mrb[6].mxu0  ;;  %v768_v57 = vpop.f32.mrb[2].mxu1  ;;  %v626_v11 = vsel %vm359_vm1, %v603_v61, 0.0  ;;  %v571_v15 = vsel %vm359_vm1, %v765_v43, 0.0 }
 0x104   : > { %v619_v54 = vadd.f32 %v618_v51, %v617_v49  ;;  %v504_v55 = vpop.f32.mrb[7].mxu0  ;;  %v564_v56 = vadd.f32 %v563_v50, %v562_v48  ;;  %v602_v58 = vmul.f32 %v762_v52, %v762_v52  ;;  %v524_v62 = vpop.f32.mrb[3].mxu1  ;;  %v567_v1 = vsel %vm359_vm1, %v762_v52, 0.0 }
 0x105   : > { %v565_v59 = vsel %vm359_vm1, %v504_v55, 0.0  ;;  %v601_v60 = vmul.f32 %v504_v55, %v504_v55  ;;  %v605_v12 = vmul.f32 %v524_v62, %v524_v62  ;;  %v573_v16 = vsel %vm359_vm1, %v524_v62, 0.0  ;;  %v594_v62 = vld [vmem:[%s1071_s5] sm:$0x1] }
 0x106   : > { %v566_v63 = vadd.f32 %v565_v59, %v564_v56  ;;  %v621_v0 = vadd.f32 %v620_v53, %v619_v54  ;;  %v624_v9 = vsel %vm359_vm1, %v602_v58, 0.0  ;;  %v628_v5 = vsel %vm359_vm1, %v604_v10, 0.0  ;;  %v553_v59 = vld [vmem:[%s1070_s4] sm:$0x1] }
 0x107   : > { %v622_v2 = vsel %vm359_vm1, %v601_v60, 0.0  ;;  %v771_v8 = vpop.f32.mrb[4].mxu1  ;;  %v606_v20 = vmul.f32 %v768_v57, %v768_v57  ;;  %v630_v21 = vsel %vm359_vm1, %v605_v12, 0.0  ;;  %v575_v26 = vsel %vm359_vm1, %v768_v57, 0.0 }
 0x108   : > { %v568_v6 = vadd.f32 %v567_v1, %v566_v63  ;;  %v623_v7 = vadd.f32 %v622_v2, %v621_v0  ;;  %v534_v3 = vpop.f32.mrb[5].mxu1  ;;  %v608_v31 = vmul.f32 %v771_v8, %v771_v8  ;;  %v579_v36 = vsel %vm359_vm1, %v771_v8, 0.0 }
 0x109   : > { %v607_v22 = vmul.f32 %v534_v3, %v534_v3  ;;  %v577_v27 = vsel %vm359_vm1, %v534_v3, 0.0  ;;  %v632_v30 = vsel %vm359_vm1, %v606_v20, 0.0 }
 0x10a   : > { %v625_v13 = vadd.f32 %v624_v9, %v623_v7  ;;  %v570_v14 = vadd.f32 %v569_v4, %v568_v6  ;;  %v636_v40 = vsel %vm359_vm1, %v608_v31, 0.0 }
 0x10b   : > { %v774_v19 = vpop.f32.mrb[6].mxu1  ;;  %v634_v32 = vsel %vm359_vm1, %v607_v22, 0.0 }
 0x10c   : > { %v627_v17 = vadd.f32 %v626_v11, %v625_v13  ;;  %v572_v18 = vadd.f32 %v571_v15, %v570_v14  ;;  %v544_v23 = vpop.f32.mrb[7].mxu1  ;;  %v610_v41 = vmul.f32 %v774_v19, %v774_v19  ;;  %v583_v45 = vsel %vm359_vm1, %v774_v19, 0.0 }
 0x10d   : > { %v609_v33 = vmul.f32 %v544_v23, %v544_v23  ;;  %v581_v37 = vsel %vm359_vm1, %v544_v23, 0.0 }
 0x10e   : > { %v574_v24 = vadd.f32 %v573_v16, %v572_v18  ;;  %v629_v25 = vadd.f32 %v628_v5, %v627_v17  ;;  %v640_v48 = vsel %vm359_vm1, %v610_v41, 0.0 }
 0x10f   : > { %v638_v42 = vsel %vm359_vm1, %v609_v33, 0.0 }
 0x110   : > { %v631_v28 = vadd.f32 %v630_v21, %v629_v25  ;;  %v576_v29 = vadd.f32 %v575_v26, %v574_v24 }
 0x112   : > { %v578_v34 = vadd.f32 %v577_v27, %v576_v29  ;;  %v633_v35 = vadd.f32 %v632_v30, %v631_v28 }
 0x114   : > { %v635_v38 = vadd.f32 %v634_v32, %v633_v35  ;;  %v580_v39 = vadd.f32 %v579_v36, %v578_v34 }
 0x116   : > { %v582_v43 = vadd.f32 %v581_v37, %v580_v39  ;;  %v637_v44 = vadd.f32 %v636_v40, %v635_v38 }
 0x118   : > { %v584_v46 = vadd.f32 %v583_v45, %v582_v43  ;;  %v639_v47 = vadd.f32 %v638_v42, %v637_v44 }
 0x11a   : > { %v585_v49 = vrot.slane %v584_v46, 4  ;;  %v641_v50 = vadd.f32 %v640_v48, %v639_v47 }
 0x11c   : > { %v586_v51 = vadd.f32 %v585_v49, %v584_v46  ;;  %v642_v52 = vrot.slane %v641_v50, 4 }
 0x11e   : > { %v587_v53 = vrot.slane %v586_v51, 2  ;;  %v643_v54 = vadd.f32 %v642_v52, %v641_v50 }
 0x120   : > { %v588_v55 = vadd.f32 %v587_v53, %v586_v51  ;;  %v644_v56 = vrot.slane %v643_v54, 2 }
 0x122   : > { %v589_v57 = vrot.slane %v588_v55, 1  ;;  %v645_v58 = vadd.f32 %v644_v56, %v643_v54 }
 0x124   : > { %v590_v60 = vadd.f32 %v589_v57, %v588_v55  ;;  %v646_v61 = vrot.slane %v645_v58, 1 }
 0x126   : > { %v591_v63 = vadd.f32 %v590_v60, %v553_v59  ;;  %v647_v0 = vadd.f32 %v646_v61, %v645_v58 }
 0x128   : > { %593 = vst.msk [vmem:[%s1070_s4] sm:$0x1] %vm592_vm3, %v591_v63  ;;  %v648_v1 = vadd.f32 %v647_v0, %v594_v62 }
 0x12a   : > { %649 = vst.msk [vmem:[%s1071_s5] sm:$0x1] %vm592_vm3, %v648_v1 }
 0x12b PF: > { %s16_s22 = sadd.s32 1, %s856_s22   ;;  %s1072_s18 = smov %s848_s20 }
 0x12c   : > { %p13_p10 = scmp.ge.s32.totalorder %s16_s22, 6   ;;  %s1073_s19 = smov %s852_s21 }
 0x12d   : > { %s1074_s20 = smov %s1077_s23  ;;  %s1075_s21 = smov %s1081_s24 }
 0x12e   :  { %15 = sbr.rel (!%p13_p10) target bundleno = 3 (0x3), region = 74 }

// kernel: upsample_module_forward.7
= control target key start
LH: loop header
LB: loop body
LE: loop exit
PB: predicated region body
PF: predicated region fallthrough
CT: control target
= control target key end

     0   :  { %s1104_s21 = smov 0   ;;  %s1106_s22 = smov 0   ;;  %s1442_s0 = inlined_call_operand.vmem [shape: f32[2,16,16,8], index: 0, kind: input, shape index: {}]   ;;  %s1443_s1 = inlined_call_operand.vmem [shape: f32[1,8], index: 1, kind: input, shape index: {}]   ;;  %s1444_s2 = inlined_call_operand.vmem [shape: f32[1,8], index: 2, kind: input, shape index: {}]   ;;  %s1445_s3 = inlined_call_operand.vmem [shape: f32[8,8], index: 3, kind: input, shape index: {}]   ;;  %s1446_s4 = inlined_call_operand.vmem [shape: f32[1,8], index: 4, kind: input, shape index: {}]   ;;  %s1447_s5 = inlined_call_operand.vmem [shape: f32[1,8], index: 5, kind: input, shape index: {}]   ;;  %s1448_s6 = inlined_call_operand.vmem [shape: f32[2,16,2,16,16], index: 6, kind: output, shape index: {}]  }
   0x1   :  { %s1108_s23 = smov 0   ;;  %s1110_s24 = smov 0  }
   0x2   :  { %s1112_s25 = smov 0  }
   0x3 LB: > { %s25_s26 = sadd.s32 1, %s1058_s23  ;;  %s28_s27 = sadd.s32 1, %s1062_s24  ;;  %s1066_s25 = sphi %s1112_s25, %s16_s25   ;;  %s1062_s24 = sphi %s1110_s24, %s1452_s24   ;;  %s1058_s23 = sphi %s1108_s23, %s1451_s23   ;;  %s1054_s22 = sphi %s1106_s22, %s1450_s22   ;;  %s1050_s21 = sphi %s1104_s21, %s1449_s21  }
   0x4   : > { %p26_p0 = scmp.ge.s32.totalorder %s25_s26, 2  ;;  %p911_p1 = scmp.ge.s32.totalorder %s1066_s25, 1 }
   0x5   : > { %p234_p2 = scmp.lt.s32.totalorder %s1066_s25, 5 }
   0x6   : > { %s1454_s26 = smov (%p26_p0, %s25_s26), 0  ;;  %s1456_s27 = smov (!%p26_p0, %s28_s27), %s1062_s24 }
   0x7   : > { %p235_p3 = pnand %p911_p1, %p234_p2  ;;  %p30_p4 = scmp.ge.s32.totalorder %s1456_s27, 2 }
   0x8   : > { %v406_v0 = vld [vmem:[%s1445_s3] sm:$0xff] (!%p235_p3)  ;;  %s912_s30 = sshll.u32 (!%p235_p3), %s1050_s21, 3  ;;  %p275_p5 = scmp.lt.s32.totalorder (!%p235_p3), %s1054_s22, 1  ;;  %vm407_vm0 = vcmask (!%p235_p3), 64512  }
   0x9   : > { %s1458_s27 = smov (%p30_p4, %s1456_s27), 0  ;;  %238 = sbr.rel (%p235_p3) target bundleno = 396 (0x18c), region = 44 }
   0xa   : > { %959 = vmatprep.subr.mxu0 (!%p235_p3), %v406_v0  ;;  %985 = vmatprep.subr.mxu1 (!%p235_p3), %v406_v0  ;;  %p277_p6 = scmp.lt.s32.totalorder (!%p235_p3), %s912_s30, 15  ;;  %v1142_v1 = vld [vmem:[%s1443_s1] ss:$0 sm:$0xff] (!%p235_p3) }
   0xb   : > { %960 = vmatpush3.msra.mxu0 (!%p235_p3), %v406_v0  ;;  %986 = vmatpush3.msra.mxu1 (!%p235_p3), %v406_v0  ;;  %v1152_v2 = vld [vmem:[%s1444_s2] ss:$0 sm:$0xff] (!%p235_p3) }
  0x10   : > { %s1460_s22 = smov (!%p275_p5, %s1054_s22), 1  ;;  %s1462_s30 = smov (!%p277_p6, %s912_s30), 15 }
  0x11   : > { %s914_s7 = sshll.u32 %s1460_s22, 5  ;;  %s918_s8 = sshll.u32 %s1460_s22, 6 }
  0x12   : > { %s913_s9 = sshll.u32 %s1462_s30, 1  ;;  %s917_s10 = sshll.u32 %s1462_s30, 2 }
  0x13   : > { %s281_s11 = sadd.s32 %s914_s7, %s913_s9  ;;  %s1137_s12 = sadd.s32 %s918_s8, %s917_s10 }
  0x14   : > { %s915_s13 = sshll.u32 %s281_s11, 3  ;;  %s1068_s30 = smov 8  }
  0x15   : > { %s1147_s18 = scalar_lea.vmem %s1442_s0, %s915_s13  ;;  %s919_s7 = sshll.u32 %s1137_s12, 3 }
  0x16   : > { %v296_v3 = vld [vmem:[%s1147_s18] sm:$0xff]  ;;  %v297_v5 = vld [vmem:[%s1147_s18 + $0x8] sm:$0xff]  ;;  %v298_v10 = vld [vmem:[%s1147_s18 + $0x10] sm:$0xff]  ;;  %s1329_s10 = scalar_lea.vmem %s1448_s6, %s919_s7 }
  0x17   : > { %v304_v4 = vld [vmem:[%s1147_s18 + $0x40] sm:$0xff]  ;;  %v319_v6 = vmul.f32 %v1142_v1, %v296_v3  ;;  %v320_v8 = vmul.f32 %v1142_v1, %v297_v5  ;;  %v305_v9 = vld [vmem:[%s1147_s18 + $0x48] sm:$0xff]  ;;  %v299_v11 = vld [vmem:[%s1147_s18 + $0x18] sm:$0xff]  ;;  %v321_v13 = vmul.f32 %v1142_v1, %v298_v10 }
  0x18   : > { %v327_v7 = vmul.f32 %v1142_v1, %v304_v4  ;;  %v328_v12 = vmul.f32 %v1142_v1, %v305_v9  ;;  %v322_v14 = vmul.f32 %v1142_v1, %v299_v11  ;;  %v306_v15 = vld [vmem:[%s1147_s18 + $0x50] sm:$0xff]  ;;  %v307_v16 = vld [vmem:[%s1147_s18 + $0x58] sm:$0xff]  ;;  %v300_v32 = vld [vmem:[%s1147_s18 + $0x20] sm:$0xff] }
  0x19   : > { %v342_v17 = vadd.f32 %v1152_v2, %v319_v6  ;;  %v343_v19 = vadd.f32 %v1152_v2, %v320_v8  ;;  %v329_v20 = vmul.f32 %v1142_v1, %v306_v15  ;;  %v344_v22 = vadd.f32 %v1152_v2, %v321_v13  ;;  %v301_v33 = vld [vmem:[%s1147_s18 + $0x28] sm:$0xff]  ;;  %v308_v34 = vld [vmem:[%s1147_s18 + $0x60] sm:$0xff]  ;;  %v302_v46 = vld [vmem:[%s1147_s18 + $0x30] sm:$0xff] }
  0x1a   : > { %v350_v18 = vadd.f32 %v1152_v2, %v327_v7  ;;  %v351_v21 = vadd.f32 %v1152_v2, %v328_v12  ;;  %v345_v23 = vadd.f32 %v1152_v2, %v322_v14  ;;  %v330_v24 = vmul.f32 %v1142_v1, %v307_v16  ;;  %v309_v41 = vld [vmem:[%s1147_s18 + $0x68] sm:$0xff]  ;;  %v303_v47 = vld [vmem:[%s1147_s18 + $0x38] sm:$0xff]  ;;  %v310_v58 = vld [vmem:[%s1147_s18 + $0x70] sm:$0xff] }
  0x1b   : > { %vm358_vm1 = vcmp.gt.f32.partialorder %v342_v17, 0.0  ;;  %v374_v25 = vmul.f32 0.2, %v342_v17  ;;  %vm359_vm3 = vcmp.gt.f32.partialorder %v343_v19, 0.0  ;;  %v375_v27 = vmul.f32 0.2, %v343_v19 }
  0x1c   : > { %vm366_vm2 = vcmp.gt.f32.partialorder %v350_v18, 0.0  ;;  %v382_v26 = vmul.f32 0.2, %v350_v18  ;;  %vm367_vm4 = vcmp.gt.f32.partialorder %v351_v21, 0.0  ;;  %v383_v28 = vmul.f32 0.2, %v351_v21 }
  0x1d   : > { %v390_v29 = vsel %vm358_vm1, %v342_v17, %v374_v25  ;;  %vm360_vm5 = vcmp.gt.f32.partialorder %v344_v22, 0.0  ;;  %v376_v31 = vmul.f32 0.2, %v344_v22  ;;  %v391_v35 = vsel %vm359_vm3, %v343_v19, %v375_v27  ;;  %v311_v6 = vld [vmem:[%s1147_s18 + $0x78] sm:$0xff] }
  0x1e   : > { %v398_v30 = vsel %vm366_vm2, %v350_v18, %v382_v26  ;;  %961 = vmatprep.mubr.msk.f32.mxu0 %vm407_vm0, %v390_v29  ;;  %v399_v36 = vsel %vm367_vm4, %v351_v21, %v383_v28  ;;  %vm361_vm6 = vcmp.gt.f32.partialorder %v345_v23, 0.0  ;;  %v377_v37 = vmul.f32 0.2, %v345_v23 }
  0x1f   : > { %973 = vmatprep.mubr.msk.f32.mxu1 %vm407_vm0, %v398_v30  ;;  %962 = vmatmul.mubr.msk.f32.vlgmr.msra.gmra.mrb[0].mxu0 %vm407_vm0, %v391_v35  ;;  %v392_v38 = vsel %vm360_vm5, %v344_v22, %v376_v31  ;;  %v352_v39 = vadd.f32 %v1152_v2, %v329_v20  ;;  %v353_v40 = vadd.f32 %v1152_v2, %v330_v24 }
  0x20   : > { %974 = vmatmul.mubr.msk.f32.vlgmr.msra.gmra.mrb[0].mxu1 %vm407_vm0, %v399_v36  ;;  %964 = vmatprep.mubr.msk.f32.mxu0 %vm407_vm0, %v392_v38  ;;  %v393_v42 = vsel %vm361_vm6, %v345_v23, %v377_v37  ;;  %v323_v43 = vmul.f32 %v1142_v1, %v300_v32  ;;  %v324_v44 = vmul.f32 %v1142_v1, %v301_v33 }
  0x21   : > { %v331_v45 = vmul.f32 %v1142_v1, %v308_v34  ;;  %vm368_vm7 = vcmp.gt.f32.partialorder %v352_v39, 0.0  ;;  %v384_v48 = vmul.f32 0.2, %v352_v39  ;;  %vm369_vm8 = vcmp.gt.f32.partialorder %v353_v40, 0.0 }
  0x22   : > { %v385_v49 = vmul.f32 0.2, %v353_v40  ;;  %v346_v50 = vadd.f32 %v1152_v2, %v323_v43  ;;  %v347_v51 = vadd.f32 %v1152_v2, %v324_v44  ;;  %v332_v53 = vmul.f32 %v1142_v1, %v309_v41 }
  0x23   : > { %v354_v52 = vadd.f32 %v1152_v2, %v331_v45  ;;  %965 = vmatmul.mubr.msk.f32.gmra.mrb[2].mxu0 %vm407_vm0, %v393_v42  ;;  %v400_v54 = vsel %vm368_vm7, %v352_v39, %v384_v48  ;;  %v325_v56 = vmul.f32 %v1142_v1, %v302_v46  ;;  %v326_v57 = vmul.f32 %v1142_v1, %v303_v47 }
  0x24   : > { %v401_v55 = vsel %vm369_vm8, %v353_v40, %v385_v49  ;;  %976 = vmatprep.mubr.msk.f32.mxu1 %vm407_vm0, %v400_v54  ;;  %vm362_vm9 = vcmp.gt.f32.partialorder %v346_v50, 0.0  ;;  %v378_v59 = vmul.f32 0.2, %v346_v50  ;;  %vm363_vm10 = vcmp.gt.f32.partialorder %v347_v51, 0.0 }
  0x25   : > { %v379_v60 = vmul.f32 0.2, %v347_v51  ;;  %977 = vmatmul.mubr.msk.f32.gmra.mrb[2].mxu1 %vm407_vm0, %v401_v55  ;;  %vm370_vm11 = vcmp.gt.f32.partialorder %v354_v52, 0.0  ;;  %v386_v61 = vmul.f32 0.2, %v354_v52  ;;  %v355_v62 = vadd.f32 %v1152_v2, %v332_v53 }
  0x26   : > { %v348_v63 = vadd.f32 %v1152_v2, %v325_v56  ;;  %v394_v0 = vsel %vm362_vm9, %v346_v50, %v378_v59  ;;  %v349_v4 = vadd.f32 %v1152_v2, %v326_v57  ;;  %v333_v5 = vmul.f32 %v1142_v1, %v310_v58 }
  0x27   : > { %v395_v3 = vsel %vm363_vm10, %v347_v51, %v379_v60  ;;  %967 = vmatprep.mubr.msk.f32.mxu0 %vm407_vm0, %v394_v0  ;;  %v402_v7 = vsel %vm370_vm11, %v354_v52, %v386_v61  ;;  %vm371_vm12 = vcmp.gt.f32.partialorder %v355_v62, 0.0  ;;  %v387_v8 = vmul.f32 0.2, %v355_v62 }
  0x28   : > { %vm364_vm13 = vcmp.gt.f32.partialorder %v348_v63, 0.0  ;;  %968 = vmatmul.mubr.msk.f32.gmra.mrb[4].mxu0 %vm407_vm0, %v395_v3  ;;  %979 = vmatprep.mubr.msk.f32.mxu1 %vm407_vm0, %v402_v7  ;;  %v380_v9 = vmul.f32 0.2, %v348_v63  ;;  %vm365_vm14 = vcmp.gt.f32.partialorder %v349_v4, 0.0  ;;  %v381_v10 = vmul.f32 0.2, %v349_v4 }
  0x29   : > { %v356_v11 = vadd.f32 %v1152_v2, %v333_v5  ;;  %v403_v12 = vsel %vm371_vm12, %v355_v62, %v387_v8  ;;  %v334_v13 = vmul.f32 %v1142_v1, %v311_v6  ;;  %v1221_v1 = vld [vmem:[%s1446_s4] ss:$0 sm:$0xff] }
  0x2a   : > { %980 = vmatmul.mubr.msk.f32.gmra.mrb[4].mxu1 %vm407_vm0, %v403_v12  ;;  %v396_v14 = vsel %vm364_vm13, %v348_v63, %v380_v9  ;;  %v397_v15 = vsel %vm365_vm14, %v349_v4, %v381_v10 }
  0x2b   : > { %vm372_vm15 = vcmp.gt.f32.partialorder %v356_v11, 0.0  ;;  %v388_v16 = vmul.f32 0.2, %v356_v11  ;;  %970 = vmatprep.mubr.msk.f32.mxu0 %vm407_vm0, %v396_v14  ;;  %v357_v17 = vadd.f32 %v1152_v2, %v334_v13  ;;  %v1226_v2 = vld [vmem:[%s1447_s5] ss:$0 sm:$0xff] }
  0x2c   : > { %971 = vmatmul.mubr.msk.f32.gmra.mrb[6].mxu0 %vm407_vm0, %v397_v15 }
  0x2d   : > { %v404_v18 = vsel %vm372_vm15, %v356_v11, %v388_v16  ;;  %vm373_vm1 = vcmp.gt.f32.partialorder %v357_v17, 0.0  ;;  %v389_v19 = vmul.f32 0.2, %v357_v17 }
  0x2e   : > { %982 = vmatprep.mubr.msk.f32.mxu1 %vm407_vm0, %v404_v18 }
  0x2f   : > { %v405_v20 = vsel %vm373_vm1, %v357_v17, %v389_v19 }
  0x30   : > { %983 = vmatmul.mubr.msk.f32.gmra.mrb[6].mxu1 %vm407_vm0, %v405_v20 }
  0xf2   : > { %v963_v21 = vpop.f32.mrb[0].mxu0 }
  0xf3   : > { %v975_v22 = vpop.f32.mrb[0].mxu1  ;;  %v609_v23 = vmul.f32 %v963_v21, %v1221_v1  ;;  %v522_v25 = vpop.f32.mrb[1].mxu0 }
  0xf4   : > { %v617_v24 = vmul.f32 %v975_v22, %v1221_v1  ;;  %v562_v26 = vpop.f32.mrb[1].mxu1  ;;  %v608_v27 = vmul.f32 %v1221_v1, %v522_v25 }
  0xf5   : > { %v616_v28 = vmul.f32 %v1221_v1, %v562_v26  ;;  %v632_v29 = vadd.f32 %v1226_v2, %v609_v23 }
  0xf6   : > { %v640_v30 = vadd.f32 %v1226_v2, %v617_v24  ;;  %v631_v31 = vadd.f32 %v1226_v2, %v608_v27  ;;  %v966_v32 = vpop.f32.mrb[2].mxu0 }
  0xf7   : > { %v611_v33 = vmul.f32 %v966_v32, %v1221_v1  ;;  %v532_v34 = vpop.f32.mrb[3].mxu0  ;;  %vm648_vm3 = vcmp.gt.f32.partialorder %v632_v29, 0.0  ;;  %v639_v36 = vadd.f32 %v1226_v2, %v616_v28  ;;  %v664_v39 = vmul.f32 0.2, %v632_v29 }
  0xf8   : > { %vm656_vm2 = vcmp.gt.f32.partialorder %v640_v30, 0.0  ;;  %v672_v35 = vmul.f32 0.2, %v640_v30  ;;  %v610_v37 = vmul.f32 %v1221_v1, %v532_v34  ;;  %v978_v38 = vpop.f32.mrb[2].mxu1  ;;  %v663_v44 = vmul.f32 0.2, %v631_v31 }
  0xf9   : > { %v634_v40 = vadd.f32 %v1226_v2, %v611_v33  ;;  %v619_v41 = vmul.f32 %v978_v38, %v1221_v1  ;;  %v572_v42 = vpop.f32.mrb[3].mxu1  ;;  %v1245_v46 = vsel %vm648_vm3, %v632_v29, %v664_v39  ;;  %vm647_vm4 = vcmp.gt.f32.partialorder %v631_v31, 0.0 }
  0xfa   : > { %v1240_v43 = vsel %vm656_vm2, %v640_v30, %v672_v35  ;;  %v618_v45 = vmul.f32 %v1221_v1, %v572_v42  ;;  %713 = vrot.lane.b32.xlu0 %v1245_v46, %s1068_s30  ;;  %v633_v50 = vadd.f32 %v1226_v2, %v610_v37  ;;  %v1251_v52 = vsel %vm647_vm4, %v631_v31, %v663_v44 }
  0xfb   : > { %729 = vrot.lane.b32.xlu1 %v1240_v43, %s1068_s30  ;;  %v642_v47 = vadd.f32 %v1226_v2, %v619_v41  ;;  %vm650_vm5 = vcmp.gt.f32.partialorder %v634_v40, 0.0  ;;  %v666_v48 = vmul.f32 0.2, %v634_v40  ;;  %v969_v49 = vpop.f32.mrb[4].mxu0  ;;  %v671_v56 = vmul.f32 0.2, %v639_v36 }
  0xfc   : > { %v542_v51 = vpop.f32.mrb[5].mxu0  ;;  %v613_v54 = vmul.f32 %v969_v49, %v1221_v1  ;;  %v641_v57 = vadd.f32 %v1226_v2, %v618_v45  ;;  %vm655_vm7 = vcmp.gt.f32.partialorder %v639_v36, 0.0  ;;  %vm649_vm8 = vcmp.gt.f32.partialorder %v633_v50, 0.0 }
  0xfd   : > { %v1253_v53 = vsel %vm650_vm5, %v634_v40, %v666_v48  ;;  %v981_v55 = vpop.f32.mrb[4].mxu1  ;;  %v612_v58 = vmul.f32 %v1221_v1, %v542_v51  ;;  %vm658_vm6 = vcmp.gt.f32.partialorder %v642_v47, 0.0  ;;  %v674_v59 = vmul.f32 0.2, %v642_v47 }
  0xfe   : > { %v582_v60 = vpop.f32.mrb[5].mxu1  ;;  %711 = vrot.lane.b32.xlu0 %v1251_v52, %s1068_s30  ;;  %v636_v63 = vadd.f32 %v1226_v2, %v613_v54  ;;  %v621_v0 = vmul.f32 %v981_v55, %v1221_v1  ;;  %v665_v4 = vmul.f32 0.2, %v633_v50  ;;  %v1267_v6 = vsel %vm655_vm7, %v639_v36, %v671_v56 }
  0xff   : > { %717 = vrot.lane.b32.xlu1 %v1253_v53, %s1068_s30  ;;  %v972_v61 = vpop.f32.mrb[6].mxu0  ;;  %v1264_v3 = vsel %vm658_vm6, %v642_v47, %v674_v59  ;;  %v635_v5 = vadd.f32 %v1226_v2, %v612_v58  ;;  %v620_v7 = vmul.f32 %v1221_v1, %v582_v60  ;;  %v673_v8 = vmul.f32 0.2, %v641_v57 }
 0x100   : > { %v552_v62 = vpop.f32.mrb[7].mxu0  ;;  %vm657_vm9 = vcmp.gt.f32.partialorder %v641_v57, 0.0  ;;  %v615_v10 = vmul.f32 %v972_v61, %v1221_v1  ;;  %v644_v12 = vadd.f32 %v1226_v2, %v621_v0  ;;  %v1277_v13 = vsel %vm649_vm8, %v633_v50, %v665_v4 }
 0x101   : > { %vm652_vm10 = vcmp.gt.f32.partialorder %v636_v63, 0.0  ;;  %v668_v14 = vmul.f32 0.2, %v636_v63  ;;  %v643_v15 = vadd.f32 %v1226_v2, %v620_v7  ;;  %v1280_v16 = vsel %vm657_vm9, %v641_v57, %v673_v8 }
 0x102   : > { %727 = vrot.lane.b32.xlu0 %v1267_v6, %s1068_s30  ;;  %v614_v17 = vmul.f32 %v1221_v1, %v552_v62  ;;  %v667_v18 = vmul.f32 0.2, %v635_v5  ;;  %vm651_vm11 = vcmp.gt.f32.partialorder %v635_v5, 0.0  ;;  %v638_v19 = vadd.f32 %v1226_v2, %v615_v10 }
 0x103   : > { %733 = vrot.lane.b32.xlu1 %v1264_v3, %s1068_s30  ;;  %v984_v9 = vpop.f32.mrb[6].mxu1  ;;  %v1289_v21 = vsel %vm652_vm10, %v636_v63, %v668_v14  ;;  %vm660_vm12 = vcmp.gt.f32.partialorder %v644_v12, 0.0  ;;  %v676_v22 = vmul.f32 0.2, %v644_v12  ;;  %v675_v26 = vmul.f32 0.2, %v643_v15 }
 0x104   : > { %v592_v11 = vpop.f32.mrb[7].mxu1  ;;  %v623_v20 = vmul.f32 %v984_v9, %v1221_v1  ;;  %v637_v23 = vadd.f32 %v1226_v2, %v614_v17  ;;  %v1294_v24 = vsel %vm651_vm11, %v635_v5, %v667_v18  ;;  %vm659_vm13 = vcmp.gt.f32.partialorder %v643_v15, 0.0 }
 0x105   : > { %v622_v25 = vmul.f32 %v1221_v1, %v592_v11  ;;  %v1300_v28 = vsel %vm660_vm12, %v644_v12, %v676_v22  ;;  %v670_v29 = vmul.f32 0.2, %v638_v19  ;;  %v1305_v31 = vsel %vm659_vm13, %v643_v15, %v675_v26 }
 0x106   : > { %731 = vrot.lane.b32.xlu0 %v1280_v16, %s1068_s30  ;;  %v646_v27 = vadd.f32 %v1226_v2, %v623_v20  ;;  %vm654_vm14 = vcmp.gt.f32.partialorder %v638_v19, 0.0  ;;  %v669_v1 = vmul.f32 0.2, %v637_v23  ;;  %vm653_vm15 = vcmp.gt.f32.partialorder %v637_v23, 0.0 }
 0x107   : > { %715 = vrot.lane.b32.xlu1 %v1277_v13, %s1068_s30  ;;  %v645_v30 = vadd.f32 %v1226_v2, %v622_v25  ;;  %v1309_v32 = vsel %vm654_vm14, %v638_v19, %v670_v29  ;;  %vm775_vm3 = vcmask 130048  }
 0x108   : > { %v678_v33 = vmul.f32 0.2, %v646_v27  ;;  %v1313_v34 = vsel %vm653_vm15, %v637_v23, %v669_v1  ;;  %vm662_vm1 = vcmp.gt.f32.partialorder %v646_v27, 0.0 }
 0x109   : > { %v677_v2 = vmul.f32 0.2, %v645_v30  ;;  %vm661_vm2 = vcmp.gt.f32.partialorder %v645_v30, 0.0 }
 0x10a   : > { %719 = vrot.lane.b32.xlu0 %v1294_v24, %s1068_s30  ;;  %v1317_v35 = vsel %vm662_vm1, %v646_v27, %v678_v33 }
 0x10b   : > { %721 = vrot.lane.b32.xlu1 %v1289_v21, %s1068_s30  ;;  %v1321_v36 = vsel %vm661_vm2, %v645_v30, %v677_v2 }
 0x10e   : > { %735 = vrot.lane.b32.xlu0 %v1305_v31, %s1068_s30 }
 0x10f   : > { %737 = vrot.lane.b32.xlu1 %v1300_v28, %s1068_s30 }
 0x112   : > { %723 = vrot.lane.b32.xlu0 %v1313_v34, %s1068_s30 }
 0x113   : > { %725 = vrot.lane.b32.xlu1 %v1309_v32, %s1068_s30 }
 0x116   : > { %739 = vrot.lane.b32.xlu0 %v1321_v36, %s1068_s30 }
 0x117   : > { %741 = vrot.lane.b32.xlu1 %v1317_v35, %s1068_s30 }
 0x16c   : > { %v714_v39 = vpop.permute.xlu0 %713 }
 0x16d   : > { %v730_v37 = vpop.permute.xlu1 %729  ;;  %v760_v40 = vsel %vm407_vm0, %v1245_v46, %v714_v39 }
 0x16e   : > { %v768_v38 = vsel %vm407_vm0, %v1240_v43, %v730_v37  ;;  %777 = vst.msk [vmem:[%s1329_s10 + $0x8] sm:$0xff] %vm775_vm3, %v760_v40  ;;  %779 = vst.msk [vmem:[%s1329_s10 + $0x18] sm:$0xff] %vm775_vm3, %v760_v40 }
 0x16f   : > { %793 = vst.msk [vmem:[%s1329_s10 + $0x88] sm:$0xff] %vm775_vm3, %v768_v38  ;;  %795 = vst.msk [vmem:[%s1329_s10 + $0x98] sm:$0xff] %vm775_vm3, %v768_v38 }
 0x170   : > { %v712_v42 = vpop.permute.xlu0 %711 }
 0x171   : > { %v718_v41 = vpop.permute.xlu1 %717  ;;  %v759_v44 = vsel %vm407_vm0, %v1251_v52, %v712_v42 }
 0x172   : > { %v762_v43 = vsel %vm407_vm0, %v1253_v53, %v718_v41  ;;  %776 = vst.msk [vmem:[%s1329_s10] sm:$0xff] %vm775_vm3, %v759_v44  ;;  %778 = vst.msk [vmem:[%s1329_s10 + $0x10] sm:$0xff] %vm775_vm3, %v759_v44 }
 0x173   : > { %781 = vst.msk [vmem:[%s1329_s10 + $0x28] sm:$0xff] %vm775_vm3, %v762_v43  ;;  %783 = vst.msk [vmem:[%s1329_s10 + $0x38] sm:$0xff] %vm775_vm3, %v762_v43 }
 0x174   : > { %v728_v46 = vpop.permute.xlu0 %727 }
 0x175   : > { %v734_v45 = vpop.permute.xlu1 %733  ;;  %v767_v48 = vsel %vm407_vm0, %v1267_v6, %v728_v46 }
 0x176   : > { %v770_v47 = vsel %vm407_vm0, %v1264_v3, %v734_v45  ;;  %792 = vst.msk [vmem:[%s1329_s10 + $0x80] sm:$0xff] %vm775_vm3, %v767_v48  ;;  %794 = vst.msk [vmem:[%s1329_s10 + $0x90] sm:$0xff] %vm775_vm3, %v767_v48 }
 0x177   : > { %797 = vst.msk [vmem:[%s1329_s10 + $0xa8] sm:$0xff] %vm775_vm3, %v770_v47  ;;  %799 = vst.msk [vmem:[%s1329_s10 + $0xb8] sm:$0xff] %vm775_vm3, %v770_v47 }
 0x178   : > { %v732_v50 = vpop.permute.xlu0 %731 }
 0x179   : > { %v716_v49 = vpop.permute.xlu1 %715  ;;  %v769_v52 = vsel %vm407_vm0, %v1280_v16, %v732_v50 }
 0x17a   : > { %v761_v51 = vsel %vm407_vm0, %v1277_v13, %v716_v49  ;;  %796 = vst.msk [vmem:[%s1329_s10 + $0xa0] sm:$0xff] %vm775_vm3, %v769_v52  ;;  %798 = vst.msk [vmem:[%s1329_s10 + $0xb0] sm:$0xff] %vm775_vm3, %v769_v52 }
 0x17b   : > { %780 = vst.msk [vmem:[%s1329_s10 + $0x20] sm:$0xff] %vm775_vm3, %v761_v51  ;;  %782 = vst.msk [vmem:[%s1329_s10 + $0x30] sm:$0xff] %vm775_vm3, %v761_v51 }
 0x17c   : > { %v720_v55 = vpop.permute.xlu0 %719 }
 0x17d   : > { %v722_v53 = vpop.permute.xlu1 %721  ;;  %v763_v56 = vsel %vm407_vm0, %v1294_v24, %v720_v55 }
 0x17e   : > { %v764_v54 = vsel %vm407_vm0, %v1289_v21, %v722_v53  ;;  %784 = vst.msk [vmem:[%s1329_s10 + $0x40] sm:$0xff] %vm775_vm3, %v763_v56  ;;  %786 = vst.msk [vmem:[%s1329_s10 + $0x50] sm:$0xff] %vm775_vm3, %v763_v56 }
 0x17f   : > { %785 = vst.msk [vmem:[%s1329_s10 + $0x48] sm:$0xff] %vm775_vm3, %v764_v54  ;;  %787 = vst.msk [vmem:[%s1329_s10 + $0x58] sm:$0xff] %vm775_vm3, %v764_v54 }
 0x180   : > { %v736_v59 = vpop.permute.xlu0 %735 }
 0x181   : > { %v738_v57 = vpop.permute.xlu1 %737  ;;  %v771_v60 = vsel %vm407_vm0, %v1305_v31, %v736_v59 }
 0x182   : > { %v772_v58 = vsel %vm407_vm0, %v1300_v28, %v738_v57  ;;  %800 = vst.msk [vmem:[%s1329_s10 + $0xc0] sm:$0xff] %vm775_vm3, %v771_v60  ;;  %802 = vst.msk [vmem:[%s1329_s10 + $0xd0] sm:$0xff] %vm775_vm3, %v771_v60 }
 0x183   : > { %801 = vst.msk [vmem:[%s1329_s10 + $0xc8] sm:$0xff] %vm775_vm3, %v772_v58  ;;  %803 = vst.msk [vmem:[%s1329_s10 + $0xd8] sm:$0xff] %vm775_vm3, %v772_v58 }
 0x184   : > { %v724_v63 = vpop.permute.xlu0 %723 }
 0x185   : > { %v726_v61 = vpop.permute.xlu1 %725  ;;  %v765_v0 = vsel %vm407_vm0, %v1313_v34, %v724_v63 }
 0x186   : > { %v766_v62 = vsel %vm407_vm0, %v1309_v32, %v726_v61  ;;  %788 = vst.msk [vmem:[%s1329_s10 + $0x60] sm:$0xff] %vm775_vm3, %v765_v0  ;;  %790 = vst.msk [vmem:[%s1329_s10 + $0x70] sm:$0xff] %vm775_vm3, %v765_v0 }
 0x187   : > { %789 = vst.msk [vmem:[%s1329_s10 + $0x68] sm:$0xff] %vm775_vm3, %v766_v62  ;;  %791 = vst.msk [vmem:[%s1329_s10 + $0x78] sm:$0xff] %vm775_vm3, %v766_v62 }
 0x188   : > { %v740_v5 = vpop.permute.xlu0 %739 }
 0x189   : > { %v742_v3 = vpop.permute.xlu1 %741  ;;  %v773_v6 = vsel %vm407_vm0, %v1321_v36, %v740_v5 }
 0x18a   : > { %v774_v4 = vsel %vm407_vm0, %v1317_v35, %v742_v3  ;;  %804 = vst.msk [vmem:[%s1329_s10 + $0xe0] sm:$0xff] %vm775_vm3, %v773_v6  ;;  %806 = vst.msk [vmem:[%s1329_s10 + $0xf0] sm:$0xff] %vm775_vm3, %v773_v6 }
 0x18b   : > { %805 = vst.msk [vmem:[%s1329_s10 + $0xe8] sm:$0xff] %vm775_vm3, %v774_v4  ;;  %807 = vst.msk [vmem:[%s1329_s10 + $0xf8] sm:$0xff] %vm775_vm3, %v774_v4 }
 0x18c PF: > { %s16_s25 = sadd.s32 1, %s1066_s25   ;;  %s1449_s21 = smov %s1058_s23 }
 0x18d   : > { %p13_p7 = scmp.ge.s32.totalorder %s16_s25, 6   ;;  %s1450_s22 = smov %s1062_s24 }
 0x18e   : > { %s1451_s23 = smov %s1454_s26  ;;  %s1452_s24 = smov %s1458_s27 }
 0x18f   :  { %15 = sbr.rel (!%p13_p7) target bundleno = 3 (0x3), region = 74 }

// kernel: upsample_module_forward.5
= control target key start
LH: loop header
LB: loop body
LE: loop exit
PB: predicated region body
PF: predicated region fallthrough
CT: control target
= control target key end

     0   :  { %s3146_s18 = smov 0   ;;  %s3148_s19 = smov 0   ;;  %s3864_s0 = inlined_call_operand.vmem [shape: f32[2,18,18,4], index: 0, kind: input, shape index: {}, may-alias: {0,1}]   ;;  %s3865_s1 = inlined_call_operand.vmem [shape: f32[2,18,18,4], index: 1, kind: input, shape index: {}, may-alias: {0,1}]   ;;  %s3866_s2 = inlined_call_operand.vmem [shape: f32[3,3,4,8], index: 2, kind: input, shape index: {}]   ;;  %s3867_s3 = inlined_call_operand.vmem [shape: f32[2,16,16,8], index: 3, kind: output, shape index: {0}]   ;;  %s3868_s4 = inlined_call_operand.vmem [shape: f32[1,8], index: 4, kind: output, shape index: {1}]   ;;  %s3869_s5 = inlined_call_operand.vmem [shape: f32[1,8], index: 5, kind: output, shape index: {2}]  }
   0x1   :  { %s3150_s20 = smov 0   ;;  %s3152_s21 = smov 0  }
   0x2   :  { %s3154_s22 = smov 0  }
   0x3 LB: > { %s25_s23 = sadd.s32 1, %s3105_s20  ;;  %s28_s24 = sadd.s32 1, %s3109_s21  ;;  %s3113_s22 = sphi %s3154_s22, %s16_s22   ;;  %s3109_s21 = sphi %s3152_s21, %s3875_s21   ;;  %s3105_s20 = sphi %s3150_s20, %s3874_s20   ;;  %s3101_s19 = sphi %s3148_s19, %s3873_s19   ;;  %s3097_s18 = sphi %s3146_s18, %s3872_s18  }
   0x4   : > { %p26_p0 = scmp.ge.s32.totalorder %s25_s23, 2  ;;  %p2340_p1 = scmp.ge.s32.totalorder %s3113_s22, 1 }
   0x5   : > { %p240_p2 = scmp.lt.s32.totalorder %s3113_s22, 5 }
   0x6   : > { %s3877_s23 = smov (%p26_p0, %s25_s23), 0  ;;  %s3879_s24 = smov (!%p26_p0, %s28_s24), %s3109_s21 }
   0x7   : > { %p241_p3 = pnand %p2340_p1, %p240_p2  ;;  %p30_p4 = scmp.ge.s32.totalorder %s3879_s24, 2 }
   0x8   : > { %s2341_s25 = sshll.u32 (!%p241_p3), %s3097_s18, 3  ;;  %p301_p5 = scmp.lt.s32.totalorder (!%p241_p3), %s3101_s19, 1 }
   0x9   : > { %s3881_s24 = smov (%p30_p4, %s3879_s24), 0  ;;  %244 = sbr.rel (%p241_p3) target bundleno = 417 (0x1a1), region = 32 }
   0xa   : > { %3870 = sst [smem:[#allocation2_spill]] %s3881_s24  ;;  %p303_p6 = scmp.lt.s32.totalorder (!%p241_p3), %s2341_s25, 17 }
   0xb   : > { %s2513_s26 = sadd.s32 (!%p241_p3), 8, %s2341_s25  ;;  %p334_p8 = scmp.lt.s32.totalorder (!%p241_p3), %s2341_s25, 15 }
   0xc   : > { %p321_p7 = scmp.lt.s32.totalorder (!%p241_p3), %s2513_s26, 17  ;;  %p342_p9 = scmp.eq.s32.totalorder (!%p241_p3), %s3101_s19, 0 }
   0xd   : > { %p343_p10 = scmp.eq.s32.totalorder (!%p241_p3), %s3097_s18, 0 }
   0xf   : > { %p344_p11 = pnand (!%p241_p3), %p343_p10, %p342_p9 }
  0x10   : > { %s302_s27 = scalar_select %p301_p5, %s3101_s19, 1 }
  0x11   : > { %s304_s28 = scalar_select %p303_p6, %s2341_s25, 17 }
  0x12   : > { %s3032_s29 = smul.u32 54, %s302_s27  ;;  %s3883_s26 = smov (!%p321_p7, %s2513_s26), 17  ;;  %vm348_vm0 = vcmask (!%p344_p11), 57344   ;;  %v3115_v0 = vmov (!%p344_p11), 0.0  }
  0x13   : > { %s3031_s30 = smul.u32 3, %s304_s28  ;;  %s2348_s14 = sshll.u32 %s302_s27, 5  ;;  %349 = vst.msk [vmem:[%s3868_s4] sm:$0x1] (!%p344_p11), %vm348_vm0, %v3115_v0  ;;  %350 = vst.msk [vmem:[%s3869_s5] sm:$0x1] (!%p344_p11), %vm348_vm0, %v3115_v0 }
  0x14   : > { %s3033_s8 = smul.u32 3, %s3883_s26  ;;  %s3885_s25 = smov (!%p334_p8, %s2341_s25), 15 }
  0x15   : > { %s307_s6 = sadd.s32 %s3032_s29, %s3031_s30  ;;  %s2347_s28 = sshll.u32 %s3885_s25, 1 }
  0x16   : > { %s2342_s7 = sshll.u32 %s307_s6, 3  ;;  %s325_s12 = sadd.s32 %s3033_s8, %s3032_s29 }
  0x17   : > { %s3186_s11 = scalar_lea.vmem %s3864_s0, %s2342_s7  ;;  %s2345_s13 = sshll.u32 %s325_s12, 3 }
  0x18   : > { %s3193_s17 = scalar_lea.vmem %s3865_s1, %s2345_s13  ;;  %s338_s30 = sadd.s32 %s2348_s14, %s2347_s28 }
  0x19   : > { %s2349_s26 = sshll.u32 %s338_s30, 3  ;;  %347 = sbr.rel (%p344_p11) target bundleno = 32 (0x20), region = 36 }
  0x1a   : > { %s3198_s7 = scalar_lea.vmem %s3867_s3, %s2349_s26 }
  0x20 PF: > { %v382_v1 = vld [vmem:[%s3866_s2 + $0x4] sm:$0xf]  ;;  %vm488_vm1 = vcmask 1043456   ;;  %v3212_v2 = vld [vmem:[%s3866_s2 + $0x10] sm:$0xf]  ;;  %v3221_v4 = vld [vmem:[%s3186_s11 + $0x8] sm:$0xff] }
  0x21   : > { %v3215_v3 = vld [vmem:[%s3186_s11] sm:$0xff]  ;;  %2667 = vmatprep.subr.msk.mxu1 %vm488_vm1, %v382_v1  ;;  %2771 = vmatprep.subr.msk.mxu0 %vm488_vm1, %v3212_v2  ;;  %vm414_vm2 = vcmask 1046528   ;;  %v416_v7 = vrot.slane %v3221_v4, 1  ;;  %vm455_vm3 = vcmask 31744   ;;  %v3232_v8 = vld [vmem:[%s3186_s11 + $0x18] sm:$0xff]  ;;  %v3254_v18 = vld [vmem:[%s3186_s11 + $0x30] sm:$0xff] }
  0x22   : > { %v415_v5 = vrot.slane %v3215_v3, 1  ;;  %v381_v6 = vld [vmem:[%s3866_s2] sm:$0xf]  ;;  %2668 = vmatpush3.msk.msra.mxu1 %vm488_vm1, %v382_v1  ;;  %2772 = vmatpush3.msk.msra.mxu0 %vm488_vm1, %v3212_v2  ;;  %v386_v10 = vld [vmem:[%s3866_s2 + $0x14] sm:$0xf]  ;;  %v420_v11 = vrot.slane %v3232_v8, 1 }
  0x23   : > { %v3235_v9 = vld [vmem:[%s3186_s11 + $0x20] sm:$0xff]  ;;  %2693 = vmatprep.subr.msk.mxu1 %vm488_vm1, %v381_v6  ;;  %2797 = vmatprep.subr.msk.mxu0 %vm488_vm1, %v386_v10  ;;  %v3245_v13 = vld [vmem:[%s3186_s11 + $0x10] sm:$0x3]  ;;  %v3248_v14 = vld [vmem:[%s3186_s11 + $0x28] sm:$0x3]  ;;  %v425_v22 = vrot.slane %v3254_v18, 1 }
  0x24   : > { %v421_v12 = vrot.slane %v3235_v9, 1  ;;  %v417_v15 = vsel %vm414_vm2, %v415_v5, %v416_v7  ;;  %v418_v16 = vrot.slane %v3245_v13, 1  ;;  %v423_v17 = vrot.slane %v3248_v14, 1  ;;  %v3257_v19 = vld [vmem:[%s3186_s11 + $0x38] sm:$0xff]  ;;  %v3260_v20 = vld [vmem:[%s3186_s11 + $0x48] sm:$0xff]  ;;  %v3270_v25 = vld [vmem:[%s3186_s11 + $0x50] sm:$0xff] }
  0x25   : > { %2669 = vmatprep.mubr.msk.f32.mxu1 %vm455_vm3, %v417_v15  ;;  %v426_v23 = vrot.slane %v3257_v19, 1  ;;  %v3267_v24 = vld [vmem:[%s3186_s11 + $0x40] sm:$0x3]  ;;  %v430_v29 = vrot.slane %v3260_v20, 1  ;;  %v3278_v30 = vld [vmem:[%s3186_s11 + $0x58] sm:$0x3] }
  0x26   : > { %v422_v21 = vsel %vm414_vm2, %v420_v11, %v421_v12  ;;  %v419_v26 = vsel %vm414_vm2, %v416_v7, %v418_v16  ;;  %v424_v27 = vsel %vm414_vm2, %v421_v12, %v423_v17  ;;  %v428_v28 = vrot.slane %v3267_v24, 1  ;;  %v3281_v31 = vld [vmem:[%s3186_s11 + $0x60] sm:$0xff]  ;;  %v3284_v32 = vld [vmem:[%s3186_s11 + $0x68] sm:$0xff]  ;;  %v387_v37 = vld [vmem:[%s3866_s2 + $0x18] sm:$0xf] }
  0x27   : > { %2773 = vmatprep.mubr.msk.f32.mxu0 %vm455_vm3, %v422_v21  ;;  %2670 = vmatmul.mubr.msk.f32.vlgmr.msra.gmra.mrb[0].mxu1 %vm455_vm3, %v419_v26  ;;  %v3289_v33 = vsel %vm414_vm2, %v425_v22, %v426_v23  ;;  %v431_v34 = vrot.slane %v3270_v25, 1  ;;  %v433_v36 = vrot.slane %v3278_v30, 1  ;;  %v435_v39 = vrot.slane %v3281_v31, 1  ;;  %v3310_v41 = vld [vmem:[%s3186_s11 + $0x70] sm:$0x3]  ;;  %v3337_v48 = vld [vmem:[%s3186_s11 + $0x78] sm:$0xff] }
  0x28   : > { %2774 = vmatmul.mubr.msk.f32.vlgmr.msra.gmra.mrb[0].mxu0 %vm455_vm3, %v424_v27  ;;  %2694 = vmatpush3.msk.msra.mxu1 %vm488_vm1, %v381_v6  ;;  %v3295_v35 = vsel %vm414_vm2, %v426_v23, %v428_v28  ;;  %v436_v40 = vrot.slane %v3284_v32, 1  ;;  %v3319_v42 = vld [vmem:[%s3866_s2 + $0x8] sm:$0xf]  ;;  %v438_v44 = vrot.slane %v3310_v41, 1  ;;  %v823_v46 = vrot.slane %v3232_v8, 2  ;;  %v3340_v49 = vld [vmem:[%s3186_s11 + $0x80] sm:$0xff] }
  0x29   : > { %2798 = vmatpush3.msk.msra.mxu0 %vm488_vm1, %v386_v10  ;;  %2672 = vmatprep.mubr.msk.f32.mxu1 %vm455_vm3, %v422_v21  ;;  %v3305_v38 = vsel %vm414_vm2, %v430_v29, %v431_v34  ;;  %v3326_v43 = vsel %vm414_vm2, %v431_v34, %v433_v36  ;;  %v824_v47 = vrot.slane %v3235_v9, 2  ;;  %vm817_vm4 = vcmask 1045504   ;;  %v3355_v52 = vld [vmem:[%s3186_s11 + $0x88] sm:$0x3]  ;;  %v3363_v56 = vld [vmem:[%s3186_s11 + $0x90] sm:$0xff]  ;;  %v3366_v57 = vld [vmem:[%s3186_s11 + $0x98] sm:$0xff] }
  0x2a   : > { %2776 = vmatprep.mubr.msk.f32.mxu0 %vm455_vm3, %v3289_v33  ;;  %2823 = vmatprep.subr.msk.mxu0 %vm488_vm1, %v387_v37  ;;  %v3330_v45 = vsel %vm414_vm2, %v435_v39, %v436_v40  ;;  %v826_v50 = vrot.slane %v3248_v14, 2  ;;  %v3352_v51 = vsel %vm414_vm2, %v436_v40, %v438_v44  ;;  %v440_v54 = vrot.slane %v3337_v48, 1  ;;  %v371_v7 = vld [vmem:[%s3186_s11 + $0xa0] sm:$0x3]  ;;  %v3395_v11 = vld [vmem:[%s3186_s11 + $0xa8] sm:$0xff]  ;;  %v3398_v12 = vld [vmem:[%s3186_s11 + $0xb0] sm:$0xff] }
  0x2b   : > { %2673 = vmatmul.mubr.msk.f32.gmra.mrb[2].mxu1 %vm455_vm3, %v424_v27  ;;  %2719 = vmatprep.subr.msk.mxu1 %vm488_vm1, %v3319_v42  ;;  %v3358_v53 = vsel %vm817_vm4, %v823_v46, %v824_v47  ;;  %v441_v55 = vrot.slane %v3340_v49, 1  ;;  %v828_v58 = vrot.slane %v3254_v18, 2  ;;  %v829_v59 = vrot.slane %v3257_v19, 2  ;;  %v3403_v14 = vld [vmem:[%s3866_s2 + $0x1c] sm:$0xf] }
  0x2c   : > { %2777 = vmatmul.mubr.msk.f32.gmra.mrb[2].mxu0 %vm455_vm3, %v3295_v35  ;;  %2675 = vmatprep.mubr.msk.f32.mxu1 %vm455_vm3, %v3289_v33  ;;  %v3375_v60 = vsel %vm817_vm4, %v824_v47, %v826_v50  ;;  %v443_v61 = vrot.slane %v3355_v52, 1  ;;  %v831_v62 = vrot.slane %v3267_v24, 2  ;;  %v445_v63 = vrot.slane %v3363_v56, 1  ;;  %v374_v29 = vld [vmem:[%s3186_s11 + $0xb8] sm:$0x3] }
  0x2d   : > { %2779 = vmatprep.mubr.msk.f32.mxu0 %vm455_vm3, %v3305_v38  ;;  %v446_v0 = vrot.slane %v3366_v57, 1  ;;  %v833_v1 = vrot.slane %v3260_v20, 2  ;;  %v834_v5 = vrot.slane %v3270_v25, 2  ;;  %v3388_v6 = vsel %vm414_vm2, %v440_v54, %v441_v55 }
  0x2e   : > { %v3392_v10 = vsel %vm817_vm4, %v828_v58, %v829_v59  ;;  %v3410_v15 = vsel %vm414_vm2, %v441_v55, %v443_v61  ;;  %v3413_v16 = vsel %vm817_vm4, %v829_v59, %v831_v62  ;;  %v448_v22 = vrot.slane %v371_v7, 1 }
  0x2f   : > { %2676 = vmatmul.mubr.msk.f32.gmra.mrb[4].mxu1 %vm455_vm3, %v3295_v35  ;;  %v3419_v17 = vsel %vm414_vm2, %v445_v63, %v446_v0  ;;  %v3422_v21 = vsel %vm817_vm4, %v833_v1, %v834_v5  ;;  %v836_v23 = vrot.slane %v3278_v30, 2  ;;  %v450_v24 = vrot.slane %v3395_v11, 1  ;;  %v3497_v1 = vld [vmem:[%s3193_s17 + $0x8] sm:$0xff] }
  0x30   : > { %2780 = vmatmul.mubr.msk.f32.gmra.mrb[4].mxu0 %vm455_vm3, %v3326_v43  ;;  %2678 = vmatprep.mubr.msk.f32.mxu1 %vm455_vm3, %v3305_v38  ;;  %v451_v26 = vrot.slane %v3398_v12, 1  ;;  %v838_v27 = vrot.slane %v3281_v31, 2  ;;  %v839_v28 = vrot.slane %v3284_v32, 2  ;;  %v3443_v30 = vsel %vm414_vm2, %v446_v0, %v448_v22  ;;  %v3494_v0 = vld [vmem:[%s3193_s17] sm:$0xff] }
  0x31   : > { %2782 = vmatprep.mubr.msk.f32.mxu0 %vm455_vm3, %v3330_v45  ;;  %v3446_v34 = vsel %vm817_vm4, %v834_v5, %v836_v23  ;;  %v453_v36 = vrot.slane %v374_v29, 1  ;;  %v843_v44 = vrot.slane %v3337_v48, 2  ;;  %v844_v46 = vrot.slane %v3340_v49, 2  ;;  %v384_v5 = vld [vmem:[%s3866_s2 + $0xc] sm:$0xf] }
  0x32   : > { %v3450_v39 = vsel %vm414_vm2, %v450_v24, %v451_v26  ;;  %v3453_v40 = vsel %vm817_vm4, %v838_v27, %v839_v28  ;;  %v846_v50 = vrot.slane %v3355_v52, 2  ;;  %v848_v55 = vrot.slane %v3363_v56, 2  ;;  %v3521_v27 = vld [vmem:[%s3193_s17 + $0x10] sm:$0x3] }
  0x33   : > { %2679 = vmatmul.mubr.msk.f32.gmra.mrb[6].mxu1 %vm455_vm3, %v3326_v43  ;;  %v3473_v54 = vsel %vm817_vm4, %v843_v44, %v844_v46  ;;  %v849_v58 = vrot.slane %v3366_v57, 2  ;;  %v851_v59 = vrot.slane %v371_v7, 2  ;;  %v853_v61 = vrot.slane %v3395_v11, 2 }
  0x34   : > { %2783 = vmatmul.mubr.msk.f32.gmra.mrb[6].mxu0 %vm455_vm3, %v3352_v51  ;;  %2681 = vmatprep.mubr.msk.f32.mxu1 %vm455_vm3, %v3330_v45  ;;  %v3486_v52 = vsel %vm817_vm4, %v844_v46, %v846_v50  ;;  %v854_v62 = vrot.slane %v3398_v12, 2  ;;  %v856_v22 = vrot.slane %v374_v29, 2  ;;  %v1398_v24 = vrot.slane %v3494_v0, 2 }
  0x35   : > { %2799 = vmatprep.mubr.msk.f32.mxu0 %vm455_vm3, %v3358_v53  ;;  %v3491_v63 = vsel %vm817_vm4, %v848_v55, %v849_v58  ;;  %v3511_v7 = vsel %vm817_vm4, %v849_v58, %v851_v59  ;;  %v819_v44 = vrot.slane %v3221_v4, 2  ;;  %v821_v46 = vrot.slane %v3245_v13, 2  ;;  %v3630_v13 = vld [vmem:[%s3193_s17 + $0x20] sm:$0xff] }
  0x36   : > { %v3516_v23 = vsel %vm817_vm4, %v853_v61, %v854_v62  ;;  %vm2089_vm5 = vcmask 64512   ;;  %vm2128_vm6 = vcmask 57344  }
  0x37   : > { %2682 = vmatmul.mubr.msk.f32.gmra.mrb[8].mxu1 %vm455_vm3, %v3352_v51 }
  0x38   : > { %2800 = vmatmul.mubr.msk.f32.vlgmr.msra.gmra.mrb[0].mxu0 %vm455_vm3, %v3375_v60  ;;  %2684 = vmatprep.mubr.msk.f32.mxu1 %vm455_vm3, %v3388_v6 }
  0x39   : > { %2824 = vmatpush3.msk.msra.mxu0 %vm488_vm1, %v387_v37  ;;  %2802 = vmatprep.mubr.msk.f32.mxu0 %vm455_vm3, %v3392_v10  ;;  %v841_v37 = vrot.slane %v3310_v41, 2  ;;  %v3466_v41 = vsel %vm414_vm2, %v451_v26, %v453_v36  ;;  %v1399_v26 = vrot.slane %v3497_v1, 2 }
  0x3a   : > { %2849 = vmatprep.subr.msk.mxu0 %vm488_vm1, %v3403_v14 }
  0x3b   : > { %2685 = vmatmul.mubr.msk.f32.gmra.mrb[10].mxu1 %vm455_vm3, %v3410_v15  ;;  %v3469_v47 = vsel %vm817_vm4, %v839_v28, %v841_v37  ;;  %v1401_v28 = vrot.slane %v3521_v27, 2  ;;  %v3537_v29 = vsel %vm817_vm4, %v1398_v24, %v1399_v26  ;;  %v389_v37 = vld [vmem:[%s3866_s2 + $0x20] sm:$0xf] }
  0x3c   : > { %2803 = vmatmul.mubr.msk.f32.gmra.mrb[2].mxu0 %vm455_vm3, %v3413_v16  ;;  %2687 = vmatprep.mubr.msk.f32.mxu1 %vm455_vm3, %v3419_v17 }
  0x3d   : > { %2805 = vmatprep.mubr.msk.f32.mxu0 %vm455_vm3, %v3422_v21  ;;  %v3548_v36 = vsel %vm817_vm4, %v1399_v26, %v1401_v28 }
  0x3f   : > { %2688 = vmatmul.mubr.msk.f32.gmra.mrb[12].mxu1 %vm455_vm3, %v3443_v30 }
  0x40   : > { %2806 = vmatmul.mubr.msk.f32.gmra.mrb[4].mxu0 %vm455_vm3, %v3446_v34  ;;  %2690 = vmatprep.mubr.msk.f32.mxu1 %vm455_vm3, %v3450_v39 }
  0x41   : > { %2808 = vmatprep.mubr.msk.f32.mxu0 %vm455_vm3, %v3453_v40 }
  0x43   : > { %2691 = vmatmul.mubr.msk.f32.gmra.mrb[14].mxu1 %vm455_vm3, %v3466_v41 }
  0x44   : > { %2809 = vmatmul.mubr.msk.f32.gmra.mrb[6].mxu0 %vm455_vm3, %v3469_v47  ;;  %2695 = vmatprep.mubr.msk.f32.mxu1 %vm455_vm3, %v3215_v3 }
  0x45   : > { %2811 = vmatprep.mubr.msk.f32.mxu0 %vm455_vm3, %v3473_v54 }
  0x47   : > { %2696 = vmatmul.mubr.msk.f32.vlgmr.msra.gmra.mrb[0].mxu1 %vm455_vm3, %v3221_v4  ;;  %v3619_v4 = vld [vmem:[%s3193_s17 + $0x18] sm:$0xff] }
  0x48   : > { %2812 = vmatmul.mubr.msk.f32.gmra.mrb[8].mxu0 %vm455_vm3, %v3486_v52  ;;  %2720 = vmatpush3.msk.msra.mxu1 %vm488_vm1, %v3319_v42  ;;  %v3533_v42 = vsel %vm817_vm4, %v854_v62, %v856_v22 }
  0x49   : > { %2698 = vmatprep.mubr.msk.f32.mxu1 %vm455_vm3, %v3232_v8  ;;  %2814 = vmatprep.mubr.msk.f32.mxu0 %vm455_vm3, %v3491_v63 }
  0x4a   : > { %2745 = vmatprep.subr.msk.mxu1 %vm488_vm1, %v384_v5 }
  0x4b   : > { %2699 = vmatmul.mubr.msk.f32.gmra.mrb[2].mxu1 %vm455_vm3, %v3235_v9 }
  0x4c   : > { %2815 = vmatmul.mubr.msk.f32.gmra.mrb[10].mxu0 %vm455_vm3, %v3511_v7  ;;  %2701 = vmatprep.mubr.msk.f32.mxu1 %vm455_vm3, %v3254_v18 }
  0x4d   : > { %2817 = vmatprep.mubr.msk.f32.mxu0 %vm455_vm3, %v3516_v23 }
  0x4f   : > { %2702 = vmatmul.mubr.msk.f32.gmra.mrb[4].mxu1 %vm455_vm3, %v3257_v19 }
  0x50   : > { %2818 = vmatmul.mubr.msk.f32.gmra.mrb[12].mxu0 %vm455_vm3, %v3533_v42  ;;  %2704 = vmatprep.mubr.msk.f32.mxu1 %vm455_vm3, %v3260_v20 }
  0x51   : > { %2820 = vmatprep.mubr.msk.f32.mxu0 %vm455_vm3, %v3537_v29 }
  0x53   : > { %2705 = vmatmul.mubr.msk.f32.gmra.mrb[6].mxu1 %vm455_vm3, %v3270_v25 }
  0x54   : > { %2821 = vmatmul.mubr.msk.f32.gmra.mrb[14].mxu0 %vm455_vm3, %v3548_v36  ;;  %2707 = vmatprep.mubr.msk.f32.mxu1 %vm455_vm3, %v3281_v31 }
  0x55   : > { %2825 = vmatprep.mubr.msk.f32.mxu0 %vm455_vm3, %v3254_v18 }
  0x57   : > { %2708 = vmatmul.mubr.msk.f32.gmra.mrb[8].mxu1 %vm455_vm3, %v3284_v32 }
  0x58   : > { %2826 = vmatmul.mubr.msk.f32.vlgmr.msra.gmra.mrb[0].mxu0 %vm455_vm3, %v3257_v19  ;;  %2710 = vmatprep.mubr.msk.f32.mxu1 %vm455_vm3, %v3337_v48 }
  0x59   : > { %2850 = vmatpush3.msk.msra.mxu0 %vm488_vm1, %v3403_v14  ;;  %2828 = vmatprep.mubr.msk.f32.mxu0 %vm455_vm3, %v3260_v20  ;;  %v818_v14 = vrot.slane %v3215_v3, 2  ;;  %v822_v3 = vsel %vm817_vm4, %v819_v44, %v821_v46 }
  0x5a   : > { %2875 = vmatprep.subr.msk.mxu0 %vm488_vm1, %v389_v37 }
  0x5b   : > { %2711 = vmatmul.mubr.msk.f32.gmra.mrb[10].mxu1 %vm455_vm3, %v3340_v49  ;;  %v820_v50 = vsel %vm817_vm4, %v818_v14, %v819_v44 }
  0x5c   : > { %2829 = vmatmul.mubr.msk.f32.gmra.mrb[2].mxu0 %vm455_vm3, %v3270_v25  ;;  %2713 = vmatprep.mubr.msk.f32.mxu1 %vm455_vm3, %v3363_v56 }
  0x5d   : > { %2831 = vmatprep.mubr.msk.f32.mxu0 %vm455_vm3, %v3281_v31 }
  0x5f   : > { %2714 = vmatmul.mubr.msk.f32.gmra.mrb[12].mxu1 %vm455_vm3, %v3366_v57 }
  0x60   : > { %2832 = vmatmul.mubr.msk.f32.gmra.mrb[4].mxu0 %vm455_vm3, %v3284_v32  ;;  %2716 = vmatprep.mubr.msk.f32.mxu1 %vm455_vm3, %v3395_v11 }
  0x61   : > { %2834 = vmatprep.mubr.msk.f32.mxu0 %vm455_vm3, %v3337_v48 }
  0x63   : > { %2717 = vmatmul.mubr.msk.f32.gmra.mrb[14].mxu1 %vm455_vm3, %v3398_v12 }
  0x64   : > { %2835 = vmatmul.mubr.msk.f32.gmra.mrb[6].mxu0 %vm455_vm3, %v3340_v49  ;;  %2721 = vmatprep.mubr.msk.f32.mxu1 %vm455_vm3, %v820_v50 }
  0x65   : > { %2837 = vmatprep.mubr.msk.f32.mxu0 %vm455_vm3, %v3363_v56 }
  0x67   : > { %2722 = vmatmul.mubr.msk.f32.vlgmr.msra.gmra.mrb[0].mxu1 %vm455_vm3, %v822_v3 }
  0x68   : > { %2838 = vmatmul.mubr.msk.f32.gmra.mrb[8].mxu0 %vm455_vm3, %v3366_v57  ;;  %2746 = vmatpush3.msk.msra.mxu1 %vm488_vm1, %v384_v5 }
  0x69   : > { %2724 = vmatprep.mubr.msk.f32.mxu1 %vm455_vm3, %v3358_v53  ;;  %2840 = vmatprep.mubr.msk.f32.mxu0 %vm455_vm3, %v3395_v11 }
  0x6a   : > { %2901 = vmatprep.subr.msk.mxu1 %vm488_vm1, %v3212_v2 }
  0x6b   : > { %2725 = vmatmul.mubr.msk.f32.gmra.mrb[2].mxu1 %vm455_vm3, %v3375_v60 }
  0x6c   : > { %2841 = vmatmul.mubr.msk.f32.gmra.mrb[10].mxu0 %vm455_vm3, %v3398_v12  ;;  %2727 = vmatprep.mubr.msk.f32.mxu1 %vm455_vm3, %v3392_v10 }
  0x6d   : > { %2843 = vmatprep.mubr.msk.f32.mxu0 %vm455_vm3, %v3494_v0 }
  0x6f   : > { %2728 = vmatmul.mubr.msk.f32.gmra.mrb[4].mxu1 %vm455_vm3, %v3413_v16 }
  0x70   : > { %2844 = vmatmul.mubr.msk.f32.gmra.mrb[12].mxu0 %vm455_vm3, %v3497_v1  ;;  %2730 = vmatprep.mubr.msk.f32.mxu1 %vm455_vm3, %v3422_v21 }
  0x71   : > { %2846 = vmatprep.mubr.msk.f32.mxu0 %vm455_vm3, %v3619_v4 }
  0x73   : > { %2731 = vmatmul.mubr.msk.f32.gmra.mrb[6].mxu1 %vm455_vm3, %v3446_v34 }
  0x74   : > { %2847 = vmatmul.mubr.msk.f32.gmra.mrb[14].mxu0 %vm455_vm3, %v3630_v13  ;;  %2733 = vmatprep.mubr.msk.f32.mxu1 %vm455_vm3, %v3453_v40 }
  0x75   : > { %2851 = vmatprep.mubr.msk.f32.mxu0 %vm455_vm3, %v3289_v33  ;;  %v1225_v33 = vrot.slane %v3494_v0, 1 }
  0x77   : > { %2734 = vmatmul.mubr.msk.f32.gmra.mrb[8].mxu1 %vm455_vm3, %v3469_v47 }
  0x78   : > { %2852 = vmatmul.mubr.msk.f32.vlgmr.msra.gmra.mrb[0].mxu0 %vm455_vm3, %v3295_v35  ;;  %2736 = vmatprep.mubr.msk.f32.mxu1 %vm455_vm3, %v3473_v54  ;;  %v1226_v35 = vrot.slane %v3497_v1, 1 }
  0x79   : > { %2876 = vmatpush3.msk.msra.mxu0 %vm488_vm1, %v389_v37  ;;  %2854 = vmatprep.mubr.msk.f32.mxu0 %vm455_vm3, %v3305_v38  ;;  %v1742_v38 = vrot.slane %v3619_v4, 1 }
  0x7b   : > { %2737 = vmatmul.mubr.msk.f32.gmra.mrb[10].mxu1 %vm455_vm3, %v3486_v52 }
  0x7c   : > { %2855 = vmatmul.mubr.msk.f32.gmra.mrb[2].mxu0 %vm455_vm3, %v3326_v43  ;;  %2739 = vmatprep.mubr.msk.f32.mxu1 %vm455_vm3, %v3491_v63  ;;  %v1743_v43 = vrot.slane %v3630_v13, 1 }
  0x7d   : > { %2857 = vmatprep.mubr.msk.f32.mxu0 %vm455_vm3, %v3330_v45  ;;  %v380_v45 = vld [vmem:[%s3193_s17 + $0x28] sm:$0x3] }
  0x7f   : > { %2740 = vmatmul.mubr.msk.f32.gmra.mrb[12].mxu1 %vm455_vm3, %v3511_v7 }
  0x80   : > { %2858 = vmatmul.mubr.msk.f32.gmra.mrb[4].mxu0 %vm455_vm3, %v3352_v51  ;;  %2742 = vmatprep.mubr.msk.f32.mxu1 %vm455_vm3, %v3516_v23  ;;  %v1744_v51 = vsel %vm414_vm2, %v1742_v38, %v1743_v43 }
  0x81   : > { %2860 = vmatprep.mubr.msk.f32.mxu0 %vm455_vm3, %v3388_v6 }
  0x83   : > { %2743 = vmatmul.mubr.msk.f32.gmra.mrb[14].mxu1 %vm455_vm3, %v3533_v42 }
  0x84   : > { %2861 = vmatmul.mubr.msk.f32.gmra.mrb[6].mxu0 %vm455_vm3, %v3410_v15  ;;  %2747 = vmatprep.mubr.msk.f32.mxu1 %vm455_vm3, %v3232_v8  ;;  %v1228_v8 = vrot.slane %v3521_v27, 1 }
  0x85   : > { %2863 = vmatprep.mubr.msk.f32.mxu0 %vm455_vm3, %v3419_v17 }
  0x87   : > { %2748 = vmatmul.mubr.msk.f32.vlgmr.msra.gmra.mrb[0].mxu1 %vm455_vm3, %v3235_v9  ;;  %v1227_v9 = vsel %vm414_vm2, %v1225_v33, %v1226_v35 }
  0x88   : > { %2864 = vmatmul.mubr.msk.f32.gmra.mrb[8].mxu0 %vm455_vm3, %v3443_v30  ;;  %2902 = vmatpush3.msk.msra.mxu1 %vm488_vm1, %v3212_v2  ;;  %v1229_v2 = vsel %vm414_vm2, %v1226_v35, %v1228_v8 }
  0x89   : > { %2750 = vmatprep.mubr.msk.f32.mxu1 %vm455_vm3, %v3254_v18  ;;  %2866 = vmatprep.mubr.msk.f32.mxu0 %vm455_vm3, %v3450_v39  ;;  %v1745_v18 = vrot.slane %v380_v45, 1 }
  0x8b   : > { %2751 = vmatmul.mubr.msk.f32.gmra.mrb[2].mxu1 %vm455_vm3, %v3257_v19  ;;  %v1746_v19 = vsel %vm414_vm2, %v1743_v43, %v1745_v18 }
  0x8c   : > { %2867 = vmatmul.mubr.msk.f32.gmra.mrb[10].mxu0 %vm455_vm3, %v3466_v41  ;;  %2753 = vmatprep.mubr.msk.f32.mxu1 %vm455_vm3, %v3260_v20  ;;  %v1915_v20 = vrot.slane %v3619_v4, 2 }
  0x8d   : > { %2869 = vmatprep.mubr.msk.f32.mxu0 %vm455_vm3, %v1227_v9 }
  0x8f   : > { %2754 = vmatmul.mubr.msk.f32.gmra.mrb[4].mxu1 %vm455_vm3, %v3270_v25  ;;  %v1916_v25 = vrot.slane %v3630_v13, 2 }
  0x90   : > { %2870 = vmatmul.mubr.msk.f32.gmra.mrb[12].mxu0 %vm455_vm3, %v1229_v2  ;;  %2756 = vmatprep.mubr.msk.f32.mxu1 %vm455_vm3, %v3281_v31  ;;  %v1918_v31 = vrot.slane %v380_v45, 2 }
  0x91   : > { %2872 = vmatprep.mubr.msk.f32.mxu0 %vm455_vm3, %v1744_v51 }
  0x93   : > { %2757 = vmatmul.mubr.msk.f32.gmra.mrb[6].mxu1 %vm455_vm3, %v3284_v32  ;;  %v1917_v32 = vsel %vm817_vm4, %v1915_v20, %v1916_v25 }
  0x94   : > { %2873 = vmatmul.mubr.msk.f32.gmra.mrb[14].mxu0 %vm455_vm3, %v1746_v19  ;;  %2759 = vmatprep.mubr.msk.f32.mxu1 %vm455_vm3, %v3337_v48  ;;  %v1919_v48 = vsel %vm817_vm4, %v1916_v25, %v1918_v31 }
  0x95   : > { %2877 = vmatprep.mubr.msk.f32.mxu0 %vm455_vm3, %v3392_v10 }
  0x97   : > { %2760 = vmatmul.mubr.msk.f32.gmra.mrb[8].mxu1 %vm455_vm3, %v3340_v49 }
  0x98   : > { %2878 = vmatmul.mubr.msk.f32.vlgmr.msra.gmra.mrb[0].mxu0 %vm455_vm3, %v3413_v16  ;;  %2762 = vmatprep.mubr.msk.f32.mxu1 %vm455_vm3, %v3363_v56 }
  0x99   : > { %2880 = vmatprep.mubr.msk.f32.mxu0 %vm455_vm3, %v3422_v21 }
  0x9b   : > { %2763 = vmatmul.mubr.msk.f32.gmra.mrb[10].mxu1 %vm455_vm3, %v3366_v57 }
  0x9c   : > { %2881 = vmatmul.mubr.msk.f32.gmra.mrb[2].mxu0 %vm455_vm3, %v3446_v34  ;;  %2765 = vmatprep.mubr.msk.f32.mxu1 %vm455_vm3, %v3395_v11 }
  0x9d   : > { %2883 = vmatprep.mubr.msk.f32.mxu0 %vm455_vm3, %v3453_v40 }
  0x9f   : > { %2766 = vmatmul.mubr.msk.f32.gmra.mrb[12].mxu1 %vm455_vm3, %v3398_v12 }
  0xa0   : > { %2884 = vmatmul.mubr.msk.f32.gmra.mrb[4].mxu0 %vm455_vm3, %v3469_v47  ;;  %2768 = vmatprep.mubr.msk.f32.mxu1 %vm455_vm3, %v3494_v0 }
  0xa1   : > { %2886 = vmatprep.mubr.msk.f32.mxu0 %vm455_vm3, %v3473_v54 }
  0xa3   : > { %2769 = vmatmul.mubr.msk.f32.gmra.mrb[14].mxu1 %vm455_vm3, %v3497_v1 }
  0xa4   : > { %2887 = vmatmul.mubr.msk.f32.gmra.mrb[6].mxu0 %vm455_vm3, %v3486_v52  ;;  %2785 = vmatprep.mubr.msk.f32.mxu1 %vm455_vm3, %v3388_v6 }
  0xa5   : > { %2889 = vmatprep.mubr.msk.f32.mxu0 %vm455_vm3, %v3491_v63 }
  0xa7   : > { %2786 = vmatmul.mubr.msk.f32.vlgmr.msra.gmra.mrb[8].mxu1 %vm455_vm3, %v3410_v15 }
  0xa8   : > { %2890 = vmatmul.mubr.msk.f32.gmra.mrb[8].mxu0 %vm455_vm3, %v3511_v7  ;;  %2788 = vmatprep.mubr.msk.f32.mxu1 %vm455_vm3, %v3419_v17 }
  0xa9   : > { %2892 = vmatprep.mubr.msk.f32.mxu0 %vm455_vm3, %v3516_v23 }
  0xab   : > { %2789 = vmatmul.mubr.msk.f32.gmra.mrb[10].mxu1 %vm455_vm3, %v3443_v30 }
  0xac   : > { %2893 = vmatmul.mubr.msk.f32.gmra.mrb[10].mxu0 %vm455_vm3, %v3533_v42  ;;  %2791 = vmatprep.mubr.msk.f32.mxu1 %vm455_vm3, %v3450_v39 }
  0xad   : > { %2895 = vmatprep.mubr.msk.f32.mxu0 %vm455_vm3, %v3537_v29 }
  0xaf   : > { %2792 = vmatmul.mubr.msk.f32.gmra.mrb[12].mxu1 %vm455_vm3, %v3466_v41 }
  0xb0   : > { %2896 = vmatmul.mubr.msk.f32.gmra.mrb[12].mxu0 %vm455_vm3, %v3548_v36  ;;  %2794 = vmatprep.mubr.msk.f32.mxu1 %vm455_vm3, %v1227_v9 }
  0xb1   : > { %2898 = vmatprep.mubr.msk.f32.mxu0 %vm455_vm3, %v1917_v32 }
  0xb3   : > { %2795 = vmatmul.mubr.msk.f32.gmra.mrb[14].mxu1 %vm455_vm3, %v1229_v2 }
  0xb4   : > { %2899 = vmatmul.mubr.msk.f32.gmra.mrb[14].mxu0 %vm455_vm3, %v1919_v48 }
 0x15a   : > { %v2749_v49 = vpop.f32.mrb[0].mxu1 }
 0x15b   : > { %v1129_v53 = vpop.f32.mrb[1].mxu1 }
 0x15e   : > { %v2752_v56 = vpop.f32.mrb[2].mxu1 }
 0x15f   : > { %v1139_v57 = vpop.f32.mrb[3].mxu1 }
 0x162   : > { %v2755_v60 = vpop.f32.mrb[4].mxu1 }
 0x163   : > { %v1149_v6 = vpop.f32.mrb[5].mxu1 }
 0x166   : > { %v2758_v10 = vpop.f32.mrb[6].mxu1 }
 0x167   : > { %v1159_v11 = vpop.f32.mrb[7].mxu1 }
 0x16b   : > { %v2879_v12 = vpop.f32.mrb[0].mxu0 }
 0x16c   : > { %v2903_v15 = vadd.f32 %v2879_v12, %v2749_v49  ;;  %v1993_v16 = vpop.f32.mrb[1].mxu0 }
 0x16d   : > { %v2904_v17 = vadd.f32 %v1993_v16, %v1129_v53 }
 0x16e   : > { %v2091_v21 = vsel %vm2089_vm5, %v2903_v15, 0.0  ;;  %v2132_v30 = vmul.f32 %v2903_v15, %v2903_v15  ;;  %2187 = vst.msk [vmem:[%s3198_s7 + $0x8] sm:$0xff] %vm2089_vm5, %v2903_v15 }
 0x16f   : > { %v2090_v34 = vsel %vm2089_vm5, %v2904_v17, 0.0  ;;  %v2131_v39 = vmul.f32 %v2904_v17, %v2904_v17  ;;  %2186 = vst.msk [vmem:[%s3198_s7] sm:$0xff] %vm2089_vm5, %v2904_v17  ;;  %v2882_v40 = vpop.f32.mrb[2].mxu0 }
 0x170   : > { %v2148_v41 = vsel %vm2089_vm5, %v2132_v30, 0.0  ;;  %v2092_v47 = vadd.f32 %v2091_v21, %v2090_v34  ;;  %v2905_v54 = vadd.f32 %v2882_v40, %v2752_v56  ;;  %v2003_v55 = vpop.f32.mrb[3].mxu0 }
 0x171   : > { %v2147_v58 = vsel %vm2089_vm5, %v2131_v39, 0.0  ;;  %v2906_v52 = vadd.f32 %v2003_v55, %v1139_v57 }
 0x172   : > { %v2149_v59 = vadd.f32 %v2148_v41, %v2147_v58  ;;  %2189 = vst.msk [vmem:[%s3198_s7 + $0x18] sm:$0xff] %vm2089_vm5, %v2905_v54  ;;  %v2134_v61 = vmul.f32 %v2905_v54, %v2905_v54  ;;  %v2095_v22 = vsel %vm2089_vm5, %v2905_v54, 0.0 }
 0x173   : > { %v2093_v62 = vsel %vm2089_vm5, %v2906_v52, 0.0  ;;  %v2133_v63 = vmul.f32 %v2906_v52, %v2906_v52  ;;  %2188 = vst.msk [vmem:[%s3198_s7 + $0x10] sm:$0xff] %vm2089_vm5, %v2906_v52  ;;  %v2885_v0 = vpop.f32.mrb[4].mxu0 }
 0x174   : > { %v2094_v1 = vadd.f32 %v2093_v62, %v2092_v47  ;;  %v2907_v5 = vadd.f32 %v2885_v0, %v2755_v60  ;;  %v2013_v7 = vpop.f32.mrb[5].mxu0  ;;  %v2152_v42 = vsel %vm2089_vm5, %v2134_v61, 0.0 }
 0x175   : > { %v2150_v23 = vsel %vm2089_vm5, %v2133_v63, 0.0  ;;  %v2908_v24 = vadd.f32 %v2013_v7, %v1149_v6 }
 0x176   : > { %v2151_v26 = vadd.f32 %v2150_v23, %v2149_v59  ;;  %2191 = vst.msk [vmem:[%s3198_s7 + $0x28] sm:$0xff] %vm2089_vm5, %v2907_v5  ;;  %v2096_v27 = vadd.f32 %v2095_v22, %v2094_v1  ;;  %v2136_v28 = vmul.f32 %v2907_v5, %v2907_v5  ;;  %v2099_v3 = vsel %vm2089_vm5, %v2907_v5, 0.0 }
 0x177   : > { %v2097_v29 = vsel %vm2089_vm5, %v2908_v24, 0.0  ;;  %v2135_v36 = vmul.f32 %v2908_v24, %v2908_v24  ;;  %2190 = vst.msk [vmem:[%s3198_s7 + $0x20] sm:$0xff] %vm2089_vm5, %v2908_v24  ;;  %v2888_v37 = vpop.f32.mrb[6].mxu0 }
 0x178   : > { %v2098_v14 = vadd.f32 %v2097_v29, %v2096_v27  ;;  %v2153_v44 = vadd.f32 %v2152_v42, %v2151_v26  ;;  %v2909_v46 = vadd.f32 %v2888_v37, %v2758_v10  ;;  %v2023_v50 = vpop.f32.mrb[7].mxu0  ;;  %v2156_v8 = vsel %vm2089_vm5, %v2136_v28, 0.0 }
 0x179   : > { %v2154_v4 = vsel %vm2089_vm5, %v2135_v36, 0.0  ;;  %v2910_v13 = vadd.f32 %v2023_v50, %v1159_v11 }
 0x17a   : > { %v2155_v33 = vadd.f32 %v2154_v4, %v2153_v44  ;;  %2193 = vst.msk [vmem:[%s3198_s7 + $0x38] sm:$0xff] %vm2089_vm5, %v2909_v46  ;;  %v2100_v35 = vadd.f32 %v2099_v3, %v2098_v14  ;;  %v2138_v38 = vmul.f32 %v2909_v46, %v2909_v46  ;;  %v2787_v45 = vpop.f32.mrb[8].mxu1  ;;  %v2103_v31 = vsel %vm2089_vm5, %v2909_v46, 0.0 }
 0x17b   : > { %v2101_v43 = vsel %vm2089_vm5, %v2910_v13, 0.0  ;;  %v2137_v9 = vmul.f32 %v2910_v13, %v2910_v13  ;;  %2192 = vst.msk [vmem:[%s3198_s7 + $0x30] sm:$0xff] %vm2089_vm5, %v2910_v13  ;;  %v2891_v2 = vpop.f32.mrb[8].mxu0  ;;  %v1343_v20 = vpop.f32.mrb[9].mxu1 }
 0x17c   : > { %v2102_v18 = vadd.f32 %v2101_v43, %v2100_v35  ;;  %v2157_v51 = vadd.f32 %v2156_v8, %v2155_v33  ;;  %v2911_v19 = vadd.f32 %v2891_v2, %v2787_v45  ;;  %v2033_v25 = vpop.f32.mrb[9].mxu0  ;;  %v2160_v56 = vsel %vm2089_vm5, %v2138_v38, 0.0 }
 0x17d   : > { %v2158_v32 = vsel %vm2089_vm5, %v2137_v9, 0.0  ;;  %v2912_v48 = vadd.f32 %v2033_v25, %v1343_v20 }
 0x17e   : > { %v2159_v49 = vadd.f32 %v2158_v32, %v2157_v51  ;;  %2195 = vst.msk [vmem:[%s3198_s7 + $0x48] sm:$0xff] %vm2089_vm5, %v2911_v19  ;;  %v2104_v53 = vadd.f32 %v2103_v31, %v2102_v18  ;;  %v2140_v57 = vmul.f32 %v2911_v19, %v2911_v19  ;;  %v2790_v10 = vpop.f32.mrb[10].mxu1  ;;  %v2107_v30 = vsel %vm2089_vm5, %v2911_v19, 0.0 }
 0x17f   : > { %v2105_v60 = vsel %vm2089_vm5, %v2912_v48, 0.0  ;;  %v2139_v6 = vmul.f32 %v2912_v48, %v2912_v48  ;;  %2194 = vst.msk [vmem:[%s3198_s7 + $0x40] sm:$0xff] %vm2089_vm5, %v2912_v48  ;;  %v2894_v11 = vpop.f32.mrb[10].mxu0  ;;  %v1353_v17 = vpop.f32.mrb[11].mxu1 }
 0x180   : > { %v2106_v12 = vadd.f32 %v2105_v60, %v2104_v53  ;;  %v2161_v15 = vadd.f32 %v2160_v56, %v2159_v49  ;;  %v2913_v16 = vadd.f32 %v2894_v11, %v2790_v10  ;;  %v2043_v21 = vpop.f32.mrb[11].mxu0  ;;  %v2164_v47 = vsel %vm2089_vm5, %v2140_v57, 0.0  ;;  %v2088_v11 = vld [vmem:[%s3868_s4] sm:$0x1] }
 0x181   : > { %v2162_v34 = vsel %vm2089_vm5, %v2139_v6, 0.0  ;;  %v2914_v39 = vadd.f32 %v2043_v21, %v1353_v17 }
 0x182   : > { %v2163_v40 = vadd.f32 %v2162_v34, %v2161_v15  ;;  %2197 = vst.msk [vmem:[%s3198_s7 + $0x58] sm:$0xff] %vm2089_vm5, %v2913_v16  ;;  %v2108_v41 = vadd.f32 %v2107_v30, %v2106_v12  ;;  %v2142_v54 = vmul.f32 %v2913_v16, %v2913_v16  ;;  %v2793_v52 = vpop.f32.mrb[12].mxu1  ;;  %v2111_v5 = vsel %vm2089_vm5, %v2913_v16, 0.0  ;;  %v2130_v16 = vld [vmem:[%s3869_s5] sm:$0x1] }
 0x183   : > { %v2109_v55 = vsel %vm2089_vm5, %v2914_v39, 0.0  ;;  %v2141_v58 = vmul.f32 %v2914_v39, %v2914_v39  ;;  %2196 = vst.msk [vmem:[%s3198_s7 + $0x50] sm:$0xff] %vm2089_vm5, %v2914_v39  ;;  %v2897_v59 = vpop.f32.mrb[12].mxu0  ;;  %v1363_v0 = vpop.f32.mrb[13].mxu1 }
 0x184   : > { %v2110_v61 = vadd.f32 %v2109_v55, %v2108_v41  ;;  %v2165_v62 = vadd.f32 %v2164_v47, %v2163_v40  ;;  %v2915_v63 = vadd.f32 %v2897_v59, %v2793_v52  ;;  %v2053_v1 = vpop.f32.mrb[13].mxu0  ;;  %v2168_v26 = vsel %vm2089_vm5, %v2142_v54, 0.0 }
 0x185   : > { %v2166_v7 = vsel %vm2089_vm5, %v2141_v58, 0.0  ;;  %v2916_v22 = vadd.f32 %v2053_v1, %v1363_v0 }
 0x186   : > { %v2167_v23 = vadd.f32 %v2166_v7, %v2165_v62  ;;  %2199 = vst.msk [vmem:[%s3198_s7 + $0x68] sm:$0xff] %vm2089_vm5, %v2915_v63  ;;  %v2112_v24 = vadd.f32 %v2111_v5, %v2110_v61  ;;  %v2144_v27 = vmul.f32 %v2915_v63, %v2915_v63  ;;  %v2796_v29 = vpop.f32.mrb[14].mxu1  ;;  %v2115_v3 = vsel %vm2089_vm5, %v2915_v63, 0.0 }
 0x187   : > { %v2113_v42 = vsel %vm2089_vm5, %v2916_v22, 0.0  ;;  %v2143_v28 = vmul.f32 %v2916_v22, %v2916_v22  ;;  %2198 = vst.msk [vmem:[%s3198_s7 + $0x60] sm:$0xff] %vm2089_vm5, %v2916_v22  ;;  %v2900_v36 = vpop.f32.mrb[14].mxu0  ;;  %v1373_v46 = vpop.f32.mrb[15].mxu1 }
 0x188   : > { %v2114_v37 = vadd.f32 %v2113_v42, %v2112_v24  ;;  %v2169_v14 = vadd.f32 %v2168_v26, %v2167_v23  ;;  %v2917_v44 = vadd.f32 %v2900_v36, %v2796_v29  ;;  %v2063_v50 = vpop.f32.mrb[15].mxu0  ;;  %v2172_v8 = vsel %vm2089_vm5, %v2144_v27, 0.0 }
 0x189   : > { %v2170_v4 = vsel %vm2089_vm5, %v2143_v28, 0.0  ;;  %v2918_v13 = vadd.f32 %v2063_v50, %v1373_v46 }
 0x18a   : > { %v2171_v33 = vadd.f32 %v2170_v4, %v2169_v14  ;;  %2201 = vst.msk [vmem:[%s3198_s7 + $0x78] sm:$0xff] %vm2089_vm5, %v2917_v44  ;;  %v2116_v35 = vadd.f32 %v2115_v3, %v2114_v37  ;;  %v2146_v38 = vmul.f32 %v2917_v44, %v2917_v44  ;;  %v2119_v18 = vsel %vm2089_vm5, %v2917_v44, 0.0 }
 0x18b   : > { %v2117_v43 = vsel %vm2089_vm5, %v2918_v13, 0.0  ;;  %v2145_v9 = vmul.f32 %v2918_v13, %v2918_v13  ;;  %2200 = vst.msk [vmem:[%s3198_s7 + $0x70] sm:$0xff] %vm2089_vm5, %v2918_v13 }
 0x18c   : > { %v2118_v45 = vadd.f32 %v2117_v43, %v2116_v35  ;;  %v2173_v2 = vadd.f32 %v2172_v8, %v2171_v33  ;;  %v2176_v25 = vsel %vm2089_vm5, %v2146_v38, 0.0 }
 0x18d   : > { %v2174_v51 = vsel %vm2089_vm5, %v2145_v9, 0.0 }
 0x18e   : > { %v2120_v19 = vadd.f32 %v2119_v18, %v2118_v45  ;;  %v2175_v20 = vadd.f32 %v2174_v51, %v2173_v2 }
 0x190   : > { %v2121_v31 = vrot.slane %v2120_v19, 4  ;;  %v2177_v32 = vadd.f32 %v2176_v25, %v2175_v20 }
 0x192   : > { %v2122_v48 = vadd.f32 %v2121_v31, %v2120_v19  ;;  %v2178_v49 = vrot.slane %v2177_v32, 4 }
 0x194   : > { %v2123_v53 = vrot.slane %v2122_v48, 2  ;;  %v2179_v56 = vadd.f32 %v2178_v49, %v2177_v32 }
 0x196   : > { %v2124_v57 = vadd.f32 %v2123_v53, %v2122_v48  ;;  %v2180_v60 = vrot.slane %v2179_v56, 2 }
 0x198   : > { %v2125_v6 = vrot.slane %v2124_v57, 1  ;;  %v2181_v10 = vadd.f32 %v2180_v60, %v2179_v56 }
 0x19a   : > { %v2126_v12 = vadd.f32 %v2125_v6, %v2124_v57  ;;  %v2182_v15 = vrot.slane %v2181_v10, 1 }
 0x19c   : > { %v2127_v17 = vadd.f32 %v2126_v12, %v2088_v11  ;;  %v2183_v21 = vadd.f32 %v2182_v15, %v2181_v10 }
 0x19e   : > { %2129 = vst.msk [vmem:[%s3868_s4] sm:$0x1] %vm2128_vm6, %v2127_v17  ;;  %v2184_v30 = vadd.f32 %v2183_v21, %v2130_v16 }
 0x1a0   : > { %2185 = vst.msk [vmem:[%s3869_s5] sm:$0x1] %vm2128_vm6, %v2184_v30 }
 0x1a1 PF: > { %s16_s22 = sadd.s32 1, %s3113_s22   ;;  %s3871_s12 = sld [smem:[#allocation2_spill]] }
 0x1a2   : > { %p13_p12 = scmp.ge.s32.totalorder %s16_s22, 6   ;;  %s3872_s18 = smov %s3105_s20 }
 0x1a3   : > { %s3873_s19 = smov %s3109_s21  ;;  %s3874_s20 = smov %s3877_s23 }
 0x1a4   :  { %15 = sbr.rel (!%p13_p12) target bundleno = 3 (0x3), region = 85 }
 0x1a7   : > { %s3875_s21 = smov %s3871_s12 }

</bundles_post_ra>
